<compile_context>
chip_gen: v5e
topology: v5e:2x2
jax: 0.10.0
libtpu: 0.0.40
codegen_flags: <defaults>
</compile_context>

<pallas_src>
import jax
import jax.numpy as jnp
from jax.experimental import pallas as pl
from jax.experimental.pallas import tpu as pltpu

LANE = 128


def _round_up(x, m):
    return (x + m - 1) // m * m


# ----------------------------- Pallas kernels ------------------------------

def _fused_deconv_bn_relu_kernel(a_ref, w_ref, g_ref, b_ref, o_ref, acc_ref):
    """Per-phase matmul + full-batch BatchNorm + ReLU, all in VMEM.

    a_ref: (P, Mp, Kp) bf16 im2col patches (one slab per output phase)
    w_ref: (P, Kp, Cp) bf16 per-phase weight matrices (Cp lane-padded)
    g_ref, b_ref: (1, Cp) f32 gamma / beta (lane-padded)
    o_ref: (P, Mp, Cp) bf16 output (normalized + ReLU'ed)
    acc_ref: (P, Mp, Cp) f32 scratch holding the raw matmul results
    """
    p_phases, m_rows, _ = a_ref.shape
    inv_n = 1.0 / float(p_phases * m_rows)

    # MXU matmuls; fold sum / sum-of-squares while the result is still live.
    ssum = None
    ssq = None
    for p in range(p_phases):
        y = jnp.dot(a_ref[p], w_ref[p], preferred_element_type=jnp.float32)
        acc_ref[p] = y
        ys = jnp.sum(y, axis=0, keepdims=True)
        yq = jnp.sum(y * y, axis=0, keepdims=True)
        if p == 0:
            ssum, ssq = ys, yq
        else:
            ssum = ssum + ys
            ssq = ssq + yq

    mean = ssum * inv_n
    var = jnp.maximum(ssq * inv_n - mean * mean, 0.0)
    inv = jax.lax.rsqrt(var + 1e-5)
    scale = inv * g_ref[...]
    shift = b_ref[...] - mean * scale

    for p in range(p_phases):
        o_ref[p] = jnp.maximum(acc_ref[p] * scale + shift,
                               0.0).astype(o_ref.dtype)


def _deconv_out_kernel(a_ref, w_ref, o_ref):
    """Plain per-phase matmul (final layer, no BN/ReLU)."""
    o_ref[0] = jnp.dot(a_ref[0], w_ref[0], preferred_element_type=jnp.float32)


def fused_deconv_bn_relu(patches, w_mats, gamma, beta):
    P, Mp, Kp = patches.shape
    Cp = w_mats.shape[-1]
    return pl.pallas_call(
        _fused_deconv_bn_relu_kernel,
        out_shape=jax.ShapeDtypeStruct((P, Mp, Cp), jnp.bfloat16),
        grid=(1,),
        in_specs=[pl.BlockSpec((P, Mp, Kp), lambda i: (0, 0, 0)),
                  pl.BlockSpec((P, Kp, Cp), lambda i: (0, 0, 0)),
                  pl.BlockSpec((1, Cp), lambda i: (0, 0)),
                  pl.BlockSpec((1, Cp), lambda i: (0, 0))],
        out_specs=pl.BlockSpec((P, Mp, Cp), lambda i: (0, 0, 0)),
        scratch_shapes=[pltpu.VMEM((P, Mp, Cp), jnp.float32)],
        compiler_params=pltpu.CompilerParams(
            dimension_semantics=("arbitrary",)),
    )(patches, w_mats, gamma, beta)


def deconv_matmul(patches, w_mats):
    P, Mp, Kp = patches.shape
    Cp = w_mats.shape[-1]
    return pl.pallas_call(
        _deconv_out_kernel,
        out_shape=jax.ShapeDtypeStruct((P, Mp, Cp), jnp.float32),
        grid=(P,),
        in_specs=[pl.BlockSpec((1, Mp, Kp), lambda i: (i, 0, 0)),
                  pl.BlockSpec((1, Kp, Cp), lambda i: (i, 0, 0))],
        out_specs=pl.BlockSpec((1, Mp, Cp), lambda i: (i, 0, 0)),
        compiler_params=pltpu.CompilerParams(
            dimension_semantics=("parallel",)),
    )(patches, w_mats)


# ----------------------- sub-pixel (phase) decomposition --------------------

def _phase_info(K, s, p):
    """Static geometry for the phase decomposition of a transposed conv."""
    pp = K - 1 - p                       # pad of the equivalent regular conv
    # Needed so every phase has the same tap count and output extent
    # (holds for the module defaults: K=4, s in {1,2}, p in {0,1}).
    assert K % s == 0 and (K - 2 * p) % s == 0, "unsupported (K, stride, pad)"
    t = K // s                           # taps per spatial dim per phase
    lpad = pp // s                       # left pad of the (un-dilated) input
    phases = []
    for r in range(s):
        k0 = (pp - r) % s                # first kernel tap used by phase r
        off = lpad - (pp - r) // s       # start offset into the padded input
        phases.append((k0, off))
    return t, lpad, phases


def prepare_pallas_params(raw_params, z_pad=LANE):
    """Precompute per-phase bf16 weight matrices + padded gamma/beta once."""
    prepared = []
    for li, layer in enumerate(raw_params):
        w = layer["w"]                                  # (Cin, Cout, K, K)
        cin, cout, K, _ = w.shape
        s, p = layer["stride"], layer["padding"]
        if li == 0 and cin < z_pad:                     # pad z_dim 100 -> 128
            w = jnp.pad(w, ((0, z_pad - cin), (0, 0), (0, 0), (0, 0)))
            cin = z_pad
        t, lpad, phases = _phase_info(K, s, p)
        cpad = _round_up(cout, LANE)

        # equivalent regular-conv weight: flip spatial dims, (kh,kw,ci,co)
        w_flip = jnp.transpose(w[:, :, ::-1, ::-1], (2, 3, 0, 1))
        mats = []
        for (k0y, _) in phases:
            for (k0x, _) in phases:
                wp = w_flip[k0y::s, k0x::s]             # (t, t, cin, cout)
                wm = wp.reshape(t * t * cin, cout)
                wm = jnp.pad(wm, ((0, 0), (0, cpad - cout)))
                mats.append(wm)
        w_mats = jnp.stack(mats, 0).astype(jnp.bfloat16)  # (P, Kp, Cpad)

        gamma = beta = None
        if layer["bn_relu"]:
            gamma = jnp.pad(layer["gamma"], (0, cpad - cout)).reshape(1, cpad)
            beta = jnp.pad(layer["beta"], (0, cpad - cout)).reshape(1, cpad)

        prepared.append(dict(
            w_mats=w_mats, gamma=gamma, beta=beta, bn_relu=layer["bn_relu"],
            stride=s, padding=p, ksize=K, cin=cin, cout=cout, cpad=cpad,
            t=t, lpad=lpad, phases=phases,
        ))
    return prepared


def conv_transpose_layer(x, prep):
    """One ConvTranspose2d (+fused BN/ReLU) via phase im2col + Pallas matmul."""
    n, h, w_sp, cin = x.shape
    assert cin == prep["cin"]
    K, s, p = prep["ksize"], prep["stride"], prep["padding"]
    t, lpad, phases = prep["t"], prep["lpad"], prep["phases"]
    cout, cpad = prep["cout"], prep["cpad"]

    ho = (h - 1) * s + K - 2 * p
    wo = (w_sp - 1) * s + K - 2 * p
    hq, wq = ho // s, wo // s

    rpad_h = max(max(0, hq + off + t - 1 - lpad - h) for (_, off) in phases)
    rpad_w = max(max(0, wq + off + t - 1 - lpad - w_sp) for (_, off) in phases)
    x_pad = jnp.pad(x, ((0, 0), (lpad, rpad_h), (lpad, rpad_w), (0, 0)))

    kp = t * t * cin
    mp = n * hq * wq
    slabs = []
    for (_, offy) in phases:
        for (_, offx) in phases:
            cols = []
            for jy in range(t):
                for jx in range(t):
                    cols.append(x_pad[:, offy + jy:offy + jy + hq,
                                      offx + jx:offx + jx + wq, :])
            slabs.append(jnp.concatenate(cols, axis=-1).reshape(mp, kp))
    patches = jnp.stack(slabs, 0).astype(jnp.bfloat16)      # (P, Mp, Kp)

    if prep["bn_relu"]:
        y = fused_deconv_bn_relu(patches, prep["w_mats"],
                                 prep["gamma"], prep["beta"])
    else:
        y = deconv_matmul(patches, prep["w_mats"])

    # drop lane padding, interleave phases back into the full spatial grid
    y = y[..., :cout].reshape(s, s, n, hq, wq, cout)
    y = jnp.transpose(y, (2, 3, 0, 4, 1, 5)).reshape(n, ho, wo, cout)
    return y


def deconv_layers_forward_pallas(x_nchw, prepared):
    x = jnp.transpose(x_nchw, (0, 2, 3, 1))                 # NCHW -> NHWC
    cin0 = prepared[0]["cin"]
    if x.shape[-1] < cin0:                                  # pad z_dim -> 128
        x = jnp.pad(x, ((0, 0), (0, 0), (0, 0), (0, cin0 - x.shape[-1])))
    for prep in prepared:
        x = conv_transpose_layer(x, prep)
    return jnp.transpose(x, (0, 3, 1, 2))                   # NHWC -> NCHW


# --------------------------- parameters & reference -------------------------

def make_params(key, num_layers=4, z_dim=100, num_base_chans=16,
                kernel_size=4, stride=2):
    """Deterministic parameters mirroring DeconvLayers._make_layers."""
    params = []
    c_in = z_dim
    c_out = num_base_chans * 2 ** (num_layers - 1)
    for i in range(num_layers):
        key, sub = jax.random.split(key)
        w = 0.05 * jax.random.normal(
            sub, (c_in, c_out, kernel_size, kernel_size), jnp.float32)
        has_bn = i < num_layers - 1
        params.append({
            "w": w,
            "stride": 1 if i == 0 else stride,
            "padding": 0 if i == 0 else 1,
            "bn_relu": has_bn,
            "gamma": jnp.ones((c_out,), jnp.float32) if has_bn else None,
            "beta": jnp.zeros((c_out,), jnp.float32) if has_bn else None,
        })
        c_in = c_out
        c_out = 3 if i == num_layers - 2 else c_out // 2
    return params


def _conv_transpose2d_ref(x_nhwc, w_pt, stride, padding):
    n, h, w, cin = x_nhwc.shape
    _, cout, k, _ = w_pt.shape
    hd = (h - 1) * stride + 1
    wd = (w - 1) * stride + 1
    x_dil = jnp.zeros((n, hd, wd, cin), x_nhwc.dtype)
    x_dil = x_dil.at[:, ::stride, ::stride, :].set(x_nhwc)
    p = k - 1 - padding
    x_pad = jnp.pad(x_dil, ((0, 0), (p, p), (p, p), (0, 0)))
    ho = hd + 2 * p - k + 1
    wo = wd + 2 * p - k + 1
    cols = []
    for kh in range(k):
        for kw in range(k):
            cols.append(x_pad[:, kh:kh + ho, kw:kw + wo, :])
    patches = jnp.concatenate(cols, axis=-1).reshape(n * ho * wo, k * k * cin)
    w_mat = jnp.transpose(w_pt[:, :, ::-1, ::-1], (2, 3, 0, 1)).reshape(
        k * k * cin, cout)
    out = jnp.dot(patches, w_mat, precision=jax.lax.Precision.HIGHEST)
    return out.reshape(n, ho, wo, cout)


def deconv_layers_reference(x_nchw, raw_params):
    x = jnp.transpose(x_nchw, (0, 2, 3, 1))
    for layer in raw_params:
        x = _conv_transpose2d_ref(x, layer["w"], layer["stride"],
                                  layer["padding"])
        if layer["bn_relu"]:
            n, h, w, c = x.shape
            x2 = x.reshape(n * h * w, c)
            mean = jnp.mean(x2, axis=0, keepdims=True)
            var = jnp.mean((x2 - mean) ** 2, axis=0, keepdims=True)
            x2 = jnp.maximum((x2 - mean) * jax.lax.rsqrt(var + 1e-5)
                             * layer["gamma"][None, :] + layer["beta"][None, :],
                             0.0)
            x = x2.reshape(n, h, w, c)
    return jnp.transpose(x, (0, 3, 1, 2))


# --------------------------------- main -------------------------------------

if __name__ == "__main__":
    key = jax.random.PRNGKey(0)
    key_p, key_x = jax.random.split(key)

    # DeconvLayers defaults: num_layers=4, z_dim=100, num_base_chans=16, k=4, s=2
    raw_params = make_params(key_p)
    prepared = prepare_pallas_params(raw_params)

    # latent input, matching a DCGAN generator: (N, z_dim, 1, 1)
    x = jax.random.normal(key_x, (2, 100, 1, 1), jnp.float32)

    fwd = jax.jit(lambda inp: deconv_layers_forward_pallas(inp, prepared))
    out = jax.block_until_ready(fwd(x))
    assert out.shape == (2, 3, 32, 32), out.shape

    # pure-JAX f32 reference of the same math (Pallas path uses bf16 operands
    # with f32 accumulation, hence the slightly relaxed tolerance).
    ref_fn = jax.jit(lambda inp: deconv_layers_reference(inp, raw_params))
    ref = jax.block_until_ready(ref_fn(x))
    assert bool(jnp.all(jnp.isfinite(out)))
    max_err = float(jnp.max(jnp.abs(out - ref)))
    assert bool(jnp.allclose(out, ref, rtol=2e-2, atol=2e-2)), max_err

    print("KERNEL_OK")
</pallas_src>

<mosaic_0001>
module attributes {stable_mosaic.version = 11 : i64} {
  func.func @_fused_deconv_bn_relu_kernel(%arg0: i32, %arg1: memref<1x32x2048xbf16, #tpu.memory_space<vmem>>, %arg2: memref<1x2048x128xbf16, #tpu.memory_space<vmem>>, %arg3: memref<1x128xf32, #tpu.memory_space<vmem>>, %arg4: memref<1x128xf32, #tpu.memory_space<vmem>>, %arg5: memref<1x32x128xbf16, #tpu.memory_space<vmem>>, %arg6: memref<1x32x128xf32, #tpu.memory_space<vmem>>) attributes {dimension_semantics = [#tpu.dimension_semantics<arbitrary>], iteration_bounds = array<i64: 1>, scalar_prefetch = 0 : i64, scratch_operands = 1 : i64, tpu.core_type = #tpu.core_type<tc>, window_params = [{pipeline_mode = #tpu.pipeline_mode<synchronous>, transform_indices = @transform_0, window_bounds = array<i64: 1, 32, 2048>}, {pipeline_mode = #tpu.pipeline_mode<synchronous>, transform_indices = @transform_1, window_bounds = array<i64: 1, 2048, 128>}, {pipeline_mode = #tpu.pipeline_mode<synchronous>, transform_indices = @transform_2, window_bounds = array<i64: 1, 128>}, {pipeline_mode = #tpu.pipeline_mode<synchronous>, transform_indices = @transform_3, window_bounds = array<i64: 1, 128>}, {pipeline_mode = #tpu.pipeline_mode<synchronous>, transform_indices = @transform_4, window_bounds = array<i64: 1, 32, 128>}]} {
    %c0 = arith.constant 0 : index
    %c0_0 = arith.constant 0 : index
    %c0_1 = arith.constant 0 : index
    %0 = vector.load %arg1[%c0, %c0_0, %c0_1] : memref<1x32x2048xbf16, #tpu.memory_space<vmem>>, vector<1x32x2048xbf16>
    %1 = vector.shape_cast %0 : vector<1x32x2048xbf16> to vector<32x2048xbf16>
    %c0_2 = arith.constant 0 : index
    %c0_3 = arith.constant 0 : index
    %c0_4 = arith.constant 0 : index
    %2 = vector.load %arg2[%c0_2, %c0_3, %c0_4] : memref<1x2048x128xbf16, #tpu.memory_space<vmem>>, vector<1x2048x128xbf16>
    %3 = vector.shape_cast %2 : vector<1x2048x128xbf16> to vector<2048x128xbf16>
    %cst = arith.constant dense<0.000000e+00> : vector<32x128xf32>
    %4 = tpu.matmul %1, %3, %cst {dimension_numbers = #tpu.dot_dimension_numbers<[1], [0], [0], [1], [0, 0, 1, 1], [], []>} : vector<32x2048xbf16>, vector<2048x128xbf16>, vector<32x128xf32> -> vector<32x128xf32>
    %c0_5 = arith.constant 0 : index
    %c0_6 = arith.constant 0 : index
    %c0_7 = arith.constant 0 : index
    %5 = vector.load %arg6[%c0_5, %c0_6, %c0_7] : memref<1x32x128xf32, #tpu.memory_space<vmem>>, vector<1x32x128xf32>
    %6 = vector.shape_cast %5 : vector<1x32x128xf32> to vector<32x128xf32>
    %7 = vector.shape_cast %4 : vector<32x128xf32> to vector<1x32x128xf32>
    tpu.vector_store %arg6[%c0_5, %c0_6, %c0_7], %7 {strides = array<i32>} : memref<1x32x128xf32, #tpu.memory_space<vmem>>, vector<1x32x128xf32>,
    %cst_8 = arith.constant dense<0.000000e+00> : vector<128xf32>
    %8 = vector.multi_reduction <add>, %4, %cst_8 [0] : vector<32x128xf32> to vector<128xf32>
    %9 = vector.shape_cast %8 : vector<128xf32> to vector<1x128xf32>
    %10 = arith.mulf %4, %4 : vector<32x128xf32>
    %cst_9 = arith.constant dense<0.000000e+00> : vector<128xf32>
    %11 = vector.multi_reduction <add>, %10, %cst_9 [0] : vector<32x128xf32> to vector<128xf32>
    %12 = vector.shape_cast %11 : vector<128xf32> to vector<1x128xf32>
    %cst_10 = arith.constant 3.125000e-02 : f32
    %13 = vector.broadcast %cst_10 : f32 to vector<1x128xf32>
    %14 = arith.mulf %9, %13 : vector<1x128xf32>
    %cst_11 = arith.constant 3.125000e-02 : f32
    %15 = vector.broadcast %cst_11 : f32 to vector<1x128xf32>
    %16 = arith.mulf %12, %15 : vector<1x128xf32>
    %17 = arith.mulf %14, %14 : vector<1x128xf32>
    %18 = arith.subf %16, %17 : vector<1x128xf32>
    %cst_12 = arith.constant 0.000000e+00 : f32
    %19 = vector.broadcast %cst_12 : f32 to vector<1x128xf32>
    %20 = arith.maximumf %18, %19 : vector<1x128xf32>
    %cst_13 = arith.constant 9.99999974E-6 : f32
    %21 = vector.broadcast %cst_13 : f32 to vector<1x128xf32>
    %22 = arith.addf %20, %21 : vector<1x128xf32>
    %23 = math.rsqrt %22 : vector<1x128xf32>
    %c0_14 = arith.constant 0 : index
    %c0_15 = arith.constant 0 : index
    %24 = vector.load %arg3[%c0_14, %c0_15] : memref<1x128xf32, #tpu.memory_space<vmem>>, vector<1x128xf32>
    %25 = arith.mulf %23, %24 : vector<1x128xf32>
    %c0_16 = arith.constant 0 : index
    %c0_17 = arith.constant 0 : index
    %26 = vector.load %arg4[%c0_16, %c0_17] : memref<1x128xf32, #tpu.memory_space<vmem>>, vector<1x128xf32>
    %27 = arith.mulf %14, %25 : vector<1x128xf32>
    %28 = arith.subf %26, %27 : vector<1x128xf32>
    %c0_18 = arith.constant 0 : index
    %c0_19 = arith.constant 0 : index
    %c0_20 = arith.constant 0 : index
    %29 = vector.load %arg6[%c0_18, %c0_19, %c0_20] : memref<1x32x128xf32, #tpu.memory_space<vmem>>, vector<1x32x128xf32>
    %30 = vector.shape_cast %29 : vector<1x32x128xf32> to vector<32x128xf32>
    %31 = vector.broadcast %25 : vector<1x128xf32> to vector<32x128xf32>
    %32 = arith.mulf %30, %31 : vector<32x128xf32>
    %33 = vector.broadcast %28 : vector<1x128xf32> to vector<32x128xf32>
    %34 = arith.addf %32, %33 : vector<32x128xf32>
    %cst_21 = arith.constant 0.000000e+00 : f32
    %35 = vector.broadcast %cst_21 : f32 to vector<32x128xf32>
    %36 = arith.maximumf %34, %35 : vector<32x128xf32>
    %37 = arith.truncf %36 : vector<32x128xf32> to vector<32x128xbf16>
    %c0_22 = arith.constant 0 : index
    %c0_23 = arith.constant 0 : index
    %c0_24 = arith.constant 0 : index
    %38 = vector.load %arg5[%c0_22, %c0_23, %c0_24] : memref<1x32x128xbf16, #tpu.memory_space<vmem>>, vector<1x32x128xbf16>
    %39 = vector.shape_cast %38 : vector<1x32x128xbf16> to vector<32x128xbf16>
    %40 = vector.shape_cast %37 : vector<32x128xbf16> to vector<1x32x128xbf16>
    tpu.vector_store %arg5[%c0_22, %c0_23, %c0_24], %40 {strides = array<i32>} : memref<1x32x128xbf16, #tpu.memory_space<vmem>>, vector<1x32x128xbf16>,
    return
  }
  func.func @transform_0(%arg0: i32) -> (i32, i32, i32) {
    %c0_i32 = arith.constant 0 : i32
    %c0_i32_0 = arith.constant 0 : i32
    %c0_i32_1 = arith.constant 0 : i32
    %c0_i32_2 = arith.constant 0 : i32
    return %c0_i32, %c0_i32_0, %c0_i32_1 : i32, i32, i32
  }
  func.func @transform_1(%arg0: i32) -> (i32, i32, i32) {
    %c0_i32 = arith.constant 0 : i32
    %c0_i32_0 = arith.constant 0 : i32
    %c0_i32_1 = arith.constant 0 : i32
    %c0_i32_2 = arith.constant 0 : i32
    return %c0_i32, %c0_i32_0, %c0_i32_1 : i32, i32, i32
  }
  func.func @transform_2(%arg0: i32) -> (i32, i32) {
    %c0_i32 = arith.constant 0 : i32
    %c0_i32_0 = arith.constant 0 : i32
    %c0_i32_1 = arith.constant 0 : i32
    return %c0_i32, %c0_i32_0 : i32, i32
  }
  func.func @transform_3(%arg0: i32) -> (i32, i32) {
    %c0_i32 = arith.constant 0 : i32
    %c0_i32_0 = arith.constant 0 : i32
    %c0_i32_1 = arith.constant 0 : i32
    return %c0_i32, %c0_i32_0 : i32, i32
  }
  func.func @transform_4(%arg0: i32) -> (i32, i32, i32) {
    %c0_i32 = arith.constant 0 : i32
    %c0_i32_0 = arith.constant 0 : i32
    %c0_i32_1 = arith.constant 0 : i32
    %c0_i32_2 = arith.constant 0 : i32
    return %c0_i32, %c0_i32_0, %c0_i32_1 : i32, i32, i32
  }
}

module attributes {stable_mosaic.version = 11 : i64} {
  func.func @_fused_deconv_bn_relu_kernel(%arg0: i32, %arg1: memref<4x32x512xbf16, #tpu.memory_space<vmem>>, %arg2: memref<4x512x128xbf16, #tpu.memory_space<vmem>>, %arg3: memref<1x128xf32, #tpu.memory_space<vmem>>, %arg4: memref<1x128xf32, #tpu.memory_space<vmem>>, %arg5: memref<4x32x128xbf16, #tpu.memory_space<vmem>>, %arg6: memref<4x32x128xf32, #tpu.memory_space<vmem>>) attributes {dimension_semantics = [#tpu.dimension_semantics<arbitrary>], iteration_bounds = array<i64: 1>, scalar_prefetch = 0 : i64, scratch_operands = 1 : i64, tpu.core_type = #tpu.core_type<tc>, window_params = [{pipeline_mode = #tpu.pipeline_mode<synchronous>, transform_indices = @transform_0, window_bounds = array<i64: 4, 32, 512>}, {pipeline_mode = #tpu.pipeline_mode<synchronous>, transform_indices = @transform_1, window_bounds = array<i64: 4, 512, 128>}, {pipeline_mode = #tpu.pipeline_mode<synchronous>, transform_indices = @transform_2, window_bounds = array<i64: 1, 128>}, {pipeline_mode = #tpu.pipeline_mode<synchronous>, transform_indices = @transform_3, window_bounds = array<i64: 1, 128>}, {pipeline_mode = #tpu.pipeline_mode<synchronous>, transform_indices = @transform_4, window_bounds = array<i64: 4, 32, 128>}]} {
    %c0 = arith.constant 0 : index
    %c0_0 = arith.constant 0 : index
    %c0_1 = arith.constant 0 : index
    %0 = vector.load %arg1[%c0, %c0_0, %c0_1] : memref<4x32x512xbf16, #tpu.memory_space<vmem>>, vector<1x32x512xbf16>
    %1 = vector.shape_cast %0 : vector<1x32x512xbf16> to vector<32x512xbf16>
    %c0_2 = arith.constant 0 : index
    %c0_3 = arith.constant 0 : index
    %c0_4 = arith.constant 0 : index
    %2 = vector.load %arg2[%c0_2, %c0_3, %c0_4] : memref<4x512x128xbf16, #tpu.memory_space<vmem>>, vector<1x512x128xbf16>
    %3 = vector.shape_cast %2 : vector<1x512x128xbf16> to vector<512x128xbf16>
    %cst = arith.constant dense<0.000000e+00> : vector<32x128xf32>
    %4 = tpu.matmul %1, %3, %cst {dimension_numbers = #tpu.dot_dimension_numbers<[1], [0], [0], [1], [0, 0, 1, 1], [], []>} : vector<32x512xbf16>, vector<512x128xbf16>, vector<32x128xf32> -> vector<32x128xf32>
    %c0_5 = arith.constant 0 : index
    %c0_6 = arith.constant 0 : index
    %c0_7 = arith.constant 0 : index
    %5 = vector.load %arg6[%c0_5, %c0_6, %c0_7] : memref<4x32x128xf32, #tpu.memory_space<vmem>>, vector<1x32x128xf32>
    %6 = vector.shape_cast %5 : vector<1x32x128xf32> to vector<32x128xf32>
    %7 = vector.shape_cast %4 : vector<32x128xf32> to vector<1x32x128xf32>
    tpu.vector_store %arg6[%c0_5, %c0_6, %c0_7], %7 {strides = array<i32>} : memref<4x32x128xf32, #tpu.memory_space<vmem>>, vector<1x32x128xf32>,
    %cst_8 = arith.constant dense<0.000000e+00> : vector<128xf32>
    %8 = vector.multi_reduction <add>, %4, %cst_8 [0] : vector<32x128xf32> to vector<128xf32>
    %9 = vector.shape_cast %8 : vector<128xf32> to vector<1x128xf32>
    %10 = arith.mulf %4, %4 : vector<32x128xf32>
    %cst_9 = arith.constant dense<0.000000e+00> : vector<128xf32>
    %11 = vector.multi_reduction <add>, %10, %cst_9 [0] : vector<32x128xf32> to vector<128xf32>
    %12 = vector.shape_cast %11 : vector<128xf32> to vector<1x128xf32>
    %c1 = arith.constant 1 : index
    %c0_10 = arith.constant 0 : index
    %c0_11 = arith.constant 0 : index
    %13 = vector.load %arg1[%c1, %c0_10, %c0_11] : memref<4x32x512xbf16, #tpu.memory_space<vmem>>, vector<1x32x512xbf16>
    %14 = vector.shape_cast %13 : vector<1x32x512xbf16> to vector<32x512xbf16>
    %c1_12 = arith.constant 1 : index
    %c0_13 = arith.constant 0 : index
    %c0_14 = arith.constant 0 : index
    %15 = vector.load %arg2[%c1_12, %c0_13, %c0_14] : memref<4x512x128xbf16, #tpu.memory_space<vmem>>, vector<1x512x128xbf16>
    %16 = vector.shape_cast %15 : vector<1x512x128xbf16> to vector<512x128xbf16>
    %cst_15 = arith.constant dense<0.000000e+00> : vector<32x128xf32>
    %17 = tpu.matmul %14, %16, %cst_15 {dimension_numbers = #tpu.dot_dimension_numbers<[1], [0], [0], [1], [0, 0, 1, 1], [], []>} : vector<32x512xbf16>, vector<512x128xbf16>, vector<32x128xf32> -> vector<32x128xf32>
    %c1_16 = arith.constant 1 : index
    %c0_17 = arith.constant 0 : index
    %c0_18 = arith.constant 0 : index
    %18 = vector.load %arg6[%c1_16, %c0_17, %c0_18] : memref<4x32x128xf32, #tpu.memory_space<vmem>>, vector<1x32x128xf32>
    %19 = vector.shape_cast %18 : vector<1x32x128xf32> to vector<32x128xf32>
    %20 = vector.shape_cast %17 : vector<32x128xf32> to vector<1x32x128xf32>
    tpu.vector_store %arg6[%c1_16, %c0_17, %c0_18], %20 {strides = array<i32>} : memref<4x32x128xf32, #tpu.memory_space<vmem>>, vector<1x32x128xf32>,
    %cst_19 = arith.constant dense<0.000000e+00> : vector<128xf32>
    %21 = vector.multi_reduction <add>, %17, %cst_19 [0] : vector<32x128xf32> to vector<128xf32>
    %22 = vector.shape_cast %21 : vector<128xf32> to vector<1x128xf32>
    %23 = arith.mulf %17, %17 : vector<32x128xf32>
    %cst_20 = arith.constant dense<0.000000e+00> : vector<128xf32>
    %24 = vector.multi_reduction <add>, %23, %cst_20 [0] : vector<32x128xf32> to vector<128xf32>
    %25 = vector.shape_cast %24 : vector<128xf32> to vector<1x128xf32>
    %26 = arith.addf %9, %22 : vector<1x128xf32>
    %27 = arith.addf %12, %25 : vector<1x128xf32>
    %c2 = arith.constant 2 : index
    %c0_21 = arith.constant 0 : index
    %c0_22 = arith.constant 0 : index
    %28 = vector.load %arg1[%c2, %c0_21, %c0_22] : memref<4x32x512xbf16, #tpu.memory_space<vmem>>, vector<1x32x512xbf16>
    %29 = vector.shape_cast %28 : vector<1x32x512xbf16> to vector<32x512xbf16>
    %c2_23 = arith.constant 2 : index
    %c0_24 = arith.constant 0 : index
    %c0_25 = arith.constant 0 : index
    %30 = vector.load %arg2[%c2_23, %c0_24, %c0_25] : memref<4x512x128xbf16, #tpu.memory_space<vmem>>, vector<1x512x128xbf16>
    %31 = vector.shape_cast %30 : vector<1x512x128xbf16> to vector<512x128xbf16>
    %cst_26 = arith.constant dense<0.000000e+00> : vector<32x128xf32>
    %32 = tpu.matmul %29, %31, %cst_26 {dimension_numbers = #tpu.dot_dimension_numbers<[1], [0], [0], [1], [0, 0, 1, 1], [], []>} : vector<32x512xbf16>, vector<512x128xbf16>, vector<32x128xf32> -> vector<32x128xf32>
    %c2_27 = arith.constant 2 : index
    %c0_28 = arith.constant 0 : index
    %c0_29 = arith.constant 0 : index
    %33 = vector.load %arg6[%c2_27, %c0_28, %c0_29] : memref<4x32x128xf32, #tpu.memory_space<vmem>>, vector<1x32x128xf32>
    %34 = vector.shape_cast %33 : vector<1x32x128xf32> to vector<32x128xf32>
    %35 = vector.shape_cast %32 : vector<32x128xf32> to vector<1x32x128xf32>
    tpu.vector_store %arg6[%c2_27, %c0_28, %c0_29], %35 {strides = array<i32>} : memref<4x32x128xf32, #tpu.memory_space<vmem>>, vector<1x32x128xf32>,
    %cst_30 = arith.constant dense<0.000000e+00> : vector<128xf32>
    %36 = vector.multi_reduction <add>, %32, %cst_30 [0] : vector<32x128xf32> to vector<128xf32>
    %37 = vector.shape_cast %36 : vector<128xf32> to vector<1x128xf32>
    %38 = arith.mulf %32, %32 : vector<32x128xf32>
    %cst_31 = arith.constant dense<0.000000e+00> : vector<128xf32>
    %39 = vector.multi_reduction <add>, %38, %cst_31 [0] : vector<32x128xf32> to vector<128xf32>
    %40 = vector.shape_cast %39 : vector<128xf32> to vector<1x128xf32>
    %41 = arith.addf %26, %37 : vector<1x128xf32>
    %42 = arith.addf %27, %40 : vector<1x128xf32>
    %c3 = arith.constant 3 : index
    %c0_32 = arith.constant 0 : index
    %c0_33 = arith.constant 0 : index
    %43 = vector.load %arg1[%c3, %c0_32, %c0_33] : memref<4x32x512xbf16, #tpu.memory_space<vmem>>, vector<1x32x512xbf16>
    %44 = vector.shape_cast %43 : vector<1x32x512xbf16> to vector<32x512xbf16>
    %c3_34 = arith.constant 3 : index
    %c0_35 = arith.constant 0 : index
    %c0_36 = arith.constant 0 : index
    %45 = vector.load %arg2[%c3_34, %c0_35, %c0_36] : memref<4x512x128xbf16, #tpu.memory_space<vmem>>, vector<1x512x128xbf16>
    %46 = vector.shape_cast %45 : vector<1x512x128xbf16> to vector<512x128xbf16>
    %cst_37 = arith.constant dense<0.000000e+00> : vector<32x128xf32>
    %47 = tpu.matmul %44, %46, %cst_37 {dimension_numbers = #tpu.dot_dimension_numbers<[1], [0], [0], [1], [0, 0, 1, 1], [], []>} : vector<32x512xbf16>, vector<512x128xbf16>, vector<32x128xf32> -> vector<32x128xf32>
    %c3_38 = arith.constant 3 : index
    %c0_39 = arith.constant 0 : index
    %c0_40 = arith.constant 0 : index
    %48 = vector.load %arg6[%c3_38, %c0_39, %c0_40] : memref<4x32x128xf32, #tpu.memory_space<vmem>>, vector<1x32x128xf32>
    %49 = vector.shape_cast %48 : vector<1x32x128xf32> to vector<32x128xf32>
    %50 = vector.shape_cast %47 : vector<32x128xf32> to vector<1x32x128xf32>
    tpu.vector_store %arg6[%c3_38, %c0_39, %c0_40], %50 {strides = array<i32>} : memref<4x32x128xf32, #tpu.memory_space<vmem>>, vector<1x32x128xf32>,
    %cst_41 = arith.constant dense<0.000000e+00> : vector<128xf32>
    %51 = vector.multi_reduction <add>, %47, %cst_41 [0] : vector<32x128xf32> to vector<128xf32>
    %52 = vector.shape_cast %51 : vector<128xf32> to vector<1x128xf32>
    %53 = arith.mulf %47, %47 : vector<32x128xf32>
    %cst_42 = arith.constant dense<0.000000e+00> : vector<128xf32>
    %54 = vector.multi_reduction <add>, %53, %cst_42 [0] : vector<32x128xf32> to vector<128xf32>
    %55 = vector.shape_cast %54 : vector<128xf32> to vector<1x128xf32>
    %56 = arith.addf %41, %52 : vector<1x128xf32>
    %57 = arith.addf %42, %55 : vector<1x128xf32>
    %cst_43 = arith.constant 7.812500e-03 : f32
    %58 = vector.broadcast %cst_43 : f32 to vector<1x128xf32>
    %59 = arith.mulf %56, %58 : vector<1x128xf32>
    %cst_44 = arith.constant 7.812500e-03 : f32
    %60 = vector.broadcast %cst_44 : f32 to vector<1x128xf32>
    %61 = arith.mulf %57, %60 : vector<1x128xf32>
    %62 = arith.mulf %59, %59 : vector<1x128xf32>
    %63 = arith.subf %61, %62 : vector<1x128xf32>
    %cst_45 = arith.constant 0.000000e+00 : f32
    %64 = vector.broadcast %cst_45 : f32 to vector<1x128xf32>
    %65 = arith.maximumf %63, %64 : vector<1x128xf32>
    %cst_46 = arith.constant 9.99999974E-6 : f32
    %66 = vector.broadcast %cst_46 : f32 to vector<1x128xf32>
    %67 = arith.addf %65, %66 : vector<1x128xf32>
    %68 = math.rsqrt %67 : vector<1x128xf32>
    %c0_47 = arith.constant 0 : index
    %c0_48 = arith.constant 0 : index
    %69 = vector.load %arg3[%c0_47, %c0_48] : memref<1x128xf32, #tpu.memory_space<vmem>>, vector<1x128xf32>
    %70 = arith.mulf %68, %69 : vector<1x128xf32>
    %c0_49 = arith.constant 0 : index
    %c0_50 = arith.constant 0 : index
    %71 = vector.load %arg4[%c0_49, %c0_50] : memref<1x128xf32, #tpu.memory_space<vmem>>, vector<1x128xf32>
    %72 = arith.mulf %59, %70 : vector<1x128xf32>
    %73 = arith.subf %71, %72 : vector<1x128xf32>
    %c0_51 = arith.constant 0 : index
    %c0_52 = arith.constant 0 : index
    %c0_53 = arith.constant 0 : index
    %74 = vector.load %arg6[%c0_51, %c0_52, %c0_53] : memref<4x32x128xf32, #tpu.memory_space<vmem>>, vector<1x32x128xf32>
    %75 = vector.shape_cast %74 : vector<1x32x128xf32> to vector<32x128xf32>
    %76 = vector.broadcast %70 : vector<1x128xf32> to vector<32x128xf32>
    %77 = arith.mulf %75, %76 : vector<32x128xf32>
    %78 = vector.broadcast %73 : vector<1x128xf32> to vector<32x128xf32>
    %79 = arith.addf %77, %78 : vector<32x128xf32>
    %cst_54 = arith.constant 0.000000e+00 : f32
    %80 = vector.broadcast %cst_54 : f32 to vector<32x128xf32>
    %81 = arith.maximumf %79, %80 : vector<32x128xf32>
    %82 = arith.truncf %81 : vector<32x128xf32> to vector<32x128xbf16>
    %c0_55 = arith.constant 0 : index
    %c0_56 = arith.constant 0 : index
    %c0_57 = arith.constant 0 : index
    %83 = vector.load %arg5[%c0_55, %c0_56, %c0_57] : memref<4x32x128xbf16, #tpu.memory_space<vmem>>, vector<1x32x128xbf16>
    %84 = vector.shape_cast %83 : vector<1x32x128xbf16> to vector<32x128xbf16>
    %85 = vector.shape_cast %82 : vector<32x128xbf16> to vector<1x32x128xbf16>
    tpu.vector_store %arg5[%c0_55, %c0_56, %c0_57], %85 {strides = array<i32>} : memref<4x32x128xbf16, #tpu.memory_space<vmem>>, vector<1x32x128xbf16>,
    %c1_58 = arith.constant 1 : index
    %c0_59 = arith.constant 0 : index
    %c0_60 = arith.constant 0 : index
    %86 = vector.load %arg6[%c1_58, %c0_59, %c0_60] : memref<4x32x128xf32, #tpu.memory_space<vmem>>, vector<1x32x128xf32>
    %87 = vector.shape_cast %86 : vector<1x32x128xf32> to vector<32x128xf32>
    %88 = vector.broadcast %70 : vector<1x128xf32> to vector<32x128xf32>
    %89 = arith.mulf %87, %88 : vector<32x128xf32>
    %90 = vector.broadcast %73 : vector<1x128xf32> to vector<32x128xf32>
    %91 = arith.addf %89, %90 : vector<32x128xf32>
    %cst_61 = arith.constant 0.000000e+00 : f32
    %92 = vector.broadcast %cst_61 : f32 to vector<32x128xf32>
    %93 = arith.maximumf %91, %92 : vector<32x128xf32>
    %94 = arith.truncf %93 : vector<32x128xf32> to vector<32x128xbf16>
    %c1_62 = arith.constant 1 : index
    %c0_63 = arith.constant 0 : index
    %c0_64 = arith.constant 0 : index
    %95 = vector.load %arg5[%c1_62, %c0_63, %c0_64] : memref<4x32x128xbf16, #tpu.memory_space<vmem>>, vector<1x32x128xbf16>
    %96 = vector.shape_cast %95 : vector<1x32x128xbf16> to vector<32x128xbf16>
    %97 = vector.shape_cast %94 : vector<32x128xbf16> to vector<1x32x128xbf16>
    tpu.vector_store %arg5[%c1_62, %c0_63, %c0_64], %97 {strides = array<i32>} : memref<4x32x128xbf16, #tpu.memory_space<vmem>>, vector<1x32x128xbf16>,
    %c2_65 = arith.constant 2 : index
    %c0_66 = arith.constant 0 : index
    %c0_67 = arith.constant 0 : index
    %98 = vector.load %arg6[%c2_65, %c0_66, %c0_67] : memref<4x32x128xf32, #tpu.memory_space<vmem>>, vector<1x32x128xf32>
    %99 = vector.shape_cast %98 : vector<1x32x128xf32> to vector<32x128xf32>
    %100 = vector.broadcast %70 : vector<1x128xf32> to vector<32x128xf32>
    %101 = arith.mulf %99, %100 : vector<32x128xf32>
    %102 = vector.broadcast %73 : vector<1x128xf32> to vector<32x128xf32>
    %103 = arith.addf %101, %102 : vector<32x128xf32>
    %cst_68 = arith.constant 0.000000e+00 : f32
    %104 = vector.broadcast %cst_68 : f32 to vector<32x128xf32>
    %105 = arith.maximumf %103, %104 : vector<32x128xf32>
    %106 = arith.truncf %105 : vector<32x128xf32> to vector<32x128xbf16>
    %c2_69 = arith.constant 2 : index
    %c0_70 = arith.constant 0 : index
    %c0_71 = arith.constant 0 : index
    %107 = vector.load %arg5[%c2_69, %c0_70, %c0_71] : memref<4x32x128xbf16, #tpu.memory_space<vmem>>, vector<1x32x128xbf16>
    %108 = vector.shape_cast %107 : vector<1x32x128xbf16> to vector<32x128xbf16>
    %109 = vector.shape_cast %106 : vector<32x128xbf16> to vector<1x32x128xbf16>
    tpu.vector_store %arg5[%c2_69, %c0_70, %c0_71], %109 {strides = array<i32>} : memref<4x32x128xbf16, #tpu.memory_space<vmem>>, vector<1x32x128xbf16>,
    %c3_72 = arith.constant 3 : index
    %c0_73 = arith.constant 0 : index
    %c0_74 = arith.constant 0 : index
    %110 = vector.load %arg6[%c3_72, %c0_73, %c0_74] : memref<4x32x128xf32, #tpu.memory_space<vmem>>, vector<1x32x128xf32>
    %111 = vector.shape_cast %110 : vector<1x32x128xf32> to vector<32x128xf32>
    %112 = vector.broadcast %70 : vector<1x128xf32> to vector<32x128xf32>
    %113 = arith.mulf %111, %112 : vector<32x128xf32>
    %114 = vector.broadcast %73 : vector<1x128xf32> to vector<32x128xf32>
    %115 = arith.addf %113, %114 : vector<32x128xf32>
    %cst_75 = arith.constant 0.000000e+00 : f32
    %116 = vector.broadcast %cst_75 : f32 to vector<32x128xf32>
    %117 = arith.maximumf %115, %116 : vector<32x128xf32>
    %118 = arith.truncf %117 : vector<32x128xf32> to vector<32x128xbf16>
    %c3_76 = arith.constant 3 : index
    %c0_77 = arith.constant 0 : index
    %c0_78 = arith.constant 0 : index
    %119 = vector.load %arg5[%c3_76, %c0_77, %c0_78] : memref<4x32x128xbf16, #tpu.memory_space<vmem>>, vector<1x32x128xbf16>
    %120 = vector.shape_cast %119 : vector<1x32x128xbf16> to vector<32x128xbf16>
    %121 = vector.shape_cast %118 : vector<32x128xbf16> to vector<1x32x128xbf16>
    tpu.vector_store %arg5[%c3_76, %c0_77, %c0_78], %121 {strides = array<i32>} : memref<4x32x128xbf16, #tpu.memory_space<vmem>>, vector<1x32x128xbf16>,
    return
  }
  func.func @transform_0(%arg0: i32) -> (i32, i32, i32) {
    %c0_i32 = arith.constant 0 : i32
    %c0_i32_0 = arith.constant 0 : i32
    %c0_i32_1 = arith.constant 0 : i32
    %c0_i32_2 = arith.constant 0 : i32
    return %c0_i32, %c0_i32_0, %c0_i32_1 : i32, i32, i32
  }
  func.func @transform_1(%arg0: i32) -> (i32, i32, i32) {
    %c0_i32 = arith.constant 0 : i32
    %c0_i32_0 = arith.constant 0 : i32
    %c0_i32_1 = arith.constant 0 : i32
    %c0_i32_2 = arith.constant 0 : i32
    return %c0_i32, %c0_i32_0, %c0_i32_1 : i32, i32, i32
  }
  func.func @transform_2(%arg0: i32) -> (i32, i32) {
    %c0_i32 = arith.constant 0 : i32
    %c0_i32_0 = arith.constant 0 : i32
    %c0_i32_1 = arith.constant 0 : i32
    return %c0_i32, %c0_i32_0 : i32, i32
  }
  func.func @transform_3(%arg0: i32) -> (i32, i32) {
    %c0_i32 = arith.constant 0 : i32
    %c0_i32_0 = arith.constant 0 : i32
    %c0_i32_1 = arith.constant 0 : i32
    return %c0_i32, %c0_i32_0 : i32, i32
  }
  func.func @transform_4(%arg0: i32) -> (i32, i32, i32) {
    %c0_i32 = arith.constant 0 : i32
    %c0_i32_0 = arith.constant 0 : i32
    %c0_i32_1 = arith.constant 0 : i32
    %c0_i32_2 = arith.constant 0 : i32
    return %c0_i32, %c0_i32_0, %c0_i32_1 : i32, i32, i32
  }
}

module attributes {stable_mosaic.version = 11 : i64} {
  func.func @_fused_deconv_bn_relu_kernel(%arg0: i32, %arg1: memref<4x128x256xbf16, #tpu.memory_space<vmem>>, %arg2: memref<4x256x128xbf16, #tpu.memory_space<vmem>>, %arg3: memref<1x128xf32, #tpu.memory_space<vmem>>, %arg4: memref<1x128xf32, #tpu.memory_space<vmem>>, %arg5: memref<4x128x128xbf16, #tpu.memory_space<vmem>>, %arg6: memref<4x128x128xf32, #tpu.memory_space<vmem>>) attributes {dimension_semantics = [#tpu.dimension_semantics<arbitrary>], iteration_bounds = array<i64: 1>, scalar_prefetch = 0 : i64, scratch_operands = 1 : i64, tpu.core_type = #tpu.core_type<tc>, window_params = [{pipeline_mode = #tpu.pipeline_mode<synchronous>, transform_indices = @transform_0, window_bounds = array<i64: 4, 128, 256>}, {pipeline_mode = #tpu.pipeline_mode<synchronous>, transform_indices = @transform_1, window_bounds = array<i64: 4, 256, 128>}, {pipeline_mode = #tpu.pipeline_mode<synchronous>, transform_indices = @transform_2, window_bounds = array<i64: 1, 128>}, {pipeline_mode = #tpu.pipeline_mode<synchronous>, transform_indices = @transform_3, window_bounds = array<i64: 1, 128>}, {pipeline_mode = #tpu.pipeline_mode<synchronous>, transform_indices = @transform_4, window_bounds = array<i64: 4, 128, 128>}]} {
    %c0 = arith.constant 0 : index
    %c0_0 = arith.constant 0 : index
    %c0_1 = arith.constant 0 : index
    %0 = vector.load %arg1[%c0, %c0_0, %c0_1] : memref<4x128x256xbf16, #tpu.memory_space<vmem>>, vector<1x128x256xbf16>
    %1 = vector.shape_cast %0 : vector<1x128x256xbf16> to vector<128x256xbf16>
    %c0_2 = arith.constant 0 : index
    %c0_3 = arith.constant 0 : index
    %c0_4 = arith.constant 0 : index
    %2 = vector.load %arg2[%c0_2, %c0_3, %c0_4] : memref<4x256x128xbf16, #tpu.memory_space<vmem>>, vector<1x256x128xbf16>
    %3 = vector.shape_cast %2 : vector<1x256x128xbf16> to vector<256x128xbf16>
    %cst = arith.constant dense<0.000000e+00> : vector<128x128xf32>
    %4 = tpu.matmul %1, %3, %cst {dimension_numbers = #tpu.dot_dimension_numbers<[1], [0], [0], [1], [0, 0, 1, 1], [], []>} : vector<128x256xbf16>, vector<256x128xbf16>, vector<128x128xf32> -> vector<128x128xf32>
    %c0_5 = arith.constant 0 : index
    %c0_6 = arith.constant 0 : index
    %c0_7 = arith.constant 0 : index
    %5 = vector.load %arg6[%c0_5, %c0_6, %c0_7] : memref<4x128x128xf32, #tpu.memory_space<vmem>>, vector<1x128x128xf32>
    %6 = vector.shape_cast %5 : vector<1x128x128xf32> to vector<128x128xf32>
    %7 = vector.shape_cast %4 : vector<128x128xf32> to vector<1x128x128xf32>
    tpu.vector_store %arg6[%c0_5, %c0_6, %c0_7], %7 {strides = array<i32>} : memref<4x128x128xf32, #tpu.memory_space<vmem>>, vector<1x128x128xf32>,
    %cst_8 = arith.constant dense<0.000000e+00> : vector<128xf32>
    %8 = vector.multi_reduction <add>, %4, %cst_8 [0] : vector<128x128xf32> to vector<128xf32>
    %9 = vector.shape_cast %8 : vector<128xf32> to vector<1x128xf32>
    %10 = arith.mulf %4, %4 : vector<128x128xf32>
    %cst_9 = arith.constant dense<0.000000e+00> : vector<128xf32>
    %11 = vector.multi_reduction <add>, %10, %cst_9 [0] : vector<128x128xf32> to vector<128xf32>
    %12 = vector.shape_cast %11 : vector<128xf32> to vector<1x128xf32>
    %c1 = arith.constant 1 : index
    %c0_10 = arith.constant 0 : index
    %c0_11 = arith.constant 0 : index
    %13 = vector.load %arg1[%c1, %c0_10, %c0_11] : memref<4x128x256xbf16, #tpu.memory_space<vmem>>, vector<1x128x256xbf16>
    %14 = vector.shape_cast %13 : vector<1x128x256xbf16> to vector<128x256xbf16>
    %c1_12 = arith.constant 1 : index
    %c0_13 = arith.constant 0 : index
    %c0_14 = arith.constant 0 : index
    %15 = vector.load %arg2[%c1_12, %c0_13, %c0_14] : memref<4x256x128xbf16, #tpu.memory_space<vmem>>, vector<1x256x128xbf16>
    %16 = vector.shape_cast %15 : vector<1x256x128xbf16> to vector<256x128xbf16>
    %cst_15 = arith.constant dense<0.000000e+00> : vector<128x128xf32>
    %17 = tpu.matmul %14, %16, %cst_15 {dimension_numbers = #tpu.dot_dimension_numbers<[1], [0], [0], [1], [0, 0, 1, 1], [], []>} : vector<128x256xbf16>, vector<256x128xbf16>, vector<128x128xf32> -> vector<128x128xf32>
    %c1_16 = arith.constant 1 : index
    %c0_17 = arith.constant 0 : index
    %c0_18 = arith.constant 0 : index
    %18 = vector.load %arg6[%c1_16, %c0_17, %c0_18] : memref<4x128x128xf32, #tpu.memory_space<vmem>>, vector<1x128x128xf32>
    %19 = vector.shape_cast %18 : vector<1x128x128xf32> to vector<128x128xf32>
    %20 = vector.shape_cast %17 : vector<128x128xf32> to vector<1x128x128xf32>
    tpu.vector_store %arg6[%c1_16, %c0_17, %c0_18], %20 {strides = array<i32>} : memref<4x128x128xf32, #tpu.memory_space<vmem>>, vector<1x128x128xf32>,
    %cst_19 = arith.constant dense<0.000000e+00> : vector<128xf32>
    %21 = vector.multi_reduction <add>, %17, %cst_19 [0] : vector<128x128xf32> to vector<128xf32>
    %22 = vector.shape_cast %21 : vector<128xf32> to vector<1x128xf32>
    %23 = arith.mulf %17, %17 : vector<128x128xf32>
    %cst_20 = arith.constant dense<0.000000e+00> : vector<128xf32>
    %24 = vector.multi_reduction <add>, %23, %cst_20 [0] : vector<128x128xf32> to vector<128xf32>
    %25 = vector.shape_cast %24 : vector<128xf32> to vector<1x128xf32>
    %26 = arith.addf %9, %22 : vector<1x128xf32>
    %27 = arith.addf %12, %25 : vector<1x128xf32>
    %c2 = arith.constant 2 : index
    %c0_21 = arith.constant 0 : index
    %c0_22 = arith.constant 0 : index
    %28 = vector.load %arg1[%c2, %c0_21, %c0_22] : memref<4x128x256xbf16, #tpu.memory_space<vmem>>, vector<1x128x256xbf16>
    %29 = vector.shape_cast %28 : vector<1x128x256xbf16> to vector<128x256xbf16>
    %c2_23 = arith.constant 2 : index
    %c0_24 = arith.constant 0 : index
    %c0_25 = arith.constant 0 : index
    %30 = vector.load %arg2[%c2_23, %c0_24, %c0_25] : memref<4x256x128xbf16, #tpu.memory_space<vmem>>, vector<1x256x128xbf16>
    %31 = vector.shape_cast %30 : vector<1x256x128xbf16> to vector<256x128xbf16>
    %cst_26 = arith.constant dense<0.000000e+00> : vector<128x128xf32>
    %32 = tpu.matmul %29, %31, %cst_26 {dimension_numbers = #tpu.dot_dimension_numbers<[1], [0], [0], [1], [0, 0, 1, 1], [], []>} : vector<128x256xbf16>, vector<256x128xbf16>, vector<128x128xf32> -> vector<128x128xf32>
    %c2_27 = arith.constant 2 : index
    %c0_28 = arith.constant 0 : index
    %c0_29 = arith.constant 0 : index
    %33 = vector.load %arg6[%c2_27, %c0_28, %c0_29] : memref<4x128x128xf32, #tpu.memory_space<vmem>>, vector<1x128x128xf32>
    %34 = vector.shape_cast %33 : vector<1x128x128xf32> to vector<128x128xf32>
    %35 = vector.shape_cast %32 : vector<128x128xf32> to vector<1x128x128xf32>
    tpu.vector_store %arg6[%c2_27, %c0_28, %c0_29], %35 {strides = array<i32>} : memref<4x128x128xf32, #tpu.memory_space<vmem>>, vector<1x128x128xf32>,
    %cst_30 = arith.constant dense<0.000000e+00> : vector<128xf32>
    %36 = vector.multi_reduction <add>, %32, %cst_30 [0] : vector<128x128xf32> to vector<128xf32>
    %37 = vector.shape_cast %36 : vector<128xf32> to vector<1x128xf32>
    %38 = arith.mulf %32, %32 : vector<128x128xf32>
    %cst_31 = arith.constant dense<0.000000e+00> : vector<128xf32>
    %39 = vector.multi_reduction <add>, %38, %cst_31 [0] : vector<128x128xf32> to vector<128xf32>
    %40 = vector.shape_cast %39 : vector<128xf32> to vector<1x128xf32>
    %41 = arith.addf %26, %37 : vector<1x128xf32>
    %42 = arith.addf %27, %40 : vector<1x128xf32>
    %c3 = arith.constant 3 : index
    %c0_32 = arith.constant 0 : index
    %c0_33 = arith.constant 0 : index
    %43 = vector.load %arg1[%c3, %c0_32, %c0_33] : memref<4x128x256xbf16, #tpu.memory_space<vmem>>, vector<1x128x256xbf16>
    %44 = vector.shape_cast %43 : vector<1x128x256xbf16> to vector<128x256xbf16>
    %c3_34 = arith.constant 3 : index
    %c0_35 = arith.constant 0 : index
    %c0_36 = arith.constant 0 : index
    %45 = vector.load %arg2[%c3_34, %c0_35, %c0_36] : memref<4x256x128xbf16, #tpu.memory_space<vmem>>, vector<1x256x128xbf16>
    %46 = vector.shape_cast %45 : vector<1x256x128xbf16> to vector<256x128xbf16>
    %cst_37 = arith.constant dense<0.000000e+00> : vector<128x128xf32>
    %47 = tpu.matmul %44, %46, %cst_37 {dimension_numbers = #tpu.dot_dimension_numbers<[1], [0], [0], [1], [0, 0, 1, 1], [], []>} : vector<128x256xbf16>, vector<256x128xbf16>, vector<128x128xf32> -> vector<128x128xf32>
    %c3_38 = arith.constant 3 : index
    %c0_39 = arith.constant 0 : index
    %c0_40 = arith.constant 0 : index
    %48 = vector.load %arg6[%c3_38, %c0_39, %c0_40] : memref<4x128x128xf32, #tpu.memory_space<vmem>>, vector<1x128x128xf32>
    %49 = vector.shape_cast %48 : vector<1x128x128xf32> to vector<128x128xf32>
    %50 = vector.shape_cast %47 : vector<128x128xf32> to vector<1x128x128xf32>
    tpu.vector_store %arg6[%c3_38, %c0_39, %c0_40], %50 {strides = array<i32>} : memref<4x128x128xf32, #tpu.memory_space<vmem>>, vector<1x128x128xf32>,
    %cst_41 = arith.constant dense<0.000000e+00> : vector<128xf32>
    %51 = vector.multi_reduction <add>, %47, %cst_41 [0] : vector<128x128xf32> to vector<128xf32>
    %52 = vector.shape_cast %51 : vector<128xf32> to vector<1x128xf32>
    %53 = arith.mulf %47, %47 : vector<128x128xf32>
    %cst_42 = arith.constant dense<0.000000e+00> : vector<128xf32>
    %54 = vector.multi_reduction <add>, %53, %cst_42 [0] : vector<128x128xf32> to vector<128xf32>
    %55 = vector.shape_cast %54 : vector<128xf32> to vector<1x128xf32>
    %56 = arith.addf %41, %52 : vector<1x128xf32>
    %57 = arith.addf %42, %55 : vector<1x128xf32>
    %cst_43 = arith.constant 0.001953125 : f32
    %58 = vector.broadcast %cst_43 : f32 to vector<1x128xf32>
    %59 = arith.mulf %56, %58 : vector<1x128xf32>
    %cst_44 = arith.constant 0.001953125 : f32
    %60 = vector.broadcast %cst_44 : f32 to vector<1x128xf32>
    %61 = arith.mulf %57, %60 : vector<1x128xf32>
    %62 = arith.mulf %59, %59 : vector<1x128xf32>
    %63 = arith.subf %61, %62 : vector<1x128xf32>
    %cst_45 = arith.constant 0.000000e+00 : f32
    %64 = vector.broadcast %cst_45 : f32 to vector<1x128xf32>
    %65 = arith.maximumf %63, %64 : vector<1x128xf32>
    %cst_46 = arith.constant 9.99999974E-6 : f32
    %66 = vector.broadcast %cst_46 : f32 to vector<1x128xf32>
    %67 = arith.addf %65, %66 : vector<1x128xf32>
    %68 = math.rsqrt %67 : vector<1x128xf32>
    %c0_47 = arith.constant 0 : index
    %c0_48 = arith.constant 0 : index
    %69 = vector.load %arg3[%c0_47, %c0_48] : memref<1x128xf32, #tpu.memory_space<vmem>>, vector<1x128xf32>
    %70 = arith.mulf %68, %69 : vector<1x128xf32>
    %c0_49 = arith.constant 0 : index
    %c0_50 = arith.constant 0 : index
    %71 = vector.load %arg4[%c0_49, %c0_50] : memref<1x128xf32, #tpu.memory_space<vmem>>, vector<1x128xf32>
    %72 = arith.mulf %59, %70 : vector<1x128xf32>
    %73 = arith.subf %71, %72 : vector<1x128xf32>
    %c0_51 = arith.constant 0 : index
    %c0_52 = arith.constant 0 : index
    %c0_53 = arith.constant 0 : index
    %74 = vector.load %arg6[%c0_51, %c0_52, %c0_53] : memref<4x128x128xf32, #tpu.memory_space<vmem>>, vector<1x128x128xf32>
    %75 = vector.shape_cast %74 : vector<1x128x128xf32> to vector<128x128xf32>
    %76 = vector.broadcast %70 : vector<1x128xf32> to vector<128x128xf32>
    %77 = arith.mulf %75, %76 : vector<128x128xf32>
    %78 = vector.broadcast %73 : vector<1x128xf32> to vector<128x128xf32>
    %79 = arith.addf %77, %78 : vector<128x128xf32>
    %cst_54 = arith.constant 0.000000e+00 : f32
    %80 = vector.broadcast %cst_54 : f32 to vector<128x128xf32>
    %81 = arith.maximumf %79, %80 : vector<128x128xf32>
    %82 = arith.truncf %81 : vector<128x128xf32> to vector<128x128xbf16>
    %c0_55 = arith.constant 0 : index
    %c0_56 = arith.constant 0 : index
    %c0_57 = arith.constant 0 : index
    %83 = vector.load %arg5[%c0_55, %c0_56, %c0_57] : memref<4x128x128xbf16, #tpu.memory_space<vmem>>, vector<1x128x128xbf16>
    %84 = vector.shape_cast %83 : vector<1x128x128xbf16> to vector<128x128xbf16>
    %85 = vector.shape_cast %82 : vector<128x128xbf16> to vector<1x128x128xbf16>
    tpu.vector_store %arg5[%c0_55, %c0_56, %c0_57], %85 {strides = array<i32>} : memref<4x128x128xbf16, #tpu.memory_space<vmem>>, vector<1x128x128xbf16>,
    %c1_58 = arith.constant 1 : index
    %c0_59 = arith.constant 0 : index
    %c0_60 = arith.constant 0 : index
    %86 = vector.load %arg6[%c1_58, %c0_59, %c0_60] : memref<4x128x128xf32, #tpu.memory_space<vmem>>, vector<1x128x128xf32>
    %87 = vector.shape_cast %86 : vector<1x128x128xf32> to vector<128x128xf32>
    %88 = vector.broadcast %70 : vector<1x128xf32> to vector<128x128xf32>
    %89 = arith.mulf %87, %88 : vector<128x128xf32>
    %90 = vector.broadcast %73 : vector<1x128xf32> to vector<128x128xf32>
    %91 = arith.addf %89, %90 : vector<128x128xf32>
    %cst_61 = arith.constant 0.000000e+00 : f32
    %92 = vector.broadcast %cst_61 : f32 to vector<128x128xf32>
    %93 = arith.maximumf %91, %92 : vector<128x128xf32>
    %94 = arith.truncf %93 : vector<128x128xf32> to vector<128x128xbf16>
    %c1_62 = arith.constant 1 : index
    %c0_63 = arith.constant 0 : index
    %c0_64 = arith.constant 0 : index
    %95 = vector.load %arg5[%c1_62, %c0_63, %c0_64] : memref<4x128x128xbf16, #tpu.memory_space<vmem>>, vector<1x128x128xbf16>
    %96 = vector.shape_cast %95 : vector<1x128x128xbf16> to vector<128x128xbf16>
    %97 = vector.shape_cast %94 : vector<128x128xbf16> to vector<1x128x128xbf16>
    tpu.vector_store %arg5[%c1_62, %c0_63, %c0_64], %97 {strides = array<i32>} : memref<4x128x128xbf16, #tpu.memory_space<vmem>>, vector<1x128x128xbf16>,
    %c2_65 = arith.constant 2 : index
    %c0_66 = arith.constant 0 : index
    %c0_67 = arith.constant 0 : index
    %98 = vector.load %arg6[%c2_65, %c0_66, %c0_67] : memref<4x128x128xf32, #tpu.memory_space<vmem>>, vector<1x128x128xf32>
    %99 = vector.shape_cast %98 : vector<1x128x128xf32> to vector<128x128xf32>
    %100 = vector.broadcast %70 : vector<1x128xf32> to vector<128x128xf32>
    %101 = arith.mulf %99, %100 : vector<128x128xf32>
    %102 = vector.broadcast %73 : vector<1x128xf32> to vector<128x128xf32>
    %103 = arith.addf %101, %102 : vector<128x128xf32>
    %cst_68 = arith.constant 0.000000e+00 : f32
    %104 = vector.broadcast %cst_68 : f32 to vector<128x128xf32>
    %105 = arith.maximumf %103, %104 : vector<128x128xf32>
    %106 = arith.truncf %105 : vector<128x128xf32> to vector<128x128xbf16>
    %c2_69 = arith.constant 2 : index
    %c0_70 = arith.constant 0 : index
    %c0_71 = arith.constant 0 : index
    %107 = vector.load %arg5[%c2_69, %c0_70, %c0_71] : memref<4x128x128xbf16, #tpu.memory_space<vmem>>, vector<1x128x128xbf16>
    %108 = vector.shape_cast %107 : vector<1x128x128xbf16> to vector<128x128xbf16>
    %109 = vector.shape_cast %106 : vector<128x128xbf16> to vector<1x128x128xbf16>
    tpu.vector_store %arg5[%c2_69, %c0_70, %c0_71], %109 {strides = array<i32>} : memref<4x128x128xbf16, #tpu.memory_space<vmem>>, vector<1x128x128xbf16>,
    %c3_72 = arith.constant 3 : index
    %c0_73 = arith.constant 0 : index
    %c0_74 = arith.constant 0 : index
    %110 = vector.load %arg6[%c3_72, %c0_73, %c0_74] : memref<4x128x128xf32, #tpu.memory_space<vmem>>, vector<1x128x128xf32>
    %111 = vector.shape_cast %110 : vector<1x128x128xf32> to vector<128x128xf32>
    %112 = vector.broadcast %70 : vector<1x128xf32> to vector<128x128xf32>
    %113 = arith.mulf %111, %112 : vector<128x128xf32>
    %114 = vector.broadcast %73 : vector<1x128xf32> to vector<128x128xf32>
    %115 = arith.addf %113, %114 : vector<128x128xf32>
    %cst_75 = arith.constant 0.000000e+00 : f32
    %116 = vector.broadcast %cst_75 : f32 to vector<128x128xf32>
    %117 = arith.maximumf %115, %116 : vector<128x128xf32>
    %118 = arith.truncf %117 : vector<128x128xf32> to vector<128x128xbf16>
    %c3_76 = arith.constant 3 : index
    %c0_77 = arith.constant 0 : index
    %c0_78 = arith.constant 0 : index
    %119 = vector.load %arg5[%c3_76, %c0_77, %c0_78] : memref<4x128x128xbf16, #tpu.memory_space<vmem>>, vector<1x128x128xbf16>
    %120 = vector.shape_cast %119 : vector<1x128x128xbf16> to vector<128x128xbf16>
    %121 = vector.shape_cast %118 : vector<128x128xbf16> to vector<1x128x128xbf16>
    tpu.vector_store %arg5[%c3_76, %c0_77, %c0_78], %121 {strides = array<i32>} : memref<4x128x128xbf16, #tpu.memory_space<vmem>>, vector<1x128x128xbf16>,
    return
  }
  func.func @transform_0(%arg0: i32) -> (i32, i32, i32) {
    %c0_i32 = arith.constant 0 : i32
    %c0_i32_0 = arith.constant 0 : i32
    %c0_i32_1 = arith.constant 0 : i32
    %c0_i32_2 = arith.constant 0 : i32
    return %c0_i32, %c0_i32_0, %c0_i32_1 : i32, i32, i32
  }
  func.func @transform_1(%arg0: i32) -> (i32, i32, i32) {
    %c0_i32 = arith.constant 0 : i32
    %c0_i32_0 = arith.constant 0 : i32
    %c0_i32_1 = arith.constant 0 : i32
    %c0_i32_2 = arith.constant 0 : i32
    return %c0_i32, %c0_i32_0, %c0_i32_1 : i32, i32, i32
  }
  func.func @transform_2(%arg0: i32) -> (i32, i32) {
    %c0_i32 = arith.constant 0 : i32
    %c0_i32_0 = arith.constant 0 : i32
    %c0_i32_1 = arith.constant 0 : i32
    return %c0_i32, %c0_i32_0 : i32, i32
  }
  func.func @transform_3(%arg0: i32) -> (i32, i32) {
    %c0_i32 = arith.constant 0 : i32
    %c0_i32_0 = arith.constant 0 : i32
    %c0_i32_1 = arith.constant 0 : i32
    return %c0_i32, %c0_i32_0 : i32, i32
  }
  func.func @transform_4(%arg0: i32) -> (i32, i32, i32) {
    %c0_i32 = arith.constant 0 : i32
    %c0_i32_0 = arith.constant 0 : i32
    %c0_i32_1 = arith.constant 0 : i32
    %c0_i32_2 = arith.constant 0 : i32
    return %c0_i32, %c0_i32_0, %c0_i32_1 : i32, i32, i32
  }
}

module attributes {stable_mosaic.version = 11 : i64} {
  func.func @_deconv_out_kernel(%arg0: i32, %arg1: memref<1x512x128xbf16, #tpu.memory_space<vmem>>, %arg2: memref<1x128x128xbf16, #tpu.memory_space<vmem>>, %arg3: memref<1x512x128xf32, #tpu.memory_space<vmem>>) attributes {dimension_semantics = [#tpu.dimension_semantics<parallel>], iteration_bounds = array<i64: 4>, scalar_prefetch = 0 : i64, scratch_operands = 0 : i64, tpu.core_type = #tpu.core_type<tc>, window_params = [{transform_indices = @transform_0, window_bounds = array<i64: 1, 512, 128>}, {transform_indices = @transform_1, window_bounds = array<i64: 1, 128, 128>}, {transform_indices = @transform_2, window_bounds = array<i64: 1, 512, 128>}]} {
    %c0 = arith.constant 0 : index
    %c0_0 = arith.constant 0 : index
    %c0_1 = arith.constant 0 : index
    %0 = vector.load %arg1[%c0, %c0_0, %c0_1] : memref<1x512x128xbf16, #tpu.memory_space<vmem>>, vector<1x512x128xbf16>
    %1 = vector.shape_cast %0 : vector<1x512x128xbf16> to vector<512x128xbf16>
    %c0_2 = arith.constant 0 : index
    %c0_3 = arith.constant 0 : index
    %c0_4 = arith.constant 0 : index
    %2 = vector.load %arg2[%c0_2, %c0_3, %c0_4] : memref<1x128x128xbf16, #tpu.memory_space<vmem>>, vector<1x128x128xbf16>
    %3 = vector.shape_cast %2 : vector<1x128x128xbf16> to vector<128x128xbf16>
    %cst = arith.constant dense<0.000000e+00> : vector<512x128xf32>
    %4 = tpu.matmul %1, %3, %cst {dimension_numbers = #tpu.dot_dimension_numbers<[1], [0], [0], [1], [0, 0, 1, 1], [], []>} : vector<512x128xbf16>, vector<128x128xbf16>, vector<512x128xf32> -> vector<512x128xf32>
    %c0_5 = arith.constant 0 : index
    %c0_6 = arith.constant 0 : index
    %c0_7 = arith.constant 0 : index
    %5 = vector.load %arg3[%c0_5, %c0_6, %c0_7] : memref<1x512x128xf32, #tpu.memory_space<vmem>>, vector<1x512x128xf32>
    %6 = vector.shape_cast %5 : vector<1x512x128xf32> to vector<512x128xf32>
    %7 = vector.shape_cast %4 : vector<512x128xf32> to vector<1x512x128xf32>
    tpu.vector_store %arg3[%c0_5, %c0_6, %c0_7], %7 {strides = array<i32>} : memref<1x512x128xf32, #tpu.memory_space<vmem>>, vector<1x512x128xf32>,
    return
  }
  func.func @transform_0(%arg0: i32) -> (i32, i32, i32) {
    %c0_i32 = arith.constant 0 : i32
    %c0_i32_0 = arith.constant 0 : i32
    %c0_i32_1 = arith.constant 0 : i32
    return %arg0, %c0_i32, %c0_i32_0 : i32, i32, i32
  }
  func.func @transform_1(%arg0: i32) -> (i32, i32, i32) {
    %c0_i32 = arith.constant 0 : i32
    %c0_i32_0 = arith.constant 0 : i32
    %c0_i32_1 = arith.constant 0 : i32
    return %arg0, %c0_i32, %c0_i32_0 : i32, i32, i32
  }
  func.func @transform_2(%arg0: i32) -> (i32, i32, i32) {
    %c0_i32 = arith.constant 0 : i32
    %c0_i32_0 = arith.constant 0 : i32
    %c0_i32_1 = arith.constant 0 : i32
    return %arg0, %c0_i32, %c0_i32_0 : i32, i32, i32
  }
}

</mosaic_0001>

<bundles_post_ra>
// kernel: _lambda_.4
= control target key start
LH: loop header
LB: loop body
LE: loop exit
PB: predicated region body
PF: predicated region fallthrough
CT: control target
= control target key end

     0   :  { %9 = vsyncpa [#allocation4], 0  ;;  %s2475_s18 = smov [#allocation3]   ;;  %s2476_s20 = smov 64   ;;  %s2722_s0 = inlined_call_operand.vmem [shape: bf16[1,32,2048], index: 0, kind: input, shape index: {}]   ;;  %s2723_s1 = inlined_call_operand.hbm [shape: bf16[1,2048,128], index: 1, kind: input, shape index: {}]   ;;  %s2724_s2 = inlined_call_operand.vmem [shape: f32[1,128], index: 2, kind: input, shape index: {}]   ;;  %s2725_s3 = inlined_call_operand.vmem [shape: f32[1,128], index: 3, kind: input, shape index: {}]   ;;  %s2726_s4 = inlined_call_operand.vmem [shape: bf16[1,32,128], index: 4, kind: output, shape index: {}]  }
   0x1   :  { %s16_s17 = sshll.u32 %s2723_s1, 4  ;;  %s18_s19 = sshll.u32 %s2475_s18, 4  ;;  %s17_s17 = int_to_ptr.hbm [resolvable:$true] %s16_s17  ;;  %s19_s19 = int_to_ptr.vmem [resolvable:$true] %s18_s19 }
   0x2   :  { %s2477_s21 = smov 4  }
   0x3   :  { %24 = dma.hbm_to_vmem [thread:$0]  %s17_s17, 16384, %s19_s19, [#allocation4], %s2476_s20, %s2476_s20, %s2477_s21  }
   0x4   :  { %2473 = dma.done.wait [#allocation4], 16384  }
   0x5   :  { %2474 = vsyncadd [#allocation4], 4294950912  ;;  %v2312_v0 = vld [vmem:[#allocation3 + $0x38] sm:$0xff]  ;;  %v2311_v4 = vld [vmem:[#allocation3 + $0x30] sm:$0xff] }
   0x6   :  { %v2320_v1 = vld [vmem:[#allocation3 + $0x78] sm:$0xff]  ;;  %1249 = vmatpush.bf16.msra.mxu0 %v2312_v0  ;;  %v2319_v5 = vld [vmem:[#allocation3 + $0x70] sm:$0xff]  ;;  %v2310_v8 = vld [vmem:[#allocation3 + $0x28] sm:$0xff] }
   0x7   :  { %v2328_v2 = vld [vmem:[#allocation3 + $0xb8] sm:$0xff]  ;;  %1268 = vmatpush.bf16.msra.mxu1 %v2320_v1  ;;  %v2327_v6 = vld [vmem:[#allocation3 + $0xb0] sm:$0xff]  ;;  %v2318_v9 = vld [vmem:[#allocation3 + $0x68] sm:$0xff] }
   0x8   :  { %v2336_v3 = vld [vmem:[#allocation3 + $0xf8] sm:$0xff]  ;;  %1287 = vmatpush.bf16.msra.mxu2 %v2328_v2  ;;  %v2335_v7 = vld [vmem:[#allocation3 + $0xf0] sm:$0xff]  ;;  %v2326_v10 = vld [vmem:[#allocation3 + $0xa8] sm:$0xff] }
   0x9   :  { %1306 = vmatpush.bf16.msra.mxu3 %v2336_v3  ;;  %v2334_v11 = vld [vmem:[#allocation3 + $0xe8] sm:$0xff]  ;;  %v2309_v12 = vld [vmem:[#allocation3 + $0x20] sm:$0xff]  ;;  %v2308_v16 = vld [vmem:[#allocation3 + $0x18] sm:$0xff] }
   0xa   :  { %1250 = vmatpush.bf16.msra.mxu0 %v2311_v4  ;;  %v2317_v13 = vld [vmem:[#allocation3 + $0x60] sm:$0xff]  ;;  %v2316_v17 = vld [vmem:[#allocation3 + $0x58] sm:$0xff]  ;;  %v2307_v20 = vld [vmem:[#allocation3 + $0x10] sm:$0xff] }
   0xb   :  { %1269 = vmatpush.bf16.msra.mxu1 %v2319_v5  ;;  %v2325_v14 = vld [vmem:[#allocation3 + $0xa0] sm:$0xff]  ;;  %v2324_v18 = vld [vmem:[#allocation3 + $0x98] sm:$0xff]  ;;  %v2315_v21 = vld [vmem:[#allocation3 + $0x50] sm:$0xff] }
   0xc   :  { %1288 = vmatpush.bf16.msra.mxu2 %v2327_v6  ;;  %v2333_v15 = vld [vmem:[#allocation3 + $0xe0] sm:$0xff]  ;;  %v2332_v19 = vld [vmem:[#allocation3 + $0xd8] sm:$0xff]  ;;  %v2323_v22 = vld [vmem:[#allocation3 + $0x90] sm:$0xff] }
   0xd   :  { %1307 = vmatpush.bf16.msra.mxu3 %v2335_v7  ;;  %v2331_v23 = vld [vmem:[#allocation3 + $0xd0] sm:$0xff]  ;;  %v2306_v24 = vld [vmem:[#allocation3 + $0x8] sm:$0xff]  ;;  %v2305_v28 = vld [vmem:[#allocation3] sm:$0xff] }
   0xe   :  { %1251 = vmatpush.bf16.msra.mxu0 %v2310_v8  ;;  %v2314_v25 = vld [vmem:[#allocation3 + $0x48] sm:$0xff]  ;;  %v2313_v29 = vld [vmem:[#allocation3 + $0x40] sm:$0xff]  ;;  %v2360_v40 = vld [vmem:[#allocation3 + $0x1b8] sm:$0xff] }
   0xf   :  { %1270 = vmatpush.bf16.msra.mxu1 %v2318_v9  ;;  %v2322_v26 = vld [vmem:[#allocation3 + $0x88] sm:$0xff]  ;;  %v2321_v30 = vld [vmem:[#allocation3 + $0x80] sm:$0xff]  ;;  %v2344_v41 = vld [vmem:[#allocation3 + $0x138] sm:$0xff] }
  0x10   :  { %1289 = vmatpush.bf16.msra.mxu2 %v2326_v10  ;;  %v2330_v27 = vld [vmem:[#allocation3 + $0xc8] sm:$0xff]  ;;  %v2329_v31 = vld [vmem:[#allocation3 + $0xc0] sm:$0xff]  ;;  %v2352_v46 = vld [vmem:[#allocation3 + $0x178] sm:$0xff] }
  0x11   :  { %1308 = vmatpush.bf16.msra.mxu3 %v2334_v11  ;;  %v1635_v32 = vld [vmem:[%s2722_s0] sm:$0xf]  ;;  %v2273_v34 = vld [vmem:[%s2722_s0 + $0x4] sm:$0xf]  ;;  %v1643_v36 = vld [vmem:[%s2722_s0 + $0x8] sm:$0xf] }
  0x12   :  { %1252 = vmatpush.bf16.msra.mxu0 %v2309_v12  ;;  %v2281_v33 = vld [vmem:[%s2722_s0 + $0x3c] sm:$0xf0]  ;;  %v1637_v35 = vld [vmem:[%s2722_s0 + $0x40] sm:$0xf0]  ;;  %v2282_v37 = vld [vmem:[%s2722_s0 + $0x44] sm:$0xf0] }
  0x13   :  { %1271 = vmatpush.bf16.msra.mxu1 %v2317_v13  ;;  %v2274_v38 = vld [vmem:[%s2722_s0 + $0xc] sm:$0xf]  ;;  %v1636_v42 = vor.u32 %v2281_v33, %v1635_v32  ;;  %v1640_v43 = vor.u32 %v2273_v34, %v1637_v35  ;;  %v1644_v44 = vor.u32 %v2282_v37, %v1643_v36  ;;  %v2368_v47 = vld [vmem:[#allocation3 + $0x1f8] sm:$0xff]  ;;  %v2359_v48 = vld [vmem:[#allocation3 + $0x1b0] sm:$0xff] }
  0x14   :  { %1290 = vmatpush.bf16.msra.mxu2 %v2325_v14  ;;  %v1645_v39 = vld [vmem:[%s2722_s0 + $0x48] sm:$0xf0]  ;;  %v2343_v49 = vld [vmem:[#allocation3 + $0x130] sm:$0xff]  ;;  %v2357_v56 = vld [vmem:[#allocation3 + $0x1a0] sm:$0xff] }
  0x15   :  { %1309 = vmatpush.bf16.msra.mxu3 %v2333_v15  ;;  %v1648_v45 = vor.u32 %v2274_v38, %v1645_v39  ;;  %v2351_v50 = vld [vmem:[#allocation3 + $0x170] sm:$0xff]  ;;  %v2358_v52 = vld [vmem:[#allocation3 + $0x1a8] sm:$0xff]  ;;  %v2341_v57 = vld [vmem:[#allocation3 + $0x120] sm:$0xff] }
  0x16   :  { %1253 = vmatpush.bf16.msra.mxu0 %v2308_v16  ;;  %v2367_v51 = vld [vmem:[#allocation3 + $0x1f0] sm:$0xff]  ;;  %v2342_v53 = vld [vmem:[#allocation3 + $0x128] sm:$0xff]  ;;  %v2349_v58 = vld [vmem:[#allocation3 + $0x160] sm:$0xff] }
  0x17   :  { %1272 = vmatpush.bf16.msra.mxu1 %v2316_v17  ;;  %v2350_v54 = vld [vmem:[#allocation3 + $0x168] sm:$0xff]  ;;  %v2365_v59 = vld [vmem:[#allocation3 + $0x1e0] sm:$0xff]  ;;  %v2356_v4 = vld [vmem:[#allocation3 + $0x198] sm:$0xff] }
  0x18   :  { %1291 = vmatpush.bf16.msra.mxu2 %v2324_v18  ;;  %v2366_v55 = vld [vmem:[#allocation3 + $0x1e8] sm:$0xff]  ;;  %v1699_v60 = vld [vmem:[%s2722_s0 + $0x80] sm:$0xf]  ;;  %v2289_v62 = vld [vmem:[%s2722_s0 + $0x84] sm:$0xf] }
  0x19   :  { %1310 = vmatpush.bf16.msra.mxu3 %v2332_v19  ;;  %v2297_v61 = vld [vmem:[%s2722_s0 + $0xbc] sm:$0xf0]  ;;  %v1701_v63 = vld [vmem:[%s2722_s0 + $0xc0] sm:$0xf0]  ;;  %v1707_v0 = vld [vmem:[%s2722_s0 + $0x88] sm:$0xf] }
  0x1a   :  { %1254 = vmatpush.bf16.msra.mxu0 %v2307_v20  ;;  %v2298_v1 = vld [vmem:[%s2722_s0 + $0xc4] sm:$0xf0]  ;;  %v2290_v2 = vld [vmem:[%s2722_s0 + $0x8c] sm:$0xf]  ;;  %v2340_v5 = vld [vmem:[#allocation3 + $0x118] sm:$0xff]  ;;  %v1700_v6 = vor.u32 %v2297_v61, %v1699_v60  ;;  %v1704_v7 = vor.u32 %v2289_v62, %v1701_v63 }
  0x1b   :  { %1273 = vmatpush.bf16.msra.mxu1 %v2315_v21  ;;  %v1709_v3 = vld [vmem:[%s2722_s0 + $0xc8] sm:$0xf0]  ;;  %v1708_v8 = vor.u32 %v2298_v1, %v1707_v0  ;;  %v2348_v10 = vld [vmem:[#allocation3 + $0x158] sm:$0xff]  ;;  %v2355_v12 = vld [vmem:[#allocation3 + $0x190] sm:$0xff] }
  0x1c   :  { %1292 = vmatpush.bf16.msra.mxu2 %v2323_v22  ;;  %v1712_v9 = vor.u32 %v2290_v2, %v1709_v3  ;;  %v2364_v11 = vld [vmem:[#allocation3 + $0x1d8] sm:$0xff]  ;;  %v2339_v13 = vld [vmem:[#allocation3 + $0x110] sm:$0xff]  ;;  %v2354_v16 = vld [vmem:[#allocation3 + $0x188] sm:$0xff] }
  0x1d   :  { %1311 = vmatpush.bf16.msra.mxu3 %v2331_v23  ;;  %v2347_v14 = vld [vmem:[#allocation3 + $0x150] sm:$0xff]  ;;  %v2338_v17 = vld [vmem:[#allocation3 + $0x108] sm:$0xff]  ;;  %v2353_v20 = vld [vmem:[#allocation3 + $0x180] sm:$0xff] }
  0x1e   :  { %1255 = vmatpush.bf16.msra.mxu0 %v2306_v24  ;;  %v2363_v15 = vld [vmem:[#allocation3 + $0x1d0] sm:$0xff]  ;;  %v2346_v18 = vld [vmem:[#allocation3 + $0x148] sm:$0xff]  ;;  %v2337_v21 = vld [vmem:[#allocation3 + $0x100] sm:$0xff] }
  0x1f   :  { %1274 = vmatpush.bf16.msra.mxu1 %v2314_v25  ;;  %v2362_v19 = vld [vmem:[#allocation3 + $0x1c8] sm:$0xff]  ;;  %v2345_v22 = vld [vmem:[#allocation3 + $0x140] sm:$0xff]  ;;  %v1651_v24 = vld [vmem:[%s2722_s0 + $0x10] sm:$0xf] }
  0x20   :  { %1293 = vmatpush.bf16.msra.mxu2 %v2322_v26  ;;  %v2361_v23 = vld [vmem:[#allocation3 + $0x1c0] sm:$0xff]  ;;  %v2392_v25 = vld [vmem:[#allocation3 + $0x2b8] sm:$0xff]  ;;  %v2391_v37 = vld [vmem:[#allocation3 + $0x2b0] sm:$0xff] }
  0x21   :  { %1312 = vmatpush.bf16.msra.mxu3 %v2330_v27  ;;  %v2376_v26 = vld [vmem:[#allocation3 + $0x238] sm:$0xff]  ;;  %v2283_v27 = vld [vmem:[%s2722_s0 + $0x4c] sm:$0xf0] }
  0x22   :  { %1256 = vmatpush.bf16.msra.mxu0 %v2305_v28  ;;  %v2275_v28 = vld [vmem:[%s2722_s0 + $0x14] sm:$0xf]  ;;  %v2276_v32 = vld [vmem:[%s2722_s0 + $0x1c] sm:$0xf]  ;;  %v1652_v36 = vor.u32 %v2283_v27, %v1651_v24  ;;  %v1669_v24 = vld [vmem:[%s2722_s0 + $0x60] sm:$0xf0] }
  0x23   :  { %1275 = vmatpush.bf16.msra.mxu1 %v2313_v29  ;;  %v1653_v29 = vld [vmem:[%s2722_s0 + $0x50] sm:$0xf0]  ;;  %v1661_v33 = vld [vmem:[%s2722_s0 + $0x58] sm:$0xf0]  ;;  %v2278_v27 = vld [vmem:[%s2722_s0 + $0x2c] sm:$0xf] }
  0x24   :  { %1294 = vmatpush.bf16.msra.mxu2 %v2321_v30  ;;  %v1659_v30 = vld [vmem:[%s2722_s0 + $0x18] sm:$0xf]  ;;  %v1656_v38 = vor.u32 %v2275_v28, %v1653_v29  ;;  %v1725_v61 = vld [vmem:[%s2722_s0 + $0xd8] sm:$0xf0]  ;;  %v2387_v1 = vld [vmem:[#allocation3 + $0x290] sm:$0xff] }
  0x25   :  { %1313 = vmatpush.bf16.msra.mxu3 %v2329_v31  ;;  %1257 = vmatmul.bf16.vlgmr.msra.gmra.mxu0 %v1636_v42  ;;  %v2284_v31 = vld [vmem:[%s2722_s0 + $0x54] sm:$0xf0]  ;;  %v2383_v42 = vld [vmem:[#allocation3 + $0x270] sm:$0xff]  ;;  %v1677_v28 = vld [vmem:[%s2722_s0 + $0x68] sm:$0xf0] }
  0x26   :  { %1325 = vmatpush.bf16.msrb.mxu0 %v2344_v41  ;;  %1276 = vmatmul.bf16.vlgmr.msra.gmra.mxu1 %v1640_v43  ;;  %v2384_v34 = vld [vmem:[#allocation3 + $0x278] sm:$0xff]  ;;  %v1660_v39 = vor.u32 %v2284_v31, %v1659_v30  ;;  %v2375_v41 = vld [vmem:[#allocation3 + $0x230] sm:$0xff] }
  0x27   :  { %1295 = vmatmul.bf16.vlgmr.msra.gmra.mxu2 %v1644_v44  ;;  %1344 = vmatpush.bf16.msrb.mxu1 %v2352_v46  ;;  %v2400_v35 = vld [vmem:[#allocation3 + $0x2f8] sm:$0xff]  ;;  %v2399_v43 = vld [vmem:[#allocation3 + $0x2f0] sm:$0xff]  ;;  %v2390_v44 = vld [vmem:[#allocation3 + $0x2a8] sm:$0xff] }
  0x28   :  { %1363 = vmatpush.bf16.msrb.mxu2 %v2360_v40  ;;  %1314 = vmatmul.bf16.vlgmr.msra.gmra.mxu3 %v1648_v45  ;;  %v1664_v40 = vor.u32 %v2276_v32, %v1661_v33  ;;  %v2374_v45 = vld [vmem:[#allocation3 + $0x228] sm:$0xff]  ;;  %v2372_v60 = vld [vmem:[#allocation3 + $0x218] sm:$0xff]  ;;  %v2415_v30 = vld [vmem:[#allocation3 + $0x370] sm:$0xff]  ;;  %v1680_v33 = vor.u32 %v2278_v27, %v1677_v28 }
  0x29   :  { %1382 = vmatpush.bf16.msrb.mxu3 %v2368_v47  ;;  %v2382_v46 = vld [vmem:[#allocation3 + $0x268] sm:$0xff]  ;;  %v2380_v62 = vld [vmem:[#allocation3 + $0x258] sm:$0xff] }
  0x2a   :  { %1326 = vmatpush.bf16.msrb.mxu0 %v2343_v49  ;;  %v2398_v47 = vld [vmem:[#allocation3 + $0x2e8] sm:$0xff]  ;;  %v2373_v49 = vld [vmem:[#allocation3 + $0x220] sm:$0xff]  ;;  %v2396_v63 = vld [vmem:[#allocation3 + $0x2d8] sm:$0xff] }
  0x2b   :  { %1345 = vmatpush.bf16.msrb.mxu1 %v2351_v50  ;;  %v2381_v50 = vld [vmem:[#allocation3 + $0x260] sm:$0xff]  ;;  %v1757_v27 = vld [vmem:[%s2722_s0 + $0xf8] sm:$0xf0] }
  0x2c   :  { %1364 = vmatpush.bf16.msrb.mxu2 %v2359_v48  ;;  %v2389_v48 = vld [vmem:[#allocation3 + $0x2a0] sm:$0xff] }
  0x2d   :  { %1383 = vmatpush.bf16.msrb.mxu3 %v2367_v51  ;;  %v2397_v51 = vld [vmem:[#allocation3 + $0x2e0] sm:$0xff] }
  0x2e   :  { %1327 = vmatpush.bf16.msrb.mxu0 %v2342_v53  ;;  %v2299_v53 = vld [vmem:[%s2722_s0 + $0xcc] sm:$0xf0] }
  0x2f   :  { %1346 = vmatpush.bf16.msrb.mxu1 %v2350_v54  ;;  %v2388_v54 = vld [vmem:[#allocation3 + $0x298] sm:$0xff] }
  0x30   :  { %1365 = vmatpush.bf16.msrb.mxu2 %v2358_v52  ;;  %v1715_v52 = vld [vmem:[%s2722_s0 + $0x90] sm:$0xf] }
  0x31   :  { %1384 = vmatpush.bf16.msrb.mxu3 %v2366_v55  ;;  %v2291_v55 = vld [vmem:[%s2722_s0 + $0x94] sm:$0xf]  ;;  %v1716_v0 = vor.u32 %v2299_v53, %v1715_v52  ;;  %v2294_v52 = vld [vmem:[%s2722_s0 + $0xac] sm:$0xf]  ;;  %v2404_v53 = vld [vmem:[#allocation3 + $0x318] sm:$0xff] }
  0x32   :  { %1328 = vmatpush.bf16.msrb.mxu0 %v2341_v57  ;;  %v1723_v57 = vld [vmem:[%s2722_s0 + $0x98] sm:$0xf] }
  0x33   :  { %1347 = vmatpush.bf16.msrb.mxu1 %v2349_v58  ;;  %v2300_v58 = vld [vmem:[%s2722_s0 + $0xd4] sm:$0xf0] }
  0x34   :  { %1366 = vmatpush.bf16.msrb.mxu2 %v2357_v56  ;;  %v1717_v56 = vld [vmem:[%s2722_s0 + $0xd0] sm:$0xf0]  ;;  %v1724_v3 = vor.u32 %v2300_v58, %v1723_v57 }
  0x35   :  { %1385 = vmatpush.bf16.msrb.mxu3 %v2365_v59  ;;  %1262 = vmatmul.bf16.gmra.mxu0 %v1700_v6  ;;  %v2292_v59 = vld [vmem:[%s2722_s0 + $0x9c] sm:$0xf]  ;;  %v1720_v2 = vor.u32 %v2291_v55, %v1717_v56  ;;  %v2379_v6 = vld [vmem:[#allocation3 + $0x250] sm:$0xff] }
  0x36   :  { %1329 = vmatpush.bf16.msrb.mxu0 %v2340_v5  ;;  %1281 = vmatmul.bf16.gmra.mxu1 %v1704_v7  ;;  %v2371_v5 = vld [vmem:[#allocation3 + $0x210] sm:$0xff]  ;;  %v2428_v55 = vld [vmem:[#allocation3 + $0x3d8] sm:$0xff] }
  0x37   :  { %1300 = vmatmul.bf16.gmra.mxu2 %v1708_v8  ;;  %1348 = vmatpush.bf16.msrb.mxu1 %v2348_v10  ;;  %v2395_v7 = vld [vmem:[#allocation3 + $0x2d0] sm:$0xff]  ;;  %v2386_v8 = vld [vmem:[#allocation3 + $0x288] sm:$0xff] }
  0x38   :  { %1367 = vmatpush.bf16.msrb.mxu2 %v2356_v4  ;;  %1319 = vmatmul.bf16.gmra.mxu3 %v1712_v9  ;;  %v1728_v4 = vor.u32 %v2292_v59, %v1725_v61  ;;  %v2370_v9 = vld [vmem:[#allocation3 + $0x208] sm:$0xff]  ;;  %v2419_v56 = vld [vmem:[#allocation3 + $0x390] sm:$0xff] }
  0x39   :  { %1386 = vmatpush.bf16.msrb.mxu3 %v2364_v11  ;;  %v2378_v10 = vld [vmem:[#allocation3 + $0x248] sm:$0xff]  ;;  %v2411_v58 = vld [vmem:[#allocation3 + $0x350] sm:$0xff] }
  0x3a   :  { %1330 = vmatpush.bf16.msrb.mxu0 %v2339_v13  ;;  %v2394_v11 = vld [vmem:[#allocation3 + $0x2c8] sm:$0xff]  ;;  %v2424_v13 = vld [vmem:[#allocation3 + $0x3b8] sm:$0xff] }
  0x3b   :  { %1349 = vmatpush.bf16.msrb.mxu1 %v2347_v14  ;;  %v2369_v14 = vld [vmem:[#allocation3 + $0x200] sm:$0xff] }
  0x3c   :  { %1368 = vmatpush.bf16.msrb.mxu2 %v2355_v12  ;;  %v2385_v12 = vld [vmem:[#allocation3 + $0x280] sm:$0xff] }
  0x3d   :  { %1387 = vmatpush.bf16.msrb.mxu3 %v2363_v15  ;;  %v2377_v15 = vld [vmem:[#allocation3 + $0x240] sm:$0xff] }
  0x3e   :  { %1331 = vmatpush.bf16.msrb.mxu0 %v2338_v17  ;;  %v1667_v17 = vld [vmem:[%s2722_s0 + $0x20] sm:$0xf] }
  0x3f   :  { %1350 = vmatpush.bf16.msrb.mxu1 %v2346_v18  ;;  %v2285_v18 = vld [vmem:[%s2722_s0 + $0x5c] sm:$0xf0] }
  0x40   :  { %1369 = vmatpush.bf16.msrb.mxu2 %v2354_v16  ;;  %v2393_v16 = vld [vmem:[#allocation3 + $0x2c0] sm:$0xff]  ;;  %v1668_v29 = vor.u32 %v2285_v18, %v1667_v17 }
  0x41   :  { %1388 = vmatpush.bf16.msrb.mxu3 %v2362_v19  ;;  %v2408_v19 = vld [vmem:[#allocation3 + $0x338] sm:$0xff] }
  0x42   :  { %1332 = vmatpush.bf16.msrb.mxu0 %v2337_v21  ;;  %v2277_v21 = vld [vmem:[%s2722_s0 + $0x24] sm:$0xf] }
  0x43   :  { %1351 = vmatpush.bf16.msrb.mxu1 %v2345_v22  ;;  %v2432_v22 = vld [vmem:[#allocation3 + $0x3f8] sm:$0xff]  ;;  %v1672_v31 = vor.u32 %v2277_v21, %v1669_v24  ;;  %v2303_v21 = vld [vmem:[%s2722_s0 + $0xec] sm:$0xf0] }
  0x44   :  { %1370 = vmatpush.bf16.msrb.mxu2 %v2353_v20  ;;  %v2416_v20 = vld [vmem:[#allocation3 + $0x378] sm:$0xff] }
  0x45   :  { %1389 = vmatpush.bf16.msrb.mxu3 %v2361_v23  ;;  %1333 = vmatmul.bf16.vlgmr.msrb.gmra.mxu0 %v1652_v36  ;;  %v2423_v23 = vld [vmem:[#allocation3 + $0x3b0] sm:$0xff]  ;;  %v2422_v36 = vld [vmem:[#allocation3 + $0x3a8] sm:$0xff]  ;;  %v1755_v24 = vld [vmem:[%s2722_s0 + $0xb8] sm:$0xf] }
  0x46   :  { %1401 = vmatpush.bf16.msra.mxu0 %v2376_v26  ;;  %1352 = vmatmul.bf16.vlgmr.msrb.gmra.mxu1 %v1656_v38  ;;  %v2286_v26 = vld [vmem:[%s2722_s0 + $0x64] sm:$0xf0] }
  0x47   :  { %1420 = vmatpush.bf16.msra.mxu1 %v2384_v34  ;;  %1371 = vmatmul.bf16.vlgmr.msrb.gmra.mxu2 %v1660_v39  ;;  %v2407_v34 = vld [vmem:[#allocation3 + $0x330] sm:$0xff]  ;;  %v2406_v38 = vld [vmem:[#allocation3 + $0x328] sm:$0xff] }
  0x48   :  { %1439 = vmatpush.bf16.msra.mxu2 %v2392_v25  ;;  %1390 = vmatmul.bf16.vlgmr.msrb.gmra.mxu3 %v1664_v40  ;;  %v1675_v25 = vld [vmem:[%s2722_s0 + $0x28] sm:$0xf]  ;;  %v2421_v40 = vld [vmem:[#allocation3 + $0x3a0] sm:$0xff] }
  0x49   :  { %1458 = vmatpush.bf16.msra.mxu3 %v2400_v35  ;;  %v1676_v32 = vor.u32 %v2286_v26, %v1675_v25  ;;  %v2431_v35 = vld [vmem:[#allocation3 + $0x3f0] sm:$0xff]  ;;  %v2430_v39 = vld [vmem:[#allocation3 + $0x3e8] sm:$0xff]  ;;  %v2304_v25 = vld [vmem:[%s2722_s0 + $0xf4] sm:$0xf0] }
  0x4a   :  { %1402 = vmatpush.bf16.msra.mxu0 %v2375_v41  ;;  %v2413_v41 = vld [vmem:[#allocation3 + $0x360] sm:$0xff]  ;;  %v2296_v26 = vld [vmem:[%s2722_s0 + $0xbc] sm:$0xf] }
  0x4b   :  { %1421 = vmatpush.bf16.msra.mxu1 %v2383_v42  ;;  %v2405_v42 = vld [vmem:[#allocation3 + $0x320] sm:$0xff] }
  0x4c   :  { %1440 = vmatpush.bf16.msra.mxu2 %v2391_v37  ;;  %v2414_v37 = vld [vmem:[#allocation3 + $0x368] sm:$0xff] }
  0x4d   :  { %1459 = vmatpush.bf16.msra.mxu3 %v2399_v43  ;;  %v2429_v43 = vld [vmem:[#allocation3 + $0x3e0] sm:$0xff] }
  0x4e   :  { %1403 = vmatpush.bf16.msra.mxu0 %v2374_v45  ;;  %v1731_v45 = vld [vmem:[%s2722_s0 + $0xa0] sm:$0xf] }
  0x4f   :  { %1422 = vmatpush.bf16.msra.mxu1 %v2382_v46  ;;  %v2301_v46 = vld [vmem:[%s2722_s0 + $0xdc] sm:$0xf0] }
  0x50   :  { %1441 = vmatpush.bf16.msra.mxu2 %v2390_v44  ;;  %v2420_v44 = vld [vmem:[#allocation3 + $0x398] sm:$0xff]  ;;  %v1732_v57 = vor.u32 %v2301_v46, %v1731_v45 }
  0x51   :  { %1460 = vmatpush.bf16.msra.mxu3 %v2398_v47  ;;  %v2412_v47 = vld [vmem:[#allocation3 + $0x358] sm:$0xff] }
  0x52   :  { %1404 = vmatpush.bf16.msra.mxu0 %v2373_v49  ;;  %v1733_v49 = vld [vmem:[%s2722_s0 + $0xe0] sm:$0xf0] }
  0x53   :  { %1423 = vmatpush.bf16.msra.mxu1 %v2381_v50  ;;  %v1739_v50 = vld [vmem:[%s2722_s0 + $0xa8] sm:$0xf] }
  0x54   :  { %1442 = vmatpush.bf16.msra.mxu2 %v2389_v48  ;;  %v2293_v48 = vld [vmem:[%s2722_s0 + $0xa4] sm:$0xf] }
  0x55   :  { %1461 = vmatpush.bf16.msra.mxu3 %v2397_v51  ;;  %1338 = vmatmul.bf16.gmra.mxu0 %v1716_v0  ;;  %v2302_v51 = vld [vmem:[%s2722_s0 + $0xe4] sm:$0xf0]  ;;  %v1736_v59 = vor.u32 %v2293_v48, %v1733_v49 }
  0x56   :  { %1405 = vmatpush.bf16.msra.mxu0 %v2372_v60  ;;  %1357 = vmatmul.bf16.gmra.mxu1 %v1720_v2  ;;  %v1740_v60 = vor.u32 %v2302_v51, %v1739_v50  ;;  %v2418_v0 = vld [vmem:[#allocation3 + $0x388] sm:$0xff] }
  0x57   :  { %1424 = vmatpush.bf16.msra.mxu1 %v2380_v62  ;;  %1376 = vmatmul.bf16.gmra.mxu2 %v1724_v3  ;;  %v2403_v62 = vld [vmem:[#allocation3 + $0x310] sm:$0xff]  ;;  %v2402_v2 = vld [vmem:[#allocation3 + $0x308] sm:$0xff] }
  0x58   :  { %1443 = vmatpush.bf16.msra.mxu2 %v2388_v54  ;;  %1395 = vmatmul.bf16.gmra.mxu3 %v1728_v4  ;;  %v1741_v54 = vld [vmem:[%s2722_s0 + $0xe8] sm:$0xf0]  ;;  %v2417_v4 = vld [vmem:[#allocation3 + $0x380] sm:$0xff] }
  0x59   :  { %1462 = vmatpush.bf16.msra.mxu3 %v2396_v63  ;;  %v1744_v61 = vor.u32 %v2294_v52, %v1741_v54  ;;  %v2427_v63 = vld [vmem:[#allocation3 + $0x3d0] sm:$0xff]  ;;  %v2426_v3 = vld [vmem:[#allocation3 + $0x3c8] sm:$0xff] }
  0x5a   :  { %1406 = vmatpush.bf16.msra.mxu0 %v2371_v5  ;;  %v2409_v5 = vld [vmem:[#allocation3 + $0x340] sm:$0xff] }
  0x5b   :  { %1425 = vmatpush.bf16.msra.mxu1 %v2379_v6  ;;  %v2401_v6 = vld [vmem:[#allocation3 + $0x300] sm:$0xff] }
  0x5c   :  { %1444 = vmatpush.bf16.msra.mxu2 %v2387_v1  ;;  %v2410_v1 = vld [vmem:[#allocation3 + $0x348] sm:$0xff] }
  0x5d   :  { %1463 = vmatpush.bf16.msra.mxu3 %v2395_v7  ;;  %v2425_v7 = vld [vmem:[#allocation3 + $0x3c0] sm:$0xff] }
  0x5e   :  { %1407 = vmatpush.bf16.msra.mxu0 %v2370_v9  ;;  %v2287_v9 = vld [vmem:[%s2722_s0 + $0x6c] sm:$0xf0] }
  0x5f   :  { %1426 = vmatpush.bf16.msra.mxu1 %v2378_v10  ;;  %v2279_v10 = vld [vmem:[%s2722_s0 + $0x34] sm:$0xf] }
  0x60   :  { %1445 = vmatpush.bf16.msra.mxu2 %v2386_v8  ;;  %v1683_v8 = vld [vmem:[%s2722_s0 + $0x30] sm:$0xf] }
  0x61   :  { %1464 = vmatpush.bf16.msra.mxu3 %v2394_v11  ;;  %v1685_v11 = vld [vmem:[%s2722_s0 + $0x70] sm:$0xf0] }
  0x62   :  { %1408 = vmatpush.bf16.msra.mxu0 %v2369_v14  ;;  %v2280_v14 = vld [vmem:[%s2722_s0 + $0x3c] sm:$0xf]  ;;  %v1688_v17 = vor.u32 %v2279_v10, %v1685_v11 }
  0x63   :  { %1427 = vmatpush.bf16.msra.mxu1 %v2377_v15  ;;  %v1693_v15 = vld [vmem:[%s2722_s0 + $0x78] sm:$0xf0] }
  0x64   :  { %1446 = vmatpush.bf16.msra.mxu2 %v2385_v12  ;;  %v1691_v12 = vld [vmem:[%s2722_s0 + $0x38] sm:$0xf] }
  0x65   :  { %1465 = vmatpush.bf16.msra.mxu3 %v2393_v16  ;;  %1409 = vmatmul.bf16.vlgmr.msra.gmra.mxu0 %v1668_v29  ;;  %v1684_v16 = vor.u32 %v2287_v9, %v1683_v8 }
  0x66   :  { %1477 = vmatpush.bf16.msrb.mxu0 %v2408_v19  ;;  %1428 = vmatmul.bf16.vlgmr.msra.gmra.mxu1 %v1672_v31  ;;  %v1696_v19 = vor.u32 %v2280_v14, %v1693_v15  ;;  %v1760_v31 = vor.u32 %v2296_v26, %v1757_v27 }
  0x67   :  { %1496 = vmatpush.bf16.msrb.mxu1 %v2416_v20  ;;  %1447 = vmatmul.bf16.vlgmr.msra.gmra.mxu2 %v1676_v32  ;;  %v1747_v20 = vld [vmem:[%s2722_s0 + $0xb0] sm:$0xf] }
  0x68   :  { %1515 = vmatpush.bf16.msrb.mxu2 %v2424_v13  ;;  %1466 = vmatmul.bf16.vlgmr.msra.gmra.mxu3 %v1680_v33  ;;  %v2288_v13 = vld [vmem:[%s2722_s0 + $0x74] sm:$0xf0]  ;;  %v1748_v28 = vor.u32 %v2303_v21, %v1747_v20 }
  0x69   :  { %1534 = vmatpush.bf16.msrb.mxu3 %v2432_v22  ;;  %v1692_v18 = vor.u32 %v2288_v13, %v1691_v12  ;;  %v2295_v22 = vld [vmem:[%s2722_s0 + $0xb4] sm:$0xf] }
  0x6a   :  { %1478 = vmatpush.bf16.msrb.mxu0 %v2407_v34 }
  0x6b   :  { %1497 = vmatpush.bf16.msrb.mxu1 %v2415_v30  ;;  %v1756_v30 = vor.u32 %v2304_v25, %v1755_v24 }
  0x6c   :  { %1516 = vmatpush.bf16.msrb.mxu2 %v2423_v23  ;;  %v1749_v23 = vld [vmem:[%s2722_s0 + $0xf0] sm:$0xf0] }
  0x6d   :  { %1535 = vmatpush.bf16.msrb.mxu3 %v2431_v35  ;;  %v1752_v29 = vor.u32 %v2295_v22, %v1749_v23 }
  0x6e   :  { %1479 = vmatpush.bf16.msrb.mxu0 %v2406_v38 }
  0x6f   :  { %1498 = vmatpush.bf16.msrb.mxu1 %v2414_v37 }
  0x70   :  { %1517 = vmatpush.bf16.msrb.mxu2 %v2422_v36 }
  0x71   :  { %1536 = vmatpush.bf16.msrb.mxu3 %v2430_v39 }
  0x72   :  { %1480 = vmatpush.bf16.msrb.mxu0 %v2405_v42 }
  0x73   :  { %1499 = vmatpush.bf16.msrb.mxu1 %v2413_v41 }
  0x74   :  { %1518 = vmatpush.bf16.msrb.mxu2 %v2421_v40 }
  0x75   :  { %1537 = vmatpush.bf16.msrb.mxu3 %v2429_v43  ;;  %1414 = vmatmul.bf16.gmra.mxu0 %v1732_v57 }
  0x76   :  { %1481 = vmatpush.bf16.msrb.mxu0 %v2404_v53  ;;  %1433 = vmatmul.bf16.gmra.mxu1 %v1736_v59 }
  0x77   :  { %1500 = vmatpush.bf16.msrb.mxu1 %v2412_v47  ;;  %1452 = vmatmul.bf16.gmra.mxu2 %v1740_v60 }
  0x78   :  { %1519 = vmatpush.bf16.msrb.mxu2 %v2420_v44  ;;  %1471 = vmatmul.bf16.gmra.mxu3 %v1744_v61 }
  0x79   :  { %1538 = vmatpush.bf16.msrb.mxu3 %v2428_v55 }
  0x7a   :  { %1482 = vmatpush.bf16.msrb.mxu0 %v2403_v62 }
  0x7b   :  { %1501 = vmatpush.bf16.msrb.mxu1 %v2411_v58 }
  0x7c   :  { %1520 = vmatpush.bf16.msrb.mxu2 %v2419_v56 }
  0x7d   :  { %1539 = vmatpush.bf16.msrb.mxu3 %v2427_v63 }
  0x7e   :  { %1483 = vmatpush.bf16.msrb.mxu0 %v2402_v2 }
  0x7f   :  { %1502 = vmatpush.bf16.msrb.mxu1 %v2410_v1 }
  0x80   :  { %1521 = vmatpush.bf16.msrb.mxu2 %v2418_v0 }
  0x81   :  { %1540 = vmatpush.bf16.msrb.mxu3 %v2426_v3 }
  0x82   :  { %1484 = vmatpush.bf16.msrb.mxu0 %v2401_v6 }
  0x83   :  { %1503 = vmatpush.bf16.msrb.mxu1 %v2409_v5 }
  0x84   :  { %1522 = vmatpush.bf16.msrb.mxu2 %v2417_v4 }
  0x85   :  { %1541 = vmatpush.bf16.msrb.mxu3 %v2425_v7  ;;  %1485 = vmatmul.bf16.vlgmr.msrb.gmra.mxu0 %v1684_v16 }
  0x86   :  { %1504 = vmatmul.bf16.vlgmr.msrb.gmra.mxu1 %v1688_v17 }
  0x87   :  { %1523 = vmatmul.bf16.vlgmr.msrb.gmra.mxu2 %v1692_v18 }
  0x88   :  { %1542 = vmatmul.bf16.vlgmr.msrb.gmra.mxu3 %v1696_v19 }
  0x95   :  { %1490 = vmatmul.bf16.gmra.mxu0 %v1748_v28 }
  0x96   :  { %1509 = vmatmul.bf16.gmra.mxu1 %v1752_v29 }
  0x97   :  { %1528 = vmatmul.bf16.gmra.mxu2 %v1756_v30 }
  0x98   :  { %1547 = vmatmul.bf16.gmra.mxu3 %v1760_v31 }
  0xa2   :  { %v1258_v32 = vpop.f32.mrf.mxu0 }
  0xa3   :  { %v1277_v33 = vpop.f32.mrf.mxu1 }
  0xa4   :  { %v1278_v34 = vadd.f32 %v1277_v33, %v1258_v32 }
  0xaa   :  { %v1296_v35 = vpop.f32.mrf.mxu2  ;;  %v1260_v38 = vpop.f32.mrf.mxu0 }
  0xab   :  { %v1315_v36 = vpop.f32.mrf.mxu3  ;;  %v1297_v37 = vadd.f32 %v1296_v35, %v1278_v34  ;;  %v1279_v39 = vpop.f32.mrf.mxu1 }
  0xac   :  { %v1280_v40 = vadd.f32 %v1279_v39, %v1260_v38 }
  0xad   :  { %v1316_v41 = vadd.f32 %v1315_v36, %v1297_v37 }
  0xb2   :  { %v1298_v42 = vpop.f32.mrf.mxu2  ;;  %v1263_v45 = vpop.f32.mrf.mxu0 }
  0xb3   :  { %v1317_v43 = vpop.f32.mrf.mxu3  ;;  %v1299_v44 = vadd.f32 %v1298_v42, %v1280_v40  ;;  %v1282_v46 = vpop.f32.mrf.mxu1 }
  0xb4   :  { %v1283_v47 = vadd.f32 %v1282_v46, %v1263_v45 }
  0xb5   :  { %v1318_v48 = vadd.f32 %v1317_v43, %v1299_v44 }
  0xba   :  { %v1301_v49 = vpop.f32.mrf.mxu2  ;;  %v1265_v52 = vpop.f32.mrf.mxu0 }
  0xbb   :  { %v1320_v50 = vpop.f32.mrf.mxu3  ;;  %v1302_v51 = vadd.f32 %v1301_v49, %v1283_v47  ;;  %v1284_v53 = vpop.f32.mrf.mxu1 }
  0xbc   :  { %v1285_v54 = vadd.f32 %v1284_v53, %v1265_v52 }
  0xbd   :  { %v1321_v55 = vadd.f32 %v1320_v50, %v1302_v51 }
  0xc2   :  { %v1303_v56 = vpop.f32.mrf.mxu2  ;;  %v1334_v59 = vpop.f32.mrf.mxu0 }
  0xc3   :  { %v1322_v57 = vpop.f32.mrf.mxu3  ;;  %v1304_v58 = vadd.f32 %v1303_v56, %v1285_v54  ;;  %v1335_v60 = vadd.f32 %v1334_v59, %v1316_v41  ;;  %v1353_v61 = vpop.f32.mrf.mxu1 }
  0xc5   :  { %v1323_v62 = vadd.f32 %v1322_v57, %v1304_v58  ;;  %v1354_v63 = vadd.f32 %v1353_v61, %v1335_v60 }
  0xca   :  { %v1372_v0 = vpop.f32.mrf.mxu2  ;;  %v1336_v3 = vpop.f32.mrf.mxu0 }
  0xcb   :  { %v1373_v1 = vadd.f32 %v1372_v0, %v1354_v63  ;;  %v1391_v2 = vpop.f32.mrf.mxu3  ;;  %v1355_v4 = vpop.f32.mrf.mxu1  ;;  %v1337_v26 = vadd.f32 %v1336_v3, %v1318_v48 }
  0xcd   :  { %v1392_v5 = vadd.f32 %v1391_v2, %v1373_v1  ;;  %v1356_v27 = vadd.f32 %v1355_v4, %v1337_v26 }
  0xd2   :  { %v1374_v6 = vpop.f32.mrf.mxu2  ;;  %v1339_v8 = vpop.f32.mrf.mxu0 }
  0xd3   :  { %v1393_v7 = vpop.f32.mrf.mxu3  ;;  %v1358_v9 = vpop.f32.mrf.mxu1  ;;  %v1375_v29 = vadd.f32 %v1374_v6, %v1356_v27  ;;  %v1340_v33 = vadd.f32 %v1339_v8, %v1321_v55 }
  0xd5   :  { %v1394_v35 = vadd.f32 %v1393_v7, %v1375_v29  ;;  %v1359_v36 = vadd.f32 %v1358_v9, %v1340_v33 }
  0xda   :  { %v1377_v10 = vpop.f32.mrf.mxu2  ;;  %v1341_v12 = vpop.f32.mrf.mxu0 }
  0xdb   :  { %v1396_v11 = vpop.f32.mrf.mxu3  ;;  %v1360_v13 = vpop.f32.mrf.mxu1  ;;  %v1378_v40 = vadd.f32 %v1377_v10, %v1359_v36  ;;  %v1342_v45 = vadd.f32 %v1341_v12, %v1323_v62 }
  0xdd   :  { %v1397_v47 = vadd.f32 %v1396_v11, %v1378_v40  ;;  %v1361_v50 = vadd.f32 %v1360_v13, %v1342_v45 }
  0xe2   :  { %v1379_v14 = vpop.f32.mrf.mxu2  ;;  %v1410_v16 = vpop.f32.mrf.mxu0 }
  0xe3   :  { %v1398_v15 = vpop.f32.mrf.mxu3  ;;  %v1429_v17 = vpop.f32.mrf.mxu1  ;;  %v1411_v34 = vadd.f32 %v1410_v16, %v1392_v5  ;;  %v1380_v54 = vadd.f32 %v1379_v14, %v1361_v50 }
  0xe5   :  { %v1430_v37 = vadd.f32 %v1429_v17, %v1411_v34  ;;  %v1399_v63 = vadd.f32 %v1398_v15, %v1380_v54 }
  0xea   :  { %v1448_v18 = vpop.f32.mrf.mxu2  ;;  %v1412_v20 = vpop.f32.mrf.mxu0 }
  0xeb   :  { %v1467_v19 = vpop.f32.mrf.mxu3  ;;  %v1431_v21 = vpop.f32.mrf.mxu1  ;;  %v1413_v38 = vadd.f32 %v1412_v20, %v1394_v35  ;;  %v1449_v41 = vadd.f32 %v1448_v18, %v1430_v37 }
  0xed   :  { %v1432_v46 = vadd.f32 %v1431_v21, %v1413_v38  ;;  %v1468_v48 = vadd.f32 %v1467_v19, %v1449_v41 }
  0xf2   :  { %v1450_v22 = vpop.f32.mrf.mxu2  ;;  %v1415_v24 = vpop.f32.mrf.mxu0 }
  0xf3   :  { %v1469_v23 = vpop.f32.mrf.mxu3  ;;  %v1434_v25 = vpop.f32.mrf.mxu1  ;;  %v1451_v49 = vadd.f32 %v1450_v22, %v1432_v46  ;;  %v1416_v51 = vadd.f32 %v1415_v24, %v1397_v47 }
  0xf5   :  { %v1470_v55 = vadd.f32 %v1469_v23, %v1451_v49  ;;  %v1435_v59 = vadd.f32 %v1434_v25, %v1416_v51 }
  0xfa   :  { %v1453_v28 = vpop.f32.mrf.mxu2  ;;  %v1417_v31 = vpop.f32.mrf.mxu0 }
  0xfb   :  { %v1472_v30 = vpop.f32.mrf.mxu3  ;;  %v1436_v32 = vpop.f32.mrf.mxu1  ;;  %v1454_v0 = vadd.f32 %v1453_v28, %v1435_v59  ;;  %v1418_v62 = vadd.f32 %v1417_v31, %v1399_v63  ;;  %v1595_v63 = vld [vmem:[%s2724_s2] sm:$0x1] }
  0xfd   :  { %v1473_v4 = vadd.f32 %v1472_v30, %v1454_v0  ;;  %v1437_v9 = vadd.f32 %v1436_v32, %v1418_v62  ;;  %v1597_v62 = vld [vmem:[%s2725_s3] sm:$0x1] }
 0x102   :  { %v1455_v39 = vpop.f32.mrf.mxu2  ;;  %v1486_v43 = vpop.f32.mrf.mxu0 }
 0x103   :  { %v1474_v42 = vpop.f32.mrf.mxu3  ;;  %v1505_v44 = vpop.f32.mrf.mxu1  ;;  %v1487_v52 = vadd.f32 %v1486_v43, %v1468_v48  ;;  %v1456_v13 = vadd.f32 %v1455_v39, %v1437_v9 }
 0x105   :  { %v1506_v60 = vadd.f32 %v1505_v44, %v1487_v52  ;;  %v1475_v20 = vadd.f32 %v1474_v42, %v1456_v13 }
 0x10a   :  { %v1524_v53 = vpop.f32.mrf.mxu2  ;;  %v1488_v57 = vpop.f32.mrf.mxu0 }
 0x10b   :  { %v1543_v56 = vpop.f32.mrf.mxu3  ;;  %v1507_v58 = vpop.f32.mrf.mxu1  ;;  %v1489_v61 = vadd.f32 %v1488_v57, %v1470_v55  ;;  %v1525_v1 = vadd.f32 %v1524_v53, %v1506_v60 }
 0x10d   :  { %v1508_v2 = vadd.f32 %v1507_v58, %v1489_v61  ;;  %v2698_v5 = vadd.f32 %v1543_v56, %v1525_v1 }
 0x10f   :  { %v1566_v14 = vmul.f32 %v2698_v5, %v2698_v5 }
 0x112   :  { %v1526_v3 = vpop.f32.mrf.mxu2  ;;  %v1491_v8 = vpop.f32.mrf.mxu0 }
 0x113   :  { %v1527_v6 = vadd.f32 %v1526_v3, %v1508_v2  ;;  %v1545_v7 = vpop.f32.mrf.mxu3  ;;  %v1492_v11 = vadd.f32 %v1491_v8, %v1473_v4  ;;  %v1510_v12 = vpop.f32.mrf.mxu1 }
 0x115   :  { %v2700_v10 = vadd.f32 %v1545_v7, %v1527_v6  ;;  %v1511_v18 = vadd.f32 %v1510_v12, %v1492_v11 }
 0x117   :  { %v1557_v15 = vadd.f32 %v2700_v10, %v2698_v5  ;;  %v1567_v16 = vmul.f32 %v2700_v10, %v2700_v10 }
 0x119   :  { %v1570_v17 = vadd.f32 %v1567_v16, %v1566_v14 }
 0x11a   :  { %v1529_v19 = vpop.f32.mrf.mxu2  ;;  %v1493_v23 = vpop.f32.mrf.mxu0 }
 0x11b   :  { %v1530_v21 = vadd.f32 %v1529_v19, %v1511_v18  ;;  %v1548_v22 = vpop.f32.mrf.mxu3  ;;  %v1494_v25 = vadd.f32 %v1493_v23, %v1475_v20  ;;  %v1512_v28 = vpop.f32.mrf.mxu1 }
 0x11d   :  { %v1549_v24 = vadd.f32 %v1548_v22, %v1530_v21  ;;  %v1513_v30 = vadd.f32 %v1512_v28, %v1494_v25 }
 0x11f   :  { %v1558_v26 = vadd.f32 %v1557_v15, %v1549_v24  ;;  %v1568_v27 = vmul.f32 %v1549_v24, %v1549_v24 }
 0x121   :  { %v1571_v29 = vadd.f32 %v1570_v17, %v1568_v27 }
 0x122   :  { %v1531_v31 = vpop.f32.mrf.mxu2 }
 0x123   :  { %v1532_v32 = vadd.f32 %v1531_v31, %v1513_v30  ;;  %v1550_v33 = vpop.f32.mrf.mxu3 }
 0x125   :  { %v1551_v34 = vadd.f32 %v1550_v33, %v1532_v32 }
 0x127   :  { %v1559_v35 = vadd.f32 %v1558_v26, %v1551_v34  ;;  %v1569_v36 = vmul.f32 %v1551_v34, %v1551_v34 }
 0x129   :  { %v1560_v37 = vrot.slane %v1559_v35, 4  ;;  %v1572_v38 = vadd.f32 %v1571_v29, %v1569_v36 }
 0x12b   :  { %v1561_v39 = vadd.f32 %v1560_v37, %v1559_v35  ;;  %v1573_v40 = vrot.slane %v1572_v38, 4 }
 0x12d   :  { %v1562_v41 = vrot.slane %v1561_v39, 2  ;;  %v1574_v42 = vadd.f32 %v1573_v40, %v1572_v38 }
 0x12f   :  { %v1563_v43 = vadd.f32 %v1562_v41, %v1561_v39  ;;  %v1575_v44 = vrot.slane %v1574_v42, 2 }
 0x131   :  { %v1564_v45 = vrot.slane %v1563_v43, 1  ;;  %v1576_v46 = vadd.f32 %v1575_v44, %v1574_v42 }
 0x133   :  { %v1565_v47 = vadd.f32 %v1564_v45, %v1563_v43  ;;  %v1577_v48 = vrot.slane %v1576_v46, 1 }
 0x135   :  { %v1578_v49 = vadd.f32 %v1577_v48, %v1576_v46  ;;  %v1579_v50 = vmul.f32 0.03125, %v1565_v47 }
 0x137   :  { %v1580_v51 = vmul.f32 0.03125, %v1578_v49  ;;  %v1581_v52 = vmul.f32 %v1579_v50, %v1579_v50 }
 0x139   :  { %v1582_v53 = vsub.f32 %v1580_v51, %v1581_v52 }
 0x13b   :  { %v1583_v54 = vmax.f32 %v1582_v53, 0.0 }
 0x13d   :  { %v1584_v55 = vadd.f32 1e-05, %v1583_v54 }
 0x13f   :  { %2447 = vrsqrt.f32 %v1584_v55  ;;  %vm1591_vm1 = vweird.f32 %v1584_v55 }
 0x145   :  { %v2448_v56 = vpop.eup %2447 }
 0x146   :  { %v1586_v57 = vmul.f32 %v2448_v56, %v1584_v55  ;;  %vm1592_vm0 = vweird.f32 %v2448_v56 }
 0x147   :  { %vm1593_vm2 = vmor %vm1591_vm1, %vm1592_vm0 }
 0x148   :  { %v1587_v58 = vmul.f32 %v2448_v56, %v1586_v57 }
 0x14a   :  { %v1588_v59 = vmul.f32 0.5, %v1587_v58 }
 0x14c   :  { %v1589_v60 = vsub.f32 1.5, %v1588_v59 }
 0x14e   :  { %v1590_v61 = vmul.f32 %v2448_v56, %v1589_v60 }
 0x150   :  { %v1594_v0 = vsel %vm1593_vm2, %v2448_v56, %v1590_v61 }
 0x151   :  { %v1596_v1 = vmul.f32 %v1595_v63, %v1594_v0 }
 0x153   :  { %v1598_v2 = vmul.f32 %v1596_v1, %v1579_v50  ;;  %v1604_v3 = vperm.slane %v1596_v1, 0 }
 0x155   :  { %v1599_v4 = vsub.f32 %v1597_v62, %v1598_v2  ;;  %v1605_v6 = vmul.f32 %v1604_v3, %v2698_v5  ;;  %v1606_v7 = vmul.f32 %v1604_v3, %v2700_v10  ;;  %v1607_v8 = vmul.f32 %v1604_v3, %v1549_v24 }
 0x156   :  { %v1608_v9 = vmul.f32 %v1604_v3, %v1551_v34 }
 0x157   :  { %v1610_v11 = vperm.slane %v1599_v4, 0 }
 0x159   :  { %v1612_v12 = vadd.f32 %v1610_v11, %v1605_v6  ;;  %v1613_v13 = vadd.f32 %v1610_v11, %v1606_v7  ;;  %v1614_v14 = vadd.f32 %v1610_v11, %v1607_v8  ;;  %v1615_v15 = vadd.f32 %v1610_v11, %v1608_v9 }
 0x15b   :  { %v1616_v16 = vmax.f32 %v1612_v12, 0.0  ;;  %v1617_v17 = vmax.f32 %v1613_v13, 0.0  ;;  %v1618_v18 = vmax.f32 %v1614_v14, 0.0  ;;  %v1619_v19 = vmax.f32 %v1615_v15, 0.0 }
 0x15d   :  { %v2436_v20 = vpack.c.bf16 %v1617_v17, %v1616_v16  ;;  %v2441_v21 = vpack.c.bf16 %v1619_v19, %v1618_v18 }
 0x15f   :  { %2437 = vst [vmem:[%s2726_s4] sm:$0xff] %v2436_v20  }
 0x160   :  { %2443 = vst [vmem:[%s2726_s4 + $0x8] sm:$0xff] %v2441_v21  }
 0x161   :  { %1632 = vsyncpa [#allocation4], 1 }

// kernel: _lambda_.5
= control target key start
LH: loop header
LB: loop body
LE: loop exit
PB: predicated region body
PF: predicated region fallthrough
CT: control target
= control target key end

     0   :  { %9 = vsyncpa [#allocation4], 0  ;;  %s3113_s0 = inlined_call_operand.vmem [shape: bf16[4,32,512], index: 0, kind: input, shape index: {}]   ;;  %s3114_s1 = inlined_call_operand.hbm [shape: bf16[4,512,128], index: 1, kind: input, shape index: {}]   ;;  %s3115_s2 = inlined_call_operand.hbm [shape: f32[1,128], index: 2, kind: input, shape index: {}]   ;;  %s3116_s3 = inlined_call_operand.vmem [shape: f32[1,128], index: 3, kind: input, shape index: {}]   ;;  %s3117_s4 = inlined_call_operand.vmem [shape: bf16[4,32,128], index: 4, kind: output, shape index: {}]  }
   0x1   :  { %s17_s17 = sshll.u32 %s3114_s1, 4  ;;  %s18_s17 = int_to_ptr.hbm [resolvable:$true] %s17_s17 }
   0x2   :  { %10 = vsyncpa [#allocation6], 0  ;;  %s2757_s18 = smov [#allocation3]   ;;  %s31_s22 = sshll.u32 %s3115_s2, 4  ;;  %s32_s22 = int_to_ptr.hbm [resolvable:$true] %s31_s22 }
   0x3   :  { %s19_s19 = sshll.u32 %s2757_s18, 4  ;;  %s2758_s23 = smov 64   ;;  %s20_s19 = int_to_ptr.vmem [resolvable:$true] %s19_s19 }
   0x4   :  { %s2759_s24 = smov 4   ;;  %s2760_s25 = smov [#allocation5]  }
   0x5   :  { %25 = dma.hbm_to_vmem [thread:$0]  %s18_s17, 16384, %s20_s19, [#allocation4], %s2758_s23, %s2758_s23, %s2759_s24  }
   0x6   :  { %s33_s26 = sshll.u32 %s2760_s25, 4  ;;  %s34_s26 = int_to_ptr.vmem [resolvable:$true] %s33_s26 }
   0x7   :  { %36 = dma.hbm_to_vmem [thread:$0]  %s32_s22, 16, %s34_s26, [#allocation6]  }
   0x8   :  { %2753 = dma.done.wait [#allocation4], 16384  }
   0x9   :  { %2754 = vsyncadd [#allocation4], 4294950912 }
   0xa   :  { %2755 = dma.done.wait [#allocation6], 16  }
   0xb   :  { %2756 = vsyncadd [#allocation6], 4294967280  ;;  %v2507_v0 = vld [vmem:[#allocation3 + $0x38] sm:$0xff]  ;;  %v2506_v4 = vld [vmem:[#allocation3 + $0x30] sm:$0xff] }
   0xc   :  { %v2515_v1 = vld [vmem:[#allocation3 + $0x78] sm:$0xff]  ;;  %351 = vmatpush.bf16.msra.mxu0 %v2507_v0  ;;  %v2514_v5 = vld [vmem:[#allocation3 + $0x70] sm:$0xff]  ;;  %v2505_v8 = vld [vmem:[#allocation3 + $0x28] sm:$0xff] }
   0xd   :  { %v2523_v2 = vld [vmem:[#allocation3 + $0xb8] sm:$0xff]  ;;  %370 = vmatpush.bf16.msra.mxu1 %v2515_v1  ;;  %v2522_v6 = vld [vmem:[#allocation3 + $0xb0] sm:$0xff]  ;;  %v2513_v9 = vld [vmem:[#allocation3 + $0x68] sm:$0xff] }
   0xe   :  { %v2531_v3 = vld [vmem:[#allocation3 + $0xf8] sm:$0xff]  ;;  %389 = vmatpush.bf16.msra.mxu2 %v2523_v2  ;;  %v2530_v7 = vld [vmem:[#allocation3 + $0xf0] sm:$0xff]  ;;  %v2521_v10 = vld [vmem:[#allocation3 + $0xa8] sm:$0xff] }
   0xf   :  { %408 = vmatpush.bf16.msra.mxu3 %v2531_v3  ;;  %v2529_v11 = vld [vmem:[#allocation3 + $0xe8] sm:$0xff]  ;;  %v2504_v12 = vld [vmem:[#allocation3 + $0x20] sm:$0xff]  ;;  %v2503_v16 = vld [vmem:[#allocation3 + $0x18] sm:$0xff] }
  0x10   :  { %352 = vmatpush.bf16.msra.mxu0 %v2506_v4  ;;  %v2512_v13 = vld [vmem:[#allocation3 + $0x60] sm:$0xff]  ;;  %v2511_v17 = vld [vmem:[#allocation3 + $0x58] sm:$0xff]  ;;  %v2502_v20 = vld [vmem:[#allocation3 + $0x10] sm:$0xff] }
  0x11   :  { %371 = vmatpush.bf16.msra.mxu1 %v2514_v5  ;;  %v2520_v14 = vld [vmem:[#allocation3 + $0xa0] sm:$0xff]  ;;  %v2519_v18 = vld [vmem:[#allocation3 + $0x98] sm:$0xff]  ;;  %v2510_v21 = vld [vmem:[#allocation3 + $0x50] sm:$0xff] }
  0x12   :  { %390 = vmatpush.bf16.msra.mxu2 %v2522_v6  ;;  %v2528_v15 = vld [vmem:[#allocation3 + $0xe0] sm:$0xff]  ;;  %v2527_v19 = vld [vmem:[#allocation3 + $0xd8] sm:$0xff]  ;;  %v2518_v22 = vld [vmem:[#allocation3 + $0x90] sm:$0xff] }
  0x13   :  { %409 = vmatpush.bf16.msra.mxu3 %v2530_v7  ;;  %v2526_v23 = vld [vmem:[#allocation3 + $0xd0] sm:$0xff]  ;;  %v2501_v24 = vld [vmem:[#allocation3 + $0x8] sm:$0xff]  ;;  %v2500_v28 = vld [vmem:[#allocation3] sm:$0xff] }
  0x14   :  { %353 = vmatpush.bf16.msra.mxu0 %v2505_v8  ;;  %v2509_v25 = vld [vmem:[#allocation3 + $0x48] sm:$0xff]  ;;  %v2508_v29 = vld [vmem:[#allocation3 + $0x40] sm:$0xff]  ;;  %v2494_v33 = vld [vmem:[%s3113_s0 + $0xc] sm:$0xf0] }
  0x15   :  { %372 = vmatpush.bf16.msra.mxu1 %v2513_v9  ;;  %v2517_v26 = vld [vmem:[#allocation3 + $0x88] sm:$0xff]  ;;  %v2516_v30 = vld [vmem:[#allocation3 + $0x80] sm:$0xff]  ;;  %v1820_v35 = vld [vmem:[%s3113_s0 + $0x10] sm:$0xf0] }
  0x16   :  { %391 = vmatpush.bf16.msra.mxu2 %v2521_v10  ;;  %v2525_v27 = vld [vmem:[#allocation3 + $0xc8] sm:$0xff]  ;;  %v2524_v31 = vld [vmem:[#allocation3 + $0xc0] sm:$0xff]  ;;  %v2495_v37 = vld [vmem:[%s3113_s0 + $0x14] sm:$0xf0] }
  0x17   :  { %410 = vmatpush.bf16.msra.mxu3 %v2529_v11  ;;  %v1818_v32 = vld [vmem:[%s3113_s0] sm:$0xf]  ;;  %v2492_v34 = vld [vmem:[%s3113_s0 + $0x4] sm:$0xf]  ;;  %v1826_v36 = vld [vmem:[%s3113_s0 + $0x8] sm:$0xf] }
  0x18   :  { %354 = vmatpush.bf16.msra.mxu0 %v2504_v12  ;;  %v2493_v38 = vld [vmem:[%s3113_s0 + $0xc] sm:$0xf]  ;;  %v1828_v39 = vld [vmem:[%s3113_s0 + $0x18] sm:$0xf0]  ;;  %v1819_v42 = vor.u32 %v2494_v33, %v1818_v32  ;;  %v1823_v43 = vor.u32 %v2492_v34, %v1820_v35  ;;  %v1827_v44 = vor.u32 %v2495_v37, %v1826_v36  ;;  %v2562_v48 = vld [vmem:[#allocation3 + $0x1b0] sm:$0xff] }
  0x19   :  { %373 = vmatpush.bf16.msra.mxu1 %v2512_v13  ;;  %v2563_v40 = vld [vmem:[#allocation3 + $0x1b8] sm:$0xff]  ;;  %v1831_v45 = vor.u32 %v2493_v38, %v1828_v39  ;;  %v2546_v49 = vld [vmem:[#allocation3 + $0x130] sm:$0xff]  ;;  %v2561_v52 = vld [vmem:[#allocation3 + $0x1a8] sm:$0xff] }
  0x1a   :  { %392 = vmatpush.bf16.msra.mxu2 %v2520_v14  ;;  %v2547_v41 = vld [vmem:[#allocation3 + $0x138] sm:$0xff]  ;;  %v2554_v50 = vld [vmem:[#allocation3 + $0x170] sm:$0xff]  ;;  %v2545_v53 = vld [vmem:[#allocation3 + $0x128] sm:$0xff] }
  0x1b   :  { %411 = vmatpush.bf16.msra.mxu3 %v2528_v15  ;;  %v2555_v46 = vld [vmem:[#allocation3 + $0x178] sm:$0xff]  ;;  %v2570_v51 = vld [vmem:[#allocation3 + $0x1f0] sm:$0xff]  ;;  %v2553_v54 = vld [vmem:[#allocation3 + $0x168] sm:$0xff] }
  0x1c   :  { %355 = vmatpush.bf16.msra.mxu0 %v2503_v16  ;;  %v2571_v47 = vld [vmem:[#allocation3 + $0x1f8] sm:$0xff]  ;;  %v2569_v55 = vld [vmem:[#allocation3 + $0x1e8] sm:$0xff]  ;;  %v2560_v56 = vld [vmem:[#allocation3 + $0x1a0] sm:$0xff] }
  0x1d   :  { %374 = vmatpush.bf16.msra.mxu1 %v2511_v17  ;;  %v2544_v57 = vld [vmem:[#allocation3 + $0x120] sm:$0xff]  ;;  %v2498_v61 = vld [vmem:[%s3113_s0 + $0x2c] sm:$0xf0]  ;;  %v1836_v63 = vld [vmem:[%s3113_s0 + $0x30] sm:$0xf0] }
  0x1e   :  { %393 = vmatpush.bf16.msra.mxu2 %v2519_v18  ;;  %v2552_v58 = vld [vmem:[#allocation3 + $0x160] sm:$0xff]  ;;  %v1842_v0 = vld [vmem:[%s3113_s0 + $0x28] sm:$0xf]  ;;  %v2499_v1 = vld [vmem:[%s3113_s0 + $0x34] sm:$0xf0] }
  0x1f   :  { %412 = vmatpush.bf16.msra.mxu3 %v2527_v19  ;;  %v2568_v59 = vld [vmem:[#allocation3 + $0x1e0] sm:$0xff]  ;;  %v2497_v2 = vld [vmem:[%s3113_s0 + $0x2c] sm:$0xf]  ;;  %v1844_v3 = vld [vmem:[%s3113_s0 + $0x38] sm:$0xf0]  ;;  %v1843_v8 = vor.u32 %v2499_v1, %v1842_v0 }
  0x20   :  { %356 = vmatpush.bf16.msra.mxu0 %v2502_v20  ;;  %v1834_v60 = vld [vmem:[%s3113_s0 + $0x20] sm:$0xf]  ;;  %v2496_v62 = vld [vmem:[%s3113_s0 + $0x24] sm:$0xf]  ;;  %v2559_v4 = vld [vmem:[#allocation3 + $0x198] sm:$0xff]  ;;  %v1847_v9 = vor.u32 %v2497_v2, %v1844_v3 }
  0x21   :  { %375 = vmatpush.bf16.msra.mxu1 %v2510_v21  ;;  %v2543_v5 = vld [vmem:[#allocation3 + $0x118] sm:$0xff]  ;;  %v1835_v6 = vor.u32 %v2498_v61, %v1834_v60  ;;  %v1839_v7 = vor.u32 %v2496_v62, %v1836_v63  ;;  %v2558_v12 = vld [vmem:[#allocation3 + $0x190] sm:$0xff]  ;;  %v2557_v16 = vld [vmem:[#allocation3 + $0x188] sm:$0xff] }
  0x22   :  { %394 = vmatpush.bf16.msra.mxu2 %v2518_v22  ;;  %v2551_v10 = vld [vmem:[#allocation3 + $0x158] sm:$0xff]  ;;  %v2542_v13 = vld [vmem:[#allocation3 + $0x110] sm:$0xff]  ;;  %v2541_v17 = vld [vmem:[#allocation3 + $0x108] sm:$0xff] }
  0x23   :  { %413 = vmatpush.bf16.msra.mxu3 %v2526_v23  ;;  %v2567_v11 = vld [vmem:[#allocation3 + $0x1d8] sm:$0xff]  ;;  %v2550_v14 = vld [vmem:[#allocation3 + $0x150] sm:$0xff]  ;;  %v2549_v18 = vld [vmem:[#allocation3 + $0x148] sm:$0xff] }
  0x24   :  { %357 = vmatpush.bf16.msra.mxu0 %v2501_v24  ;;  %v2566_v15 = vld [vmem:[#allocation3 + $0x1d0] sm:$0xff]  ;;  %v2565_v19 = vld [vmem:[#allocation3 + $0x1c8] sm:$0xff]  ;;  %v2556_v20 = vld [vmem:[#allocation3 + $0x180] sm:$0xff] }
  0x25   :  { %376 = vmatpush.bf16.msra.mxu1 %v2509_v25  ;;  %v2540_v21 = vld [vmem:[#allocation3 + $0x100] sm:$0xff]  ;;  %v2603_v25 = vld [vmem:[#allocation3 + $0x2b8] sm:$0xff]  ;;  %v2533_v32 = vld [vmem:[%s3113_s0 + $0x4c] sm:$0xf] }
  0x26   :  { %395 = vmatpush.bf16.msra.mxu2 %v2517_v26  ;;  %v2548_v22 = vld [vmem:[#allocation3 + $0x140] sm:$0xff]  ;;  %v2587_v26 = vld [vmem:[#allocation3 + $0x238] sm:$0xff]  ;;  %v2602_v37 = vld [vmem:[#allocation3 + $0x2b0] sm:$0xff] }
  0x27   :  { %414 = vmatpush.bf16.msra.mxu3 %v2525_v27  ;;  %v2564_v23 = vld [vmem:[#allocation3 + $0x1c0] sm:$0xff]  ;;  %v2534_v27 = vld [vmem:[%s3113_s0 + $0x4c] sm:$0xf0]  ;;  %v1996_v33 = vld [vmem:[%s3113_s0 + $0x58] sm:$0xf0] }
  0x28   :  { %358 = vmatpush.bf16.msra.mxu0 %v2500_v28  ;;  %v1986_v24 = vld [vmem:[%s3113_s0 + $0x40] sm:$0xf]  ;;  %v2532_v28 = vld [vmem:[%s3113_s0 + $0x44] sm:$0xf]  ;;  %v2595_v34 = vld [vmem:[#allocation3 + $0x278] sm:$0xff] }
  0x29   :  { %377 = vmatpush.bf16.msra.mxu1 %v2508_v29  ;;  %v1988_v29 = vld [vmem:[%s3113_s0 + $0x50] sm:$0xf0]  ;;  %v2611_v35 = vld [vmem:[#allocation3 + $0x2f8] sm:$0xff]  ;;  %v1987_v36 = vor.u32 %v2534_v27, %v1986_v24  ;;  %v2573_v27 = vld [vmem:[%s3113_s0 + $0x8c] sm:$0xf] }
  0x2a   :  { %396 = vmatpush.bf16.msra.mxu2 %v2516_v30  ;;  %v1994_v30 = vld [vmem:[%s3113_s0 + $0x48] sm:$0xf]  ;;  %v1991_v38 = vor.u32 %v2532_v28, %v1988_v29  ;;  %v2583_v60 = vld [vmem:[#allocation3 + $0x218] sm:$0xff]  ;;  %v2598_v1 = vld [vmem:[#allocation3 + $0x290] sm:$0xff] }
  0x2b   :  { %415 = vmatpush.bf16.msra.mxu3 %v2524_v31  ;;  %359 = vmatmul.bf16.vlgmr.msra.gmra.mxu0 %v1819_v42  ;;  %v2535_v31 = vld [vmem:[%s3113_s0 + $0x54] sm:$0xf0]  ;;  %v2594_v42 = vld [vmem:[#allocation3 + $0x270] sm:$0xff]  ;;  %v2012_v61 = vld [vmem:[%s3113_s0 + $0x78] sm:$0xf0] }
  0x2c   :  { %759 = vmatpush.bf16.msrb.mxu0 %v2547_v41  ;;  %378 = vmatmul.bf16.vlgmr.msra.gmra.mxu1 %v1823_v43  ;;  %v1995_v39 = vor.u32 %v2535_v31, %v1994_v30  ;;  %v2586_v41 = vld [vmem:[#allocation3 + $0x230] sm:$0xff]  ;;  %v2591_v62 = vld [vmem:[#allocation3 + $0x258] sm:$0xff] }
  0x2d   :  { %397 = vmatmul.bf16.vlgmr.msra.gmra.mxu2 %v1827_v44  ;;  %778 = vmatpush.bf16.msrb.mxu1 %v2555_v46  ;;  %v2610_v43 = vld [vmem:[#allocation3 + $0x2f0] sm:$0xff]  ;;  %v2601_v44 = vld [vmem:[#allocation3 + $0x2a8] sm:$0xff]  ;;  %v2607_v63 = vld [vmem:[#allocation3 + $0x2d8] sm:$0xff] }
  0x2e   :  { %797 = vmatpush.bf16.msrb.mxu2 %v2563_v40  ;;  %416 = vmatmul.bf16.vlgmr.msra.gmra.mxu3 %v1831_v45  ;;  %v1999_v40 = vor.u32 %v2533_v32, %v1996_v33  ;;  %v2585_v45 = vld [vmem:[#allocation3 + $0x228] sm:$0xff]  ;;  %v2156_v24 = vld [vmem:[%s3113_s0 + $0x90] sm:$0xf0]  ;;  %v2164_v28 = vld [vmem:[%s3113_s0 + $0x98] sm:$0xf0] }
  0x2f   :  { %816 = vmatpush.bf16.msrb.mxu3 %v2571_v47  ;;  %v2593_v46 = vld [vmem:[#allocation3 + $0x268] sm:$0xff]  ;;  %v2634_v30 = vld [vmem:[#allocation3 + $0x370] sm:$0xff]  ;;  %v2167_v33 = vor.u32 %v2573_v27, %v2164_v28  ;;  %v2348_v27 = vld [vmem:[%s3113_s0 + $0xf8] sm:$0xf0] }
  0x30   :  { %760 = vmatpush.bf16.msrb.mxu0 %v2546_v49  ;;  %v2609_v47 = vld [vmem:[#allocation3 + $0x2e8] sm:$0xff]  ;;  %v2584_v49 = vld [vmem:[#allocation3 + $0x220] sm:$0xff] }
  0x31   :  { %779 = vmatpush.bf16.msrb.mxu1 %v2554_v50  ;;  %v2592_v50 = vld [vmem:[#allocation3 + $0x260] sm:$0xff] }
  0x32   :  { %798 = vmatpush.bf16.msrb.mxu2 %v2562_v48  ;;  %v2600_v48 = vld [vmem:[#allocation3 + $0x2a0] sm:$0xff] }
  0x33   :  { %817 = vmatpush.bf16.msrb.mxu3 %v2570_v51  ;;  %v2608_v51 = vld [vmem:[#allocation3 + $0x2e0] sm:$0xff] }
  0x34   :  { %761 = vmatpush.bf16.msrb.mxu0 %v2545_v53  ;;  %v2538_v53 = vld [vmem:[%s3113_s0 + $0x6c] sm:$0xf0] }
  0x35   :  { %780 = vmatpush.bf16.msrb.mxu1 %v2553_v54  ;;  %v2599_v54 = vld [vmem:[#allocation3 + $0x298] sm:$0xff] }
  0x36   :  { %799 = vmatpush.bf16.msrb.mxu2 %v2561_v52  ;;  %v2002_v52 = vld [vmem:[%s3113_s0 + $0x60] sm:$0xf] }
  0x37   :  { %818 = vmatpush.bf16.msrb.mxu3 %v2569_v55  ;;  %v2536_v55 = vld [vmem:[%s3113_s0 + $0x64] sm:$0xf]  ;;  %v2003_v0 = vor.u32 %v2538_v53, %v2002_v52  ;;  %v2577_v52 = vld [vmem:[%s3113_s0 + $0xac] sm:$0xf]  ;;  %v2623_v53 = vld [vmem:[#allocation3 + $0x318] sm:$0xff] }
  0x38   :  { %762 = vmatpush.bf16.msrb.mxu0 %v2544_v57  ;;  %v2010_v57 = vld [vmem:[%s3113_s0 + $0x68] sm:$0xf] }
  0x39   :  { %781 = vmatpush.bf16.msrb.mxu1 %v2552_v58  ;;  %v2539_v58 = vld [vmem:[%s3113_s0 + $0x74] sm:$0xf0] }
  0x3a   :  { %800 = vmatpush.bf16.msrb.mxu2 %v2560_v56  ;;  %v2004_v56 = vld [vmem:[%s3113_s0 + $0x70] sm:$0xf0]  ;;  %v2011_v3 = vor.u32 %v2539_v58, %v2010_v57 }
  0x3b   :  { %819 = vmatpush.bf16.msrb.mxu3 %v2568_v59  ;;  %364 = vmatmul.bf16.gmra.mxu0 %v1835_v6  ;;  %v2537_v59 = vld [vmem:[%s3113_s0 + $0x6c] sm:$0xf]  ;;  %v2007_v2 = vor.u32 %v2536_v55, %v2004_v56  ;;  %v2590_v6 = vld [vmem:[#allocation3 + $0x250] sm:$0xff]  ;;  %v2647_v55 = vld [vmem:[#allocation3 + $0x3d8] sm:$0xff] }
  0x3c   :  { %763 = vmatpush.bf16.msrb.mxu0 %v2543_v5  ;;  %383 = vmatmul.bf16.gmra.mxu1 %v1839_v7  ;;  %v2582_v5 = vld [vmem:[#allocation3 + $0x210] sm:$0xff] }
  0x3d   :  { %402 = vmatmul.bf16.gmra.mxu2 %v1843_v8  ;;  %782 = vmatpush.bf16.msrb.mxu1 %v2551_v10  ;;  %v2606_v7 = vld [vmem:[#allocation3 + $0x2d0] sm:$0xff]  ;;  %v2597_v8 = vld [vmem:[#allocation3 + $0x288] sm:$0xff] }
  0x3e   :  { %801 = vmatpush.bf16.msrb.mxu2 %v2559_v4  ;;  %421 = vmatmul.bf16.gmra.mxu3 %v1847_v9  ;;  %v2015_v4 = vor.u32 %v2537_v59, %v2012_v61  ;;  %v2581_v9 = vld [vmem:[#allocation3 + $0x208] sm:$0xff]  ;;  %v2638_v56 = vld [vmem:[#allocation3 + $0x390] sm:$0xff] }
  0x3f   :  { %820 = vmatpush.bf16.msrb.mxu3 %v2567_v11  ;;  %v2589_v10 = vld [vmem:[#allocation3 + $0x248] sm:$0xff]  ;;  %v2630_v58 = vld [vmem:[#allocation3 + $0x350] sm:$0xff] }
  0x40   :  { %764 = vmatpush.bf16.msrb.mxu0 %v2542_v13  ;;  %v2605_v11 = vld [vmem:[#allocation3 + $0x2c8] sm:$0xff]  ;;  %v2643_v13 = vld [vmem:[#allocation3 + $0x3b8] sm:$0xff] }
  0x41   :  { %783 = vmatpush.bf16.msrb.mxu1 %v2550_v14  ;;  %v2580_v14 = vld [vmem:[#allocation3 + $0x200] sm:$0xff] }
  0x42   :  { %802 = vmatpush.bf16.msrb.mxu2 %v2558_v12  ;;  %v2596_v12 = vld [vmem:[#allocation3 + $0x280] sm:$0xff] }
  0x43   :  { %821 = vmatpush.bf16.msrb.mxu3 %v2566_v15  ;;  %v2588_v15 = vld [vmem:[#allocation3 + $0x240] sm:$0xff] }
  0x44   :  { %765 = vmatpush.bf16.msrb.mxu0 %v2541_v17  ;;  %v2154_v17 = vld [vmem:[%s3113_s0 + $0x80] sm:$0xf] }
  0x45   :  { %784 = vmatpush.bf16.msrb.mxu1 %v2549_v18  ;;  %v2574_v18 = vld [vmem:[%s3113_s0 + $0x8c] sm:$0xf0] }
  0x46   :  { %803 = vmatpush.bf16.msrb.mxu2 %v2557_v16  ;;  %v2604_v16 = vld [vmem:[#allocation3 + $0x2c0] sm:$0xff]  ;;  %v2155_v29 = vor.u32 %v2574_v18, %v2154_v17 }
  0x47   :  { %822 = vmatpush.bf16.msrb.mxu3 %v2565_v19  ;;  %v2627_v19 = vld [vmem:[#allocation3 + $0x338] sm:$0xff] }
  0x48   :  { %766 = vmatpush.bf16.msrb.mxu0 %v2540_v21  ;;  %v2572_v21 = vld [vmem:[%s3113_s0 + $0x84] sm:$0xf] }
  0x49   :  { %785 = vmatpush.bf16.msrb.mxu1 %v2548_v22  ;;  %v2651_v22 = vld [vmem:[#allocation3 + $0x3f8] sm:$0xff]  ;;  %v2159_v31 = vor.u32 %v2572_v21, %v2156_v24  ;;  %v2618_v21 = vld [vmem:[%s3113_s0 + $0xec] sm:$0xf0]  ;;  %v2346_v24 = vld [vmem:[%s3113_s0 + $0xe8] sm:$0xf] }
  0x4a   :  { %804 = vmatpush.bf16.msrb.mxu2 %v2556_v20  ;;  %v2635_v20 = vld [vmem:[#allocation3 + $0x378] sm:$0xff] }
  0x4b   :  { %823 = vmatpush.bf16.msrb.mxu3 %v2564_v23  ;;  %767 = vmatmul.bf16.vlgmr.msrb.gmra.mxu0 %v1987_v36  ;;  %v2642_v23 = vld [vmem:[#allocation3 + $0x3b0] sm:$0xff]  ;;  %v2641_v36 = vld [vmem:[#allocation3 + $0x3a8] sm:$0xff] }
  0x4c   :  { %1170 = vmatpush.bf16.msra.mxu0 %v2587_v26  ;;  %786 = vmatmul.bf16.vlgmr.msrb.gmra.mxu1 %v1991_v38  ;;  %v2575_v26 = vld [vmem:[%s3113_s0 + $0x94] sm:$0xf0]  ;;  %v2625_v38 = vld [vmem:[#allocation3 + $0x328] sm:$0xff] }
  0x4d   :  { %1189 = vmatpush.bf16.msra.mxu1 %v2595_v34  ;;  %805 = vmatmul.bf16.vlgmr.msrb.gmra.mxu2 %v1995_v39  ;;  %v2626_v34 = vld [vmem:[#allocation3 + $0x330] sm:$0xff]  ;;  %v2649_v39 = vld [vmem:[#allocation3 + $0x3e8] sm:$0xff] }
  0x4e   :  { %1208 = vmatpush.bf16.msra.mxu2 %v2603_v25  ;;  %824 = vmatmul.bf16.vlgmr.msrb.gmra.mxu3 %v1999_v40  ;;  %v2162_v25 = vld [vmem:[%s3113_s0 + $0x88] sm:$0xf]  ;;  %v2640_v40 = vld [vmem:[#allocation3 + $0x3a0] sm:$0xff] }
  0x4f   :  { %1227 = vmatpush.bf16.msra.mxu3 %v2611_v35  ;;  %v2163_v32 = vor.u32 %v2575_v26, %v2162_v25  ;;  %v2650_v35 = vld [vmem:[#allocation3 + $0x3f0] sm:$0xff]  ;;  %v2619_v25 = vld [vmem:[%s3113_s0 + $0xf4] sm:$0xf0]  ;;  %v2617_v26 = vld [vmem:[%s3113_s0 + $0xec] sm:$0xf] }
  0x50   :  { %1171 = vmatpush.bf16.msra.mxu0 %v2586_v41  ;;  %v2632_v41 = vld [vmem:[#allocation3 + $0x360] sm:$0xff] }
  0x51   :  { %1190 = vmatpush.bf16.msra.mxu1 %v2594_v42  ;;  %v2624_v42 = vld [vmem:[#allocation3 + $0x320] sm:$0xff] }
  0x52   :  { %1209 = vmatpush.bf16.msra.mxu2 %v2602_v37  ;;  %v2633_v37 = vld [vmem:[#allocation3 + $0x368] sm:$0xff] }
  0x53   :  { %1228 = vmatpush.bf16.msra.mxu3 %v2610_v43  ;;  %v2648_v43 = vld [vmem:[#allocation3 + $0x3e0] sm:$0xff] }
  0x54   :  { %1172 = vmatpush.bf16.msra.mxu0 %v2585_v45  ;;  %v2170_v45 = vld [vmem:[%s3113_s0 + $0xa0] sm:$0xf] }
  0x55   :  { %1191 = vmatpush.bf16.msra.mxu1 %v2593_v46  ;;  %v2578_v46 = vld [vmem:[%s3113_s0 + $0xac] sm:$0xf0] }
  0x56   :  { %1210 = vmatpush.bf16.msra.mxu2 %v2601_v44  ;;  %v2639_v44 = vld [vmem:[#allocation3 + $0x398] sm:$0xff]  ;;  %v2171_v57 = vor.u32 %v2578_v46, %v2170_v45 }
  0x57   :  { %1229 = vmatpush.bf16.msra.mxu3 %v2609_v47  ;;  %v2631_v47 = vld [vmem:[#allocation3 + $0x358] sm:$0xff] }
  0x58   :  { %1173 = vmatpush.bf16.msra.mxu0 %v2584_v49  ;;  %v2172_v49 = vld [vmem:[%s3113_s0 + $0xb0] sm:$0xf0] }
  0x59   :  { %1192 = vmatpush.bf16.msra.mxu1 %v2592_v50  ;;  %v2178_v50 = vld [vmem:[%s3113_s0 + $0xa8] sm:$0xf] }
  0x5a   :  { %1211 = vmatpush.bf16.msra.mxu2 %v2600_v48  ;;  %v2576_v48 = vld [vmem:[%s3113_s0 + $0xa4] sm:$0xf] }
  0x5b   :  { %1230 = vmatpush.bf16.msra.mxu3 %v2608_v51  ;;  %772 = vmatmul.bf16.gmra.mxu0 %v2003_v0  ;;  %v2579_v51 = vld [vmem:[%s3113_s0 + $0xb4] sm:$0xf0]  ;;  %v2175_v59 = vor.u32 %v2576_v48, %v2172_v49  ;;  %v2637_v0 = vld [vmem:[#allocation3 + $0x388] sm:$0xff] }
  0x5c   :  { %1174 = vmatpush.bf16.msra.mxu0 %v2583_v60  ;;  %791 = vmatmul.bf16.gmra.mxu1 %v2007_v2  ;;  %v2179_v60 = vor.u32 %v2579_v51, %v2178_v50  ;;  %v2621_v2 = vld [vmem:[#allocation3 + $0x308] sm:$0xff] }
  0x5d   :  { %1193 = vmatpush.bf16.msra.mxu1 %v2591_v62  ;;  %810 = vmatmul.bf16.gmra.mxu2 %v2011_v3  ;;  %v2622_v62 = vld [vmem:[#allocation3 + $0x310] sm:$0xff]  ;;  %v2645_v3 = vld [vmem:[#allocation3 + $0x3c8] sm:$0xff] }
  0x5e   :  { %1212 = vmatpush.bf16.msra.mxu2 %v2599_v54  ;;  %829 = vmatmul.bf16.gmra.mxu3 %v2015_v4  ;;  %v2180_v54 = vld [vmem:[%s3113_s0 + $0xb8] sm:$0xf0]  ;;  %v2636_v4 = vld [vmem:[#allocation3 + $0x380] sm:$0xff] }
  0x5f   :  { %1231 = vmatpush.bf16.msra.mxu3 %v2607_v63  ;;  %v2183_v61 = vor.u32 %v2577_v52, %v2180_v54  ;;  %v2646_v63 = vld [vmem:[#allocation3 + $0x3d0] sm:$0xff] }
  0x60   :  { %1175 = vmatpush.bf16.msra.mxu0 %v2582_v5  ;;  %v2628_v5 = vld [vmem:[#allocation3 + $0x340] sm:$0xff] }
  0x61   :  { %1194 = vmatpush.bf16.msra.mxu1 %v2590_v6  ;;  %v2620_v6 = vld [vmem:[#allocation3 + $0x300] sm:$0xff] }
  0x62   :  { %1213 = vmatpush.bf16.msra.mxu2 %v2598_v1  ;;  %v2629_v1 = vld [vmem:[#allocation3 + $0x348] sm:$0xff] }
  0x63   :  { %1232 = vmatpush.bf16.msra.mxu3 %v2606_v7  ;;  %v2644_v7 = vld [vmem:[#allocation3 + $0x3c0] sm:$0xff] }
  0x64   :  { %1176 = vmatpush.bf16.msra.mxu0 %v2581_v9  ;;  %v2614_v9 = vld [vmem:[%s3113_s0 + $0xcc] sm:$0xf0] }
  0x65   :  { %1195 = vmatpush.bf16.msra.mxu1 %v2589_v10  ;;  %v2612_v10 = vld [vmem:[%s3113_s0 + $0xc4] sm:$0xf] }
  0x66   :  { %1214 = vmatpush.bf16.msra.mxu2 %v2597_v8  ;;  %v2322_v8 = vld [vmem:[%s3113_s0 + $0xc0] sm:$0xf] }
  0x67   :  { %1233 = vmatpush.bf16.msra.mxu3 %v2605_v11  ;;  %v2324_v11 = vld [vmem:[%s3113_s0 + $0xd0] sm:$0xf0] }
  0x68   :  { %1177 = vmatpush.bf16.msra.mxu0 %v2580_v14  ;;  %v2613_v14 = vld [vmem:[%s3113_s0 + $0xcc] sm:$0xf]  ;;  %v2327_v17 = vor.u32 %v2612_v10, %v2324_v11 }
  0x69   :  { %1196 = vmatpush.bf16.msra.mxu1 %v2588_v15  ;;  %v2332_v15 = vld [vmem:[%s3113_s0 + $0xd8] sm:$0xf0] }
  0x6a   :  { %1215 = vmatpush.bf16.msra.mxu2 %v2596_v12  ;;  %v2330_v12 = vld [vmem:[%s3113_s0 + $0xc8] sm:$0xf] }
  0x6b   :  { %1234 = vmatpush.bf16.msra.mxu3 %v2604_v16  ;;  %1178 = vmatmul.bf16.vlgmr.msra.gmra.mxu0 %v2155_v29  ;;  %v2323_v16 = vor.u32 %v2614_v9, %v2322_v8 }
  0x6c   :  { %1581 = vmatpush.bf16.msrb.mxu0 %v2627_v19  ;;  %1197 = vmatmul.bf16.vlgmr.msra.gmra.mxu1 %v2159_v31  ;;  %v2335_v19 = vor.u32 %v2613_v14, %v2332_v15  ;;  %v2351_v31 = vor.u32 %v2617_v26, %v2348_v27 }
  0x6d   :  { %1600 = vmatpush.bf16.msrb.mxu1 %v2635_v20  ;;  %1216 = vmatmul.bf16.vlgmr.msra.gmra.mxu2 %v2163_v32  ;;  %v2338_v20 = vld [vmem:[%s3113_s0 + $0xe0] sm:$0xf] }
  0x6e   :  { %1619 = vmatpush.bf16.msrb.mxu2 %v2643_v13  ;;  %1235 = vmatmul.bf16.vlgmr.msra.gmra.mxu3 %v2167_v33  ;;  %v2615_v13 = vld [vmem:[%s3113_s0 + $0xd4] sm:$0xf0]  ;;  %v2339_v28 = vor.u32 %v2618_v21, %v2338_v20 }
  0x6f   :  { %1638 = vmatpush.bf16.msrb.mxu3 %v2651_v22  ;;  %v2331_v18 = vor.u32 %v2615_v13, %v2330_v12  ;;  %v2616_v22 = vld [vmem:[%s3113_s0 + $0xe4] sm:$0xf] }
  0x70   :  { %1582 = vmatpush.bf16.msrb.mxu0 %v2626_v34 }
  0x71   :  { %1601 = vmatpush.bf16.msrb.mxu1 %v2634_v30  ;;  %v2347_v30 = vor.u32 %v2619_v25, %v2346_v24 }
  0x72   :  { %1620 = vmatpush.bf16.msrb.mxu2 %v2642_v23  ;;  %v2340_v23 = vld [vmem:[%s3113_s0 + $0xf0] sm:$0xf0] }
  0x73   :  { %1639 = vmatpush.bf16.msrb.mxu3 %v2650_v35  ;;  %v2343_v29 = vor.u32 %v2616_v22, %v2340_v23 }
  0x74   :  { %1583 = vmatpush.bf16.msrb.mxu0 %v2625_v38 }
  0x75   :  { %1602 = vmatpush.bf16.msrb.mxu1 %v2633_v37 }
  0x76   :  { %1621 = vmatpush.bf16.msrb.mxu2 %v2641_v36 }
  0x77   :  { %1640 = vmatpush.bf16.msrb.mxu3 %v2649_v39 }
  0x78   :  { %1584 = vmatpush.bf16.msrb.mxu0 %v2624_v42 }
  0x79   :  { %1603 = vmatpush.bf16.msrb.mxu1 %v2632_v41 }
  0x7a   :  { %1622 = vmatpush.bf16.msrb.mxu2 %v2640_v40 }
  0x7b   :  { %1641 = vmatpush.bf16.msrb.mxu3 %v2648_v43  ;;  %1183 = vmatmul.bf16.gmra.mxu0 %v2171_v57 }
  0x7c   :  { %1585 = vmatpush.bf16.msrb.mxu0 %v2623_v53  ;;  %1202 = vmatmul.bf16.gmra.mxu1 %v2175_v59 }
  0x7d   :  { %1604 = vmatpush.bf16.msrb.mxu1 %v2631_v47  ;;  %1221 = vmatmul.bf16.gmra.mxu2 %v2179_v60 }
  0x7e   :  { %1623 = vmatpush.bf16.msrb.mxu2 %v2639_v44  ;;  %1240 = vmatmul.bf16.gmra.mxu3 %v2183_v61 }
  0x7f   :  { %1642 = vmatpush.bf16.msrb.mxu3 %v2647_v55 }
  0x80   :  { %1586 = vmatpush.bf16.msrb.mxu0 %v2622_v62 }
  0x81   :  { %1605 = vmatpush.bf16.msrb.mxu1 %v2630_v58 }
  0x82   :  { %1624 = vmatpush.bf16.msrb.mxu2 %v2638_v56 }
  0x83   :  { %1643 = vmatpush.bf16.msrb.mxu3 %v2646_v63 }
  0x84   :  { %1587 = vmatpush.bf16.msrb.mxu0 %v2621_v2 }
  0x85   :  { %1606 = vmatpush.bf16.msrb.mxu1 %v2629_v1 }
  0x86   :  { %1625 = vmatpush.bf16.msrb.mxu2 %v2637_v0 }
  0x87   :  { %1644 = vmatpush.bf16.msrb.mxu3 %v2645_v3 }
  0x88   :  { %1588 = vmatpush.bf16.msrb.mxu0 %v2620_v6 }
  0x89   :  { %1607 = vmatpush.bf16.msrb.mxu1 %v2628_v5 }
  0x8a   :  { %1626 = vmatpush.bf16.msrb.mxu2 %v2636_v4 }
  0x8b   :  { %1645 = vmatpush.bf16.msrb.mxu3 %v2644_v7  ;;  %1589 = vmatmul.bf16.vlgmr.msrb.gmra.mxu0 %v2323_v16 }
  0x8c   :  { %1608 = vmatmul.bf16.vlgmr.msrb.gmra.mxu1 %v2327_v17 }
  0x8d   :  { %1627 = vmatmul.bf16.vlgmr.msrb.gmra.mxu2 %v2331_v18 }
  0x8e   :  { %1646 = vmatmul.bf16.vlgmr.msrb.gmra.mxu3 %v2335_v19 }
  0x9b   :  { %1594 = vmatmul.bf16.gmra.mxu0 %v2339_v28 }
  0x9c   :  { %1613 = vmatmul.bf16.gmra.mxu1 %v2343_v29 }
  0x9d   :  { %1632 = vmatmul.bf16.gmra.mxu2 %v2347_v30 }
  0x9e   :  { %1651 = vmatmul.bf16.gmra.mxu3 %v2351_v31 }
  0xa8   :  { %v360_v32 = vpop.f32.mrf.mxu0 }
  0xa9   :  { %v379_v33 = vpop.f32.mrf.mxu1 }
  0xaa   :  { %v380_v34 = vadd.f32 %v379_v33, %v360_v32 }
  0xb0   :  { %v398_v35 = vpop.f32.mrf.mxu2  ;;  %v362_v38 = vpop.f32.mrf.mxu0 }
  0xb1   :  { %v417_v36 = vpop.f32.mrf.mxu3  ;;  %v399_v37 = vadd.f32 %v398_v35, %v380_v34  ;;  %v381_v39 = vpop.f32.mrf.mxu1 }
  0xb2   :  { %v382_v40 = vadd.f32 %v381_v39, %v362_v38 }
  0xb3   :  { %v2984_v41 = vadd.f32 %v417_v36, %v399_v37 }
  0xb5   :  { %v440_v49 = vmul.f32 %v2984_v41, %v2984_v41 }
  0xb8   :  { %v400_v42 = vpop.f32.mrf.mxu2  ;;  %v365_v45 = vpop.f32.mrf.mxu0 }
  0xb9   :  { %v419_v43 = vpop.f32.mrf.mxu3  ;;  %v401_v44 = vadd.f32 %v400_v42, %v382_v40  ;;  %v384_v46 = vpop.f32.mrf.mxu1 }
  0xba   :  { %v385_v47 = vadd.f32 %v384_v46, %v365_v45 }
  0xbb   :  { %v2986_v48 = vadd.f32 %v419_v43, %v401_v44 }
  0xbd   :  { %v431_v50 = vadd.f32 %v2986_v48, %v2984_v41  ;;  %v441_v51 = vmul.f32 %v2986_v48, %v2986_v48 }
  0xbf   :  { %v444_v52 = vadd.f32 %v441_v51, %v440_v49 }
  0xc0   :  { %v403_v53 = vpop.f32.mrf.mxu2  ;;  %v367_v56 = vpop.f32.mrf.mxu0 }
  0xc1   :  { %v422_v54 = vpop.f32.mrf.mxu3  ;;  %v404_v55 = vadd.f32 %v403_v53, %v385_v47  ;;  %v386_v57 = vpop.f32.mrf.mxu1 }
  0xc2   :  { %v387_v58 = vadd.f32 %v386_v57, %v367_v56 }
  0xc3   :  { %v2994_v59 = vadd.f32 %v422_v54, %v404_v55 }
  0xc5   :  { %v432_v60 = vadd.f32 %v431_v50, %v2994_v59  ;;  %v442_v61 = vmul.f32 %v2994_v59, %v2994_v59 }
  0xc7   :  { %v445_v62 = vadd.f32 %v444_v52, %v442_v61 }
  0xc8   :  { %v405_v63 = vpop.f32.mrf.mxu2  ;;  %v768_v2 = vpop.f32.mrf.mxu0 }
  0xc9   :  { %v424_v0 = vpop.f32.mrf.mxu3  ;;  %v406_v1 = vadd.f32 %v405_v63, %v387_v58  ;;  %v787_v3 = vpop.f32.mrf.mxu1 }
  0xca   :  { %v788_v5 = vadd.f32 %v787_v3, %v768_v2 }
  0xcb   :  { %v2999_v4 = vadd.f32 %v424_v0, %v406_v1 }
  0xcd   :  { %v433_v6 = vadd.f32 %v432_v60, %v2999_v4  ;;  %v443_v7 = vmul.f32 %v2999_v4, %v2999_v4 }
  0xcf   :  { %v446_v8 = vadd.f32 %v445_v62, %v443_v7  ;;  %v434_v33 = vrot.slane %v433_v6, 4 }
  0xd0   :  { %v806_v9 = vpop.f32.mrf.mxu2  ;;  %v770_v12 = vpop.f32.mrf.mxu0 }
  0xd1   :  { %v807_v10 = vadd.f32 %v806_v9, %v788_v5  ;;  %v825_v11 = vpop.f32.mrf.mxu3  ;;  %v789_v13 = vpop.f32.mrf.mxu1  ;;  %v447_v36 = vrot.slane %v446_v8, 4  ;;  %v435_v40 = vadd.f32 %v434_v33, %v433_v6 }
  0xd2   :  { %v790_v15 = vadd.f32 %v789_v13, %v770_v12 }
  0xd3   :  { %v3004_v14 = vadd.f32 %v825_v11, %v807_v10  ;;  %v448_v46 = vadd.f32 %v447_v36, %v446_v8  ;;  %v436_v49 = vrot.slane %v435_v40, 2 }
  0xd5   :  { %v849_v23 = vmul.f32 %v3004_v14, %v3004_v14  ;;  %v449_v52 = vrot.slane %v448_v46, 2  ;;  %v437_v56 = vadd.f32 %v436_v49, %v435_v40 }
  0xd7   :  { %v450_v63 = vadd.f32 %v449_v52, %v448_v46  ;;  %v438_v2 = vrot.slane %v437_v56, 1 }
  0xd8   :  { %v808_v16 = vpop.f32.mrf.mxu2  ;;  %v773_v19 = vpop.f32.mrf.mxu0 }
  0xd9   :  { %v809_v17 = vadd.f32 %v808_v16, %v790_v15  ;;  %v827_v18 = vpop.f32.mrf.mxu3  ;;  %v792_v20 = vpop.f32.mrf.mxu1  ;;  %v451_v6 = vrot.slane %v450_v63, 1  ;;  %v439_v10 = vadd.f32 %v438_v2, %v437_v56 }
  0xda   :  { %v793_v22 = vadd.f32 %v792_v20, %v773_v19 }
  0xdb   :  { %v3006_v21 = vadd.f32 %v827_v18, %v809_v17  ;;  %v452_v17 = vadd.f32 %v451_v6, %v450_v63 }
  0xdd   :  { %v840_v24 = vadd.f32 %v3006_v21, %v3004_v14  ;;  %v850_v25 = vmul.f32 %v3006_v21, %v3006_v21 }
  0xdf   :  { %v853_v26 = vadd.f32 %v850_v25, %v849_v23 }
  0xe0   :  { %v811_v27 = vpop.f32.mrf.mxu2  ;;  %v775_v30 = vpop.f32.mrf.mxu0 }
  0xe1   :  { %v812_v28 = vadd.f32 %v811_v27, %v793_v22  ;;  %v830_v29 = vpop.f32.mrf.mxu3  ;;  %v794_v31 = vpop.f32.mrf.mxu1 }
  0xe2   :  { %v795_v38 = vadd.f32 %v794_v31, %v775_v30 }
  0xe3   :  { %v3014_v32 = vadd.f32 %v830_v29, %v812_v28 }
  0xe5   :  { %v841_v34 = vadd.f32 %v840_v24, %v3014_v32  ;;  %v851_v35 = vmul.f32 %v3014_v32, %v3014_v32 }
  0xe7   :  { %v854_v37 = vadd.f32 %v853_v26, %v851_v35 }
  0xe8   :  { %v813_v39 = vpop.f32.mrf.mxu2  ;;  %v1179_v44 = vpop.f32.mrf.mxu0 }
  0xe9   :  { %v814_v42 = vadd.f32 %v813_v39, %v795_v38  ;;  %v832_v43 = vpop.f32.mrf.mxu3  ;;  %v1198_v45 = vpop.f32.mrf.mxu1 }
  0xea   :  { %v1199_v30 = vadd.f32 %v1198_v45, %v1179_v44 }
  0xeb   :  { %v3019_v47 = vadd.f32 %v832_v43, %v814_v42 }
  0xed   :  { %v842_v50 = vadd.f32 %v841_v34, %v3019_v47  ;;  %v852_v51 = vmul.f32 %v3019_v47, %v3019_v47 }
  0xef   :  { %v843_v53 = vrot.slane %v842_v50, 4  ;;  %v855_v54 = vadd.f32 %v854_v37, %v852_v51 }
  0xf0   :  { %v1217_v55 = vpop.f32.mrf.mxu2  ;;  %v1181_v61 = vpop.f32.mrf.mxu0 }
  0xf1   :  { %v844_v57 = vadd.f32 %v843_v53, %v842_v50  ;;  %v856_v58 = vrot.slane %v855_v54, 4  ;;  %v1236_v60 = vpop.f32.mrf.mxu3  ;;  %v1200_v62 = vpop.f32.mrf.mxu1  ;;  %v1218_v36 = vadd.f32 %v1217_v55, %v1199_v30 }
  0xf2   :  { %v1201_v31 = vadd.f32 %v1200_v62, %v1181_v61 }
  0xf3   :  { %v845_v0 = vrot.slane %v844_v57, 2  ;;  %v857_v1 = vadd.f32 %v856_v58, %v855_v54  ;;  %v3030_v49 = vadd.f32 %v1236_v60, %v1218_v36 }
  0xf5   :  { %v846_v3 = vadd.f32 %v845_v0, %v844_v57  ;;  %v858_v5 = vrot.slane %v857_v1, 2  ;;  %v1260_v53 = vmul.f32 %v3030_v49, %v3030_v49 }
  0xf7   :  { %v847_v7 = vrot.slane %v846_v3, 1  ;;  %v859_v8 = vadd.f32 %v858_v5, %v857_v1 }
  0xf8   :  { %v1219_v9 = vpop.f32.mrf.mxu2  ;;  %v1184_v15 = vpop.f32.mrf.mxu0 }
  0xf9   :  { %v848_v11 = vadd.f32 %v847_v7, %v846_v3  ;;  %v860_v12 = vrot.slane %v859_v8, 1  ;;  %v1238_v13 = vpop.f32.mrf.mxu3  ;;  %v1203_v16 = vpop.f32.mrf.mxu1  ;;  %v1220_v34 = vadd.f32 %v1219_v9, %v1201_v31 }
  0xfa   :  { %v1204_v33 = vadd.f32 %v1203_v16, %v1184_v15 }
  0xfb   :  { %v861_v18 = vadd.f32 %v860_v12, %v859_v8  ;;  %v3024_v19 = vadd.f32 %v848_v11, %v439_v10  ;;  %v3028_v43 = vadd.f32 %v1238_v13, %v1220_v34 }
  0xfd   :  { %v3026_v20 = vadd.f32 %v861_v18, %v452_v17  ;;  %v1261_v44 = vmul.f32 %v3028_v43, %v3028_v43  ;;  %v1251_v51 = vadd.f32 %v3028_v43, %v3030_v49 }
  0xff   :  { %v1264_v60 = vadd.f32 %v1261_v44, %v1260_v53 }
 0x100   :  { %v1222_v22 = vpop.f32.mrf.mxu2  ;;  %v1186_v24 = vpop.f32.mrf.mxu0 }
 0x101   :  { %v1241_v23 = vpop.f32.mrf.mxu3  ;;  %v1205_v25 = vpop.f32.mrf.mxu1  ;;  %v1223_v37 = vadd.f32 %v1222_v22, %v1204_v33 }
 0x102   :  { %v1206_v38 = vadd.f32 %v1205_v25, %v1186_v24 }
 0x103   :  { %v3032_v50 = vadd.f32 %v1241_v23, %v1223_v37 }
 0x105   :  { %v1262_v54 = vmul.f32 %v3032_v50, %v3032_v50  ;;  %v1252_v56 = vadd.f32 %v1251_v51, %v3032_v50 }
 0x107   :  { %v1265_v63 = vadd.f32 %v1264_v60, %v1262_v54 }
 0x108   :  { %v1224_v26 = vpop.f32.mrf.mxu2  ;;  %v1590_v28 = vpop.f32.mrf.mxu0 }
 0x109   :  { %v1243_v27 = vpop.f32.mrf.mxu3  ;;  %v1609_v29 = vpop.f32.mrf.mxu1  ;;  %v1225_v46 = vadd.f32 %v1224_v26, %v1206_v38 }
 0x10a   :  { %v1610_v0 = vadd.f32 %v1609_v29, %v1590_v28 }
 0x10b   :  { %v3036_v45 = vadd.f32 %v1243_v27, %v1225_v46 }
 0x10d   :  { %v1263_v61 = vmul.f32 %v3036_v45, %v3036_v45  ;;  %v1253_v62 = vadd.f32 %v1252_v56, %v3036_v45 }
 0x10f   :  { %v1266_v3 = vadd.f32 %v1265_v63, %v1263_v61  ;;  %v1254_v6 = vrot.slane %v1253_v62, 4 }
 0x110   :  { %v1628_v35 = vpop.f32.mrf.mxu2  ;;  %v1592_v40 = vpop.f32.mrf.mxu0 }
 0x111   :  { %v1647_v39 = vpop.f32.mrf.mxu3  ;;  %v1611_v42 = vpop.f32.mrf.mxu1  ;;  %v1629_v8 = vadd.f32 %v1628_v35, %v1610_v0  ;;  %v1267_v11 = vrot.slane %v1266_v3, 4  ;;  %v1255_v13 = vadd.f32 %v1254_v6, %v1253_v62 }
 0x112   :  { %v1612_v1 = vadd.f32 %v1611_v42, %v1592_v40 }
 0x113   :  { %v3050_v17 = vadd.f32 %v1647_v39, %v1629_v8  ;;  %v1268_v22 = vadd.f32 %v1267_v11, %v1266_v3  ;;  %v1256_v25 = vrot.slane %v1255_v13, 2 }
 0x115   :  { %v1671_v27 = vmul.f32 %v3050_v17, %v3050_v17  ;;  %v1269_v33 = vrot.slane %v1268_v22, 2  ;;  %v1257_v37 = vadd.f32 %v1256_v25, %v1255_v13 }
 0x117   :  { %v1270_v42 = vadd.f32 %v1269_v33, %v1268_v22  ;;  %v1258_v51 = vrot.slane %v1257_v37, 1 }
 0x118   :  { %v1630_v52 = vpop.f32.mrf.mxu2  ;;  %v1595_v57 = vpop.f32.mrf.mxu0 }
 0x119   :  { %v1649_v55 = vpop.f32.mrf.mxu3  ;;  %v1614_v58 = vpop.f32.mrf.mxu1  ;;  %v1631_v5 = vadd.f32 %v1630_v52, %v1612_v1  ;;  %v1271_v54 = vrot.slane %v1270_v42, 1 }
 0x11a   :  { %v1615_v2 = vadd.f32 %v1614_v58, %v1595_v57  ;;  %v1259_v57 = vadd.f32 %v1258_v51, %v1257_v37 }
 0x11b   :  { %v3048_v12 = vadd.f32 %v1649_v55, %v1631_v5  ;;  %v1272_v61 = vadd.f32 %v1271_v54, %v1270_v42 }
 0x11c   :  { %v1273_v0 = vadd.f32 %v1259_v57, %v3024_v19 }
 0x11d   :  { %v1672_v23 = vmul.f32 %v3048_v12, %v3048_v12  ;;  %v1662_v28 = vadd.f32 %v3048_v12, %v3050_v17  ;;  %v1274_v3 = vadd.f32 %v1272_v61, %v3026_v20 }
 0x11f   :  { %v1675_v34 = vadd.f32 %v1672_v23, %v1671_v27 }
 0x120   :  { %v1633_v7 = vpop.f32.mrf.mxu2  ;;  %v1597_v15 = vpop.f32.mrf.mxu0 }
 0x121   :  { %v1634_v9 = vadd.f32 %v1633_v7, %v1615_v2  ;;  %v1652_v10 = vpop.f32.mrf.mxu3  ;;  %v1616_v16 = vpop.f32.mrf.mxu1 }
 0x122   :  { %v1617_v24 = vadd.f32 %v1616_v16, %v1597_v15 }
 0x123   :  { %v3052_v18 = vadd.f32 %v1652_v10, %v1634_v9 }
 0x125   :  { %v1673_v29 = vmul.f32 %v3052_v18, %v3052_v18  ;;  %v1663_v35 = vadd.f32 %v1662_v28, %v3052_v18  ;;  %v1704_v28 = vld [vmem:[%s3116_s3] sm:$0x1] }
 0x127   :  { %v1676_v38 = vadd.f32 %v1675_v34, %v1673_v29 }
 0x128   :  { %v1635_v26 = vpop.f32.mrf.mxu2 }
 0x129   :  { %v1636_v30 = vadd.f32 %v1635_v26, %v1617_v24  ;;  %v1654_v31 = vpop.f32.mrf.mxu3  ;;  %v1702_v26 = vld [vmem:[#allocation5] sm:$0x1] }
 0x12b   :  { %v3063_v36 = vadd.f32 %v1654_v31, %v1636_v30 }
 0x12d   :  { %v1664_v39 = vadd.f32 %v1663_v35, %v3063_v36  ;;  %v1674_v40 = vmul.f32 %v3063_v36, %v3063_v36 }
 0x12f   :  { %v1665_v46 = vrot.slane %v1664_v39, 4  ;;  %v1677_v44 = vadd.f32 %v1676_v38, %v1674_v40 }
 0x131   :  { %v1666_v52 = vadd.f32 %v1665_v46, %v1664_v39  ;;  %v1678_v53 = vrot.slane %v1677_v44, 4 }
 0x133   :  { %v1667_v55 = vrot.slane %v1666_v52, 2  ;;  %v1679_v56 = vadd.f32 %v1678_v53, %v1677_v44 }
 0x135   :  { %v1668_v58 = vadd.f32 %v1667_v55, %v1666_v52  ;;  %v1680_v60 = vrot.slane %v1679_v56, 2 }
 0x137   :  { %v1669_v62 = vrot.slane %v1668_v58, 1  ;;  %v1681_v63 = vadd.f32 %v1680_v60, %v1679_v56 }
 0x139   :  { %v1670_v1 = vadd.f32 %v1669_v62, %v1668_v58  ;;  %v1682_v2 = vrot.slane %v1681_v63, 1 }
 0x13b   :  { %v1683_v5 = vadd.f32 %v1682_v2, %v1681_v63  ;;  %v1684_v6 = vadd.f32 %v1670_v1, %v1273_v0 }
 0x13d   :  { %v1685_v7 = vadd.f32 %v1683_v5, %v1274_v3  ;;  %v1686_v8 = vmul.f32 0.0078125, %v1684_v6 }
 0x13f   :  { %v1687_v9 = vmul.f32 0.0078125, %v1685_v7  ;;  %v1688_v10 = vmul.f32 %v1686_v8, %v1686_v8 }
 0x141   :  { %v1689_v11 = vsub.f32 %v1687_v9, %v1688_v10 }
 0x143   :  { %v1690_v13 = vmax.f32 %v1689_v11, 0.0 }
 0x145   :  { %v1691_v15 = vadd.f32 1e-05, %v1690_v13 }
 0x147   :  { %2703 = vrsqrt.f32 %v1691_v15  ;;  %vm1698_vm1 = vweird.f32 %v1691_v15 }
 0x14d   :  { %v2704_v16 = vpop.eup %2703 }
 0x14e   :  { %v1693_v22 = vmul.f32 %v2704_v16, %v1691_v15  ;;  %vm1699_vm0 = vweird.f32 %v2704_v16 }
 0x14f   :  { %vm1700_vm2 = vmor %vm1698_vm1, %vm1699_vm0 }
 0x150   :  { %v1694_v23 = vmul.f32 %v2704_v16, %v1693_v22 }
 0x152   :  { %v1695_v24 = vmul.f32 0.5, %v1694_v23 }
 0x154   :  { %v1696_v25 = vsub.f32 1.5, %v1695_v24 }
 0x156   :  { %v1697_v19 = vmul.f32 %v2704_v16, %v1696_v25 }
 0x158   :  { %v1701_v20 = vsel %vm1700_vm2, %v2704_v16, %v1697_v19 }
 0x159   :  { %v1703_v27 = vmul.f32 %v1702_v26, %v1701_v20 }
 0x15b   :  { %v1705_v29 = vmul.f32 %v1703_v27, %v1686_v8  ;;  %v1711_v30 = vperm.slane %v1703_v27, 0 }
 0x15d   :  { %v1706_v31 = vsub.f32 %v1704_v28, %v1705_v29  ;;  %v1712_v33 = vmul.f32 %v1711_v30, %v2984_v41  ;;  %v1713_v34 = vmul.f32 %v1711_v30, %v2986_v48  ;;  %v1714_v35 = vmul.f32 %v1711_v30, %v2994_v59 }
 0x15e   :  { %v1715_v37 = vmul.f32 %v1711_v30, %v2999_v4  ;;  %v1739_v38 = vmul.f32 %v1711_v30, %v3004_v14  ;;  %v1740_v39 = vmul.f32 %v1711_v30, %v3006_v21  ;;  %v1741_v40 = vmul.f32 %v1711_v30, %v3014_v32 }
 0x15f   :  { %v1717_v42 = vperm.slane %v1706_v31, 0  ;;  %v1742_v46 = vmul.f32 %v1711_v30, %v3019_v47  ;;  %v1764_v44 = vmul.f32 %v1711_v30, %v3030_v49  ;;  %v1765_v51 = vmul.f32 %v1711_v30, %v3028_v43 }
 0x160   :  { %v1766_v41 = vmul.f32 %v1711_v30, %v3032_v50  ;;  %v1767_v48 = vmul.f32 %v1711_v30, %v3036_v45  ;;  %v1789_v59 = vmul.f32 %v1711_v30, %v3050_v17  ;;  %v1790_v4 = vmul.f32 %v1711_v30, %v3048_v12 }
 0x161   :  { %v1719_v14 = vadd.f32 %v1717_v42, %v1712_v33  ;;  %v1720_v52 = vadd.f32 %v1717_v42, %v1713_v34  ;;  %v1721_v21 = vadd.f32 %v1717_v42, %v1714_v35  ;;  %v1722_v53 = vadd.f32 %v1717_v42, %v1715_v37 }
 0x162   :  { %v1743_v32 = vadd.f32 %v1739_v38, %v1717_v42  ;;  %v1744_v54 = vadd.f32 %v1740_v39, %v1717_v42  ;;  %v1745_v55 = vadd.f32 %v1741_v40, %v1717_v42  ;;  %v1746_v47 = vadd.f32 %v1742_v46, %v1717_v42 }
 0x163   :  { %v1723_v56 = vmax.f32 %v1719_v14, 0.0  ;;  %v1724_v49 = vmax.f32 %v1720_v52, 0.0  ;;  %v1725_v57 = vmax.f32 %v1721_v21, 0.0  ;;  %v1726_v43 = vmax.f32 %v1722_v53, 0.0 }
 0x164   :  { %v1747_v58 = vmax.f32 %v1743_v32, 0.0  ;;  %v1748_v50 = vmax.f32 %v1744_v54, 0.0  ;;  %v1749_v60 = vmax.f32 %v1745_v55, 0.0  ;;  %v1750_v45 = vmax.f32 %v1746_v47, 0.0 }
 0x165   :  { %v2655_v61 = vpack.c.bf16 %v1724_v49, %v1723_v56  ;;  %v2660_v17 = vpack.c.bf16 %v1726_v43, %v1725_v57  ;;  %v1768_v62 = vadd.f32 %v1764_v44, %v1717_v42  ;;  %v1769_v12 = vadd.f32 %v1765_v51, %v1717_v42 }
 0x166   :  { %v2665_v63 = vpack.c.bf16 %v1748_v50, %v1747_v58  ;;  %v2670_v0 = vpack.c.bf16 %v1750_v45, %v1749_v60  ;;  %v1770_v1 = vadd.f32 %v1766_v41, %v1717_v42  ;;  %v1771_v2 = vadd.f32 %v1767_v48, %v1717_v42 }
 0x167   :  { %2656 = vst [vmem:[%s3117_s4] sm:$0xff] %v2655_v61   ;;  %v1772_v3 = vmax.f32 %v1768_v62, 0.0  ;;  %v1773_v5 = vmax.f32 %v1769_v12, 0.0  ;;  %v1791_v6 = vmul.f32 %v1711_v30, %v3052_v18  ;;  %v1792_v7 = vmul.f32 %v1711_v30, %v3063_v36 }
 0x168   :  { %2692 = vst [vmem:[%s3117_s4 + $0x8] sm:$0xff] %v2660_v17   ;;  %v1774_v8 = vmax.f32 %v1770_v1, 0.0  ;;  %v1775_v9 = vmax.f32 %v1771_v2, 0.0  ;;  %v1793_v10 = vadd.f32 %v1789_v59, %v1717_v42  ;;  %v1794_v11 = vadd.f32 %v1790_v4, %v1717_v42 }
 0x169   :  { %2693 = vst [vmem:[%s3117_s4 + $0x10] sm:$0xff] %v2665_v63   ;;  %v2675_v13 = vpack.c.bf16 %v1773_v5, %v1772_v3  ;;  %v1795_v15 = vadd.f32 %v1791_v6, %v1717_v42  ;;  %v1796_v16 = vadd.f32 %v1792_v7, %v1717_v42 }
 0x16a   :  { %2694 = vst [vmem:[%s3117_s4 + $0x18] sm:$0xff] %v2670_v0   ;;  %v2680_v18 = vpack.c.bf16 %v1775_v9, %v1774_v8  ;;  %v1797_v36 = vmax.f32 %v1793_v10, 0.0  ;;  %v1798_v22 = vmax.f32 %v1794_v11, 0.0 }
 0x16b   :  { %2695 = vst [vmem:[%s3117_s4 + $0x20] sm:$0xff] %v2675_v13   ;;  %v1799_v23 = vmax.f32 %v1795_v15, 0.0  ;;  %v1800_v24 = vmax.f32 %v1796_v16, 0.0 }
 0x16c   :  { %2696 = vst [vmem:[%s3117_s4 + $0x28] sm:$0xff] %v2680_v18   ;;  %v2685_v25 = vpack.c.bf16 %v1798_v22, %v1797_v36 }
 0x16d   :  { %v2690_v19 = vpack.c.bf16 %v1800_v24, %v1799_v23 }
 0x16e   :  { %2697 = vst [vmem:[%s3117_s4 + $0x30] sm:$0xff] %v2685_v25  }
 0x16f   :  { %2698 = vst [vmem:[%s3117_s4 + $0x38] sm:$0xff] %v2690_v19  }
 0x170   :  { %1814 = vsyncpa [#allocation4], 1 }
 0x171   :  { %1815 = vsyncpa [#allocation6], 1 }

// kernel: _lambda_.6
= control target key start
LH: loop header
LB: loop body
LE: loop exit
PB: predicated region body
PF: predicated region fallthrough
CT: control target
= control target key end

     0   :  { %s4393_s1 = inlined_call_operand.vmem [shape: bf16[4,256,128], index: 1, kind: input, shape index: {}]   ;;  %s4394_s0 = inlined_call_operand.vmem [shape: bf16[4,128,256], index: 0, kind: input, shape index: {}]   ;;  %s4395_s2 = inlined_call_operand.vmem [shape: f32[1,128], index: 2, kind: input, shape index: {}]   ;;  %s4396_s3 = inlined_call_operand.vmem [shape: f32[1,128], index: 3, kind: input, shape index: {}]   ;;  %s4397_s4 = inlined_call_operand.vmem [shape: bf16[4,128,128], index: 4, kind: output, shape index: {}]  }
   0x1   :  { %v2759_v0 = vld [vmem:[%s4393_s1 + $0x38] sm:$0xff]  ;;  %v2758_v4 = vld [vmem:[%s4393_s1 + $0x30] sm:$0xff]  ;;  %v2757_v8 = vld [vmem:[%s4393_s1 + $0x28] sm:$0xff] }
   0x2   :  { %v2767_v1 = vld [vmem:[%s4393_s1 + $0x78] sm:$0xff]  ;;  %241 = vmatpush.bf16.msra.mxu0 %v2759_v0  ;;  %v2766_v5 = vld [vmem:[%s4393_s1 + $0x70] sm:$0xff]  ;;  %v2765_v9 = vld [vmem:[%s4393_s1 + $0x68] sm:$0xff] }
   0x3   :  { %v2791_v2 = vld [vmem:[%s4393_s1 + $0xb8] sm:$0xff]  ;;  %290 = vmatpush.bf16.msra.mxu1 %v2767_v1  ;;  %v2790_v6 = vld [vmem:[%s4393_s1 + $0xb0] sm:$0xff]  ;;  %v2789_v10 = vld [vmem:[%s4393_s1 + $0xa8] sm:$0xff] }
   0x4   :  { %v2799_v3 = vld [vmem:[%s4393_s1 + $0xf8] sm:$0xff]  ;;  %639 = vmatpush.bf16.msra.mxu2 %v2791_v2  ;;  %v2798_v7 = vld [vmem:[%s4393_s1 + $0xf0] sm:$0xff]  ;;  %v2797_v11 = vld [vmem:[%s4393_s1 + $0xe8] sm:$0xff] }
   0x5   :  { %688 = vmatpush.bf16.msra.mxu3 %v2799_v3  ;;  %v2756_v12 = vld [vmem:[%s4393_s1 + $0x20] sm:$0xff]  ;;  %v2755_v16 = vld [vmem:[%s4393_s1 + $0x18] sm:$0xff]  ;;  %v2754_v20 = vld [vmem:[%s4393_s1 + $0x10] sm:$0xff] }
   0x6   :  { %242 = vmatpush.bf16.msra.mxu0 %v2758_v4  ;;  %v2764_v13 = vld [vmem:[%s4393_s1 + $0x60] sm:$0xff]  ;;  %v2763_v17 = vld [vmem:[%s4393_s1 + $0x58] sm:$0xff]  ;;  %v2762_v21 = vld [vmem:[%s4393_s1 + $0x50] sm:$0xff] }
   0x7   :  { %291 = vmatpush.bf16.msra.mxu1 %v2766_v5  ;;  %v2788_v14 = vld [vmem:[%s4393_s1 + $0xa0] sm:$0xff]  ;;  %v2787_v18 = vld [vmem:[%s4393_s1 + $0x98] sm:$0xff]  ;;  %v2786_v22 = vld [vmem:[%s4393_s1 + $0x90] sm:$0xff] }
   0x8   :  { %640 = vmatpush.bf16.msra.mxu2 %v2790_v6  ;;  %v2796_v15 = vld [vmem:[%s4393_s1 + $0xe0] sm:$0xff]  ;;  %v2795_v19 = vld [vmem:[%s4393_s1 + $0xd8] sm:$0xff]  ;;  %v2794_v23 = vld [vmem:[%s4393_s1 + $0xd0] sm:$0xff] }
   0x9   :  { %689 = vmatpush.bf16.msra.mxu3 %v2798_v7  ;;  %v2753_v24 = vld [vmem:[%s4393_s1 + $0x8] sm:$0xff]  ;;  %v2752_v28 = vld [vmem:[%s4393_s1] sm:$0xff]  ;;  %v2855_v40 = vld [vmem:[%s4393_s1 + $0x1b8] sm:$0xff] }
   0xa   :  { %243 = vmatpush.bf16.msra.mxu0 %v2757_v8  ;;  %v2761_v25 = vld [vmem:[%s4393_s1 + $0x48] sm:$0xff]  ;;  %v2760_v29 = vld [vmem:[%s4393_s1 + $0x40] sm:$0xff]  ;;  %v2863_v41 = vld [vmem:[%s4393_s1 + $0x1f8] sm:$0xff] }
   0xb   :  { %292 = vmatpush.bf16.msra.mxu1 %v2765_v9  ;;  %v2785_v26 = vld [vmem:[%s4393_s1 + $0x88] sm:$0xff]  ;;  %v2784_v30 = vld [vmem:[%s4393_s1 + $0x80] sm:$0xff]  ;;  %v2823_v46 = vld [vmem:[%s4393_s1 + $0x138] sm:$0xff] }
   0xc   :  { %641 = vmatpush.bf16.msra.mxu2 %v2789_v10  ;;  %v2793_v27 = vld [vmem:[%s4393_s1 + $0xc8] sm:$0xff]  ;;  %v2792_v31 = vld [vmem:[%s4393_s1 + $0xc0] sm:$0xff]  ;;  %v2831_v47 = vld [vmem:[%s4393_s1 + $0x178] sm:$0xff] }
   0xd   :  { %690 = vmatpush.bf16.msra.mxu3 %v2797_v11  ;;  %v2034_v32 = vld [vmem:[%s4394_s0] sm:$0xf]  ;;  %v2737_v33 = vld [vmem:[%s4394_s0 + $0x4] sm:$0xf0]  ;;  %v2736_v34 = vld [vmem:[%s4394_s0 + $0x4] sm:$0xf] }
   0xe   :  { %244 = vmatpush.bf16.msra.mxu0 %v2756_v12  ;;  %v2036_v35 = vld [vmem:[%s4394_s0 + $0x8] sm:$0xf0]  ;;  %v2210_v36 = vld [vmem:[%s4394_s0 + $0x80] sm:$0xf]  ;;  %v2769_v37 = vld [vmem:[%s4394_s0 + $0x84] sm:$0xf0]  ;;  %v2035_v42 = vor.u32 %v2737_v33, %v2034_v32 }
   0xf   :  { %293 = vmatpush.bf16.msra.mxu1 %v2764_v13  ;;  %v2768_v38 = vld [vmem:[%s4394_s0 + $0x84] sm:$0xf]  ;;  %v2212_v39 = vld [vmem:[%s4394_s0 + $0x88] sm:$0xf0]  ;;  %v2039_v43 = vor.u32 %v2736_v34, %v2036_v35  ;;  %v2211_v44 = vor.u32 %v2769_v37, %v2210_v36  ;;  %v2854_v48 = vld [vmem:[%s4393_s1 + $0x1b0] sm:$0xff] }
  0x10   :  { %642 = vmatpush.bf16.msra.mxu2 %v2788_v14  ;;  %v2215_v45 = vor.u32 %v2768_v38, %v2212_v39  ;;  %v2862_v49 = vld [vmem:[%s4393_s1 + $0x1f0] sm:$0xff]  ;;  %v2853_v52 = vld [vmem:[%s4393_s1 + $0x1a8] sm:$0xff]  ;;  %v2739_v57 = vld [vmem:[%s4394_s0 + $0x14] sm:$0xf0] }
  0x11   :  { %691 = vmatpush.bf16.msra.mxu3 %v2796_v15  ;;  %v2822_v50 = vld [vmem:[%s4393_s1 + $0x130] sm:$0xff]  ;;  %v2861_v53 = vld [vmem:[%s4393_s1 + $0x1e8] sm:$0xff]  ;;  %v2044_v59 = vld [vmem:[%s4394_s0 + $0x18] sm:$0xf0] }
  0x12   :  { %245 = vmatpush.bf16.msra.mxu0 %v2755_v16  ;;  %v2830_v51 = vld [vmem:[%s4393_s1 + $0x170] sm:$0xff]  ;;  %v2821_v54 = vld [vmem:[%s4393_s1 + $0x128] sm:$0xff]  ;;  %v2771_v61 = vld [vmem:[%s4394_s0 + $0x94] sm:$0xf0] }
  0x13   :  { %294 = vmatpush.bf16.msra.mxu1 %v2763_v17  ;;  %v2829_v55 = vld [vmem:[%s4393_s1 + $0x168] sm:$0xff]  ;;  %v2042_v56 = vld [vmem:[%s4394_s0 + $0x10] sm:$0xf]  ;;  %v2738_v58 = vld [vmem:[%s4394_s0 + $0x14] sm:$0xf] }
  0x14   :  { %643 = vmatpush.bf16.msra.mxu2 %v2787_v18  ;;  %v2218_v60 = vld [vmem:[%s4394_s0 + $0x90] sm:$0xf]  ;;  %v2770_v62 = vld [vmem:[%s4394_s0 + $0x94] sm:$0xf]  ;;  %v2220_v63 = vld [vmem:[%s4394_s0 + $0x98] sm:$0xf0]  ;;  %v2043_v0 = vor.u32 %v2739_v57, %v2042_v56  ;;  %v2047_v1 = vor.u32 %v2738_v58, %v2044_v59 }
  0x15   :  { %692 = vmatpush.bf16.msra.mxu3 %v2795_v19  ;;  %v2219_v2 = vor.u32 %v2771_v61, %v2218_v60  ;;  %v2223_v3 = vor.u32 %v2770_v62, %v2220_v63  ;;  %v2852_v4 = vld [vmem:[%s4393_s1 + $0x1a0] sm:$0xff]  ;;  %v2741_v9 = vld [vmem:[%s4394_s0 + $0x24] sm:$0xf0]  ;;  %v2052_v11 = vld [vmem:[%s4394_s0 + $0x28] sm:$0xf0] }
  0x16   :  { %246 = vmatpush.bf16.msra.mxu0 %v2754_v20  ;;  %v2860_v5 = vld [vmem:[%s4393_s1 + $0x1e0] sm:$0xff]  ;;  %v2773_v13 = vld [vmem:[%s4394_s0 + $0xa4] sm:$0xf0]  ;;  %v2228_v15 = vld [vmem:[%s4394_s0 + $0xa8] sm:$0xf0] }
  0x17   :  { %295 = vmatpush.bf16.msra.mxu1 %v2762_v21  ;;  %v2820_v6 = vld [vmem:[%s4393_s1 + $0x120] sm:$0xff]  ;;  %v2851_v20 = vld [vmem:[%s4393_s1 + $0x198] sm:$0xff]  ;;  %v2850_v36 = vld [vmem:[%s4393_s1 + $0x190] sm:$0xff] }
  0x18   :  { %644 = vmatpush.bf16.msra.mxu2 %v2786_v22  ;;  %v2828_v7 = vld [vmem:[%s4393_s1 + $0x160] sm:$0xff]  ;;  %v2859_v21 = vld [vmem:[%s4393_s1 + $0x1d8] sm:$0xff]  ;;  %v2858_v37 = vld [vmem:[%s4393_s1 + $0x1d0] sm:$0xff] }
  0x19   :  { %693 = vmatpush.bf16.msra.mxu3 %v2794_v23  ;;  %v2050_v8 = vld [vmem:[%s4394_s0 + $0x20] sm:$0xf]  ;;  %v2740_v10 = vld [vmem:[%s4394_s0 + $0x24] sm:$0xf]  ;;  %v2819_v22 = vld [vmem:[%s4393_s1 + $0x118] sm:$0xff] }
  0x1a   :  { %247 = vmatpush.bf16.msra.mxu0 %v2753_v24  ;;  %v2226_v12 = vld [vmem:[%s4394_s0 + $0xa0] sm:$0xf]  ;;  %v2772_v14 = vld [vmem:[%s4394_s0 + $0xa4] sm:$0xf]  ;;  %v2051_v16 = vor.u32 %v2741_v9, %v2050_v8  ;;  %v2055_v17 = vor.u32 %v2740_v10, %v2052_v11  ;;  %v2827_v23 = vld [vmem:[%s4393_s1 + $0x158] sm:$0xff] }
  0x1b   :  { %296 = vmatpush.bf16.msra.mxu1 %v2761_v25  ;;  %v2227_v18 = vor.u32 %v2773_v13, %v2226_v12  ;;  %v2231_v19 = vor.u32 %v2772_v14, %v2228_v15  ;;  %v2058_v24 = vld [vmem:[%s4394_s0 + $0x30] sm:$0xf]  ;;  %v2743_v25 = vld [vmem:[%s4394_s0 + $0x34] sm:$0xf0]  ;;  %v2746_v58 = vld [vmem:[%s4394_s0 + $0x54] sm:$0xf] }
  0x1c   :  { %645 = vmatpush.bf16.msra.mxu2 %v2785_v26  ;;  %v2742_v26 = vld [vmem:[%s4394_s0 + $0x34] sm:$0xf]  ;;  %v2059_v32 = vor.u32 %v2743_v25, %v2058_v24  ;;  %v2074_v56 = vld [vmem:[%s4394_s0 + $0x50] sm:$0xf]  ;;  %v2747_v57 = vld [vmem:[%s4394_s0 + $0x54] sm:$0xf0] }
  0x1d   :  { %694 = vmatpush.bf16.msra.mxu3 %v2793_v27  ;;  %v2060_v27 = vld [vmem:[%s4394_s0 + $0x38] sm:$0xf0]  ;;  %v2818_v38 = vld [vmem:[%s4393_s1 + $0x110] sm:$0xff]  ;;  %v2779_v61 = vld [vmem:[%s4394_s0 + $0xd4] sm:$0xf0] }
  0x1e   :  { %248 = vmatpush.bf16.msra.mxu0 %v2752_v28  ;;  %v2234_v28 = vld [vmem:[%s4394_s0 + $0xb0] sm:$0xf]  ;;  %v2063_v33 = vor.u32 %v2742_v26, %v2060_v27  ;;  %v2076_v59 = vld [vmem:[%s4394_s0 + $0x58] sm:$0xf0]  ;;  %v2778_v62 = vld [vmem:[%s4394_s0 + $0xd4] sm:$0xf] }
  0x1f   :  { %297 = vmatpush.bf16.msra.mxu1 %v2760_v29  ;;  %v2775_v29 = vld [vmem:[%s4394_s0 + $0xb4] sm:$0xf0]  ;;  %v2826_v39 = vld [vmem:[%s4393_s1 + $0x150] sm:$0xff]  ;;  %v2252_v63 = vld [vmem:[%s4394_s0 + $0xd8] sm:$0xf0] }
  0x20   :  { %646 = vmatpush.bf16.msra.mxu2 %v2784_v30  ;;  %v2774_v30 = vld [vmem:[%s4394_s0 + $0xb4] sm:$0xf]  ;;  %v2235_v34 = vor.u32 %v2775_v29, %v2234_v28  ;;  %v2250_v60 = vld [vmem:[%s4394_s0 + $0xd0] sm:$0xf]  ;;  %v2082_v8 = vld [vmem:[%s4394_s0 + $0x60] sm:$0xf] }
  0x21   :  { %695 = vmatpush.bf16.msra.mxu3 %v2792_v31  ;;  %249 = vmatmul.bf16.vlgmr.msra.gmra.mxu0 %v2035_v42  ;;  %v2236_v31 = vld [vmem:[%s4394_s0 + $0xb8] sm:$0xf0]  ;;  %v2744_v42 = vld [vmem:[%s4394_s0 + $0x44] sm:$0xf]  ;;  %v2749_v9 = vld [vmem:[%s4394_s0 + $0x64] sm:$0xf0] }
  0x22   :  { %298 = vmatmul.bf16.vlgmr.msra.gmra.mxu1 %v2039_v43  ;;  %1040 = vmatpush.bf16.msrb.mxu0 %v2823_v46  ;;  %v2239_v35 = vor.u32 %v2774_v30, %v2236_v31  ;;  %v2068_v43 = vld [vmem:[%s4394_s0 + $0x48] sm:$0xf0]  ;;  %v2776_v46 = vld [vmem:[%s4394_s0 + $0xc4] sm:$0xf]  ;;  %v2258_v12 = vld [vmem:[%s4394_s0 + $0xe0] sm:$0xf] }
  0x23   :  { %647 = vmatmul.bf16.vlgmr.msra.gmra.mxu2 %v2211_v44  ;;  %1089 = vmatpush.bf16.msrb.mxu1 %v2831_v47  ;;  %v2242_v44 = vld [vmem:[%s4394_s0 + $0xc0] sm:$0xf]  ;;  %v2244_v47 = vld [vmem:[%s4394_s0 + $0xc8] sm:$0xf0]  ;;  %v2748_v10 = vld [vmem:[%s4394_s0 + $0x64] sm:$0xf] }
  0x24   :  { %1441 = vmatpush.bf16.msrb.mxu2 %v2855_v40  ;;  %696 = vmatmul.bf16.vlgmr.msra.gmra.mxu3 %v2215_v45  ;;  %v2066_v40 = vld [vmem:[%s4394_s0 + $0x40] sm:$0xf]  ;;  %v2777_v45 = vld [vmem:[%s4394_s0 + $0xc4] sm:$0xf0]  ;;  %v2084_v11 = vld [vmem:[%s4394_s0 + $0x68] sm:$0xf0] }
  0x25   :  { %1490 = vmatpush.bf16.msrb.mxu3 %v2863_v41  ;;  %v2745_v41 = vld [vmem:[%s4394_s0 + $0x44] sm:$0xf0]  ;;  %v2780_v14 = vld [vmem:[%s4394_s0 + $0xe4] sm:$0xf]  ;;  %v2260_v15 = vld [vmem:[%s4394_s0 + $0xe8] sm:$0xf0] }
  0x26   :  { %1041 = vmatpush.bf16.msrb.mxu0 %v2822_v50  ;;  %v2243_v50 = vor.u32 %v2777_v45, %v2242_v44  ;;  %v2781_v13 = vld [vmem:[%s4394_s0 + $0xe4] sm:$0xf0]  ;;  %v2266_v24 = vld [vmem:[%s4394_s0 + $0xf0] sm:$0xf]  ;;  %v2783_v25 = vld [vmem:[%s4394_s0 + $0xf4] sm:$0xf0] }
  0x27   :  { %1090 = vmatpush.bf16.msrb.mxu1 %v2830_v51  ;;  %v2247_v51 = vor.u32 %v2776_v46, %v2244_v47  ;;  %v2782_v26 = vld [vmem:[%s4394_s0 + $0xf4] sm:$0xf]  ;;  %v2268_v27 = vld [vmem:[%s4394_s0 + $0xf8] sm:$0xf0]  ;;  %v2267_v30 = vor.u32 %v2783_v25, %v2266_v24 }
  0x28   :  { %1442 = vmatpush.bf16.msrb.mxu2 %v2854_v48  ;;  %v2067_v48 = vor.u32 %v2745_v41, %v2066_v40  ;;  %v2271_v31 = vor.u32 %v2782_v26, %v2268_v27 }
  0x29   :  { %1491 = vmatpush.bf16.msrb.mxu3 %v2862_v49  ;;  %v2071_v49 = vor.u32 %v2744_v42, %v2068_v43 }
  0x2a   :  { %1042 = vmatpush.bf16.msrb.mxu0 %v2821_v54  ;;  %v2817_v54 = vld [vmem:[%s4393_s1 + $0x108] sm:$0xff] }
  0x2b   :  { %1091 = vmatpush.bf16.msrb.mxu1 %v2829_v55  ;;  %v2825_v55 = vld [vmem:[%s4393_s1 + $0x148] sm:$0xff] }
  0x2c   :  { %1443 = vmatpush.bf16.msrb.mxu2 %v2853_v52  ;;  %v2849_v52 = vld [vmem:[%s4393_s1 + $0x188] sm:$0xff] }
  0x2d   :  { %1492 = vmatpush.bf16.msrb.mxu3 %v2861_v53  ;;  %v2857_v53 = vld [vmem:[%s4393_s1 + $0x1c8] sm:$0xff] }
  0x2e   :  { %1043 = vmatpush.bf16.msrb.mxu0 %v2820_v6  ;;  %v2816_v6 = vld [vmem:[%s4393_s1 + $0x100] sm:$0xff] }
  0x2f   :  { %1092 = vmatpush.bf16.msrb.mxu1 %v2828_v7  ;;  %v2824_v7 = vld [vmem:[%s4393_s1 + $0x140] sm:$0xff] }
  0x30   :  { %1444 = vmatpush.bf16.msrb.mxu2 %v2852_v4  ;;  %v2848_v4 = vld [vmem:[%s4393_s1 + $0x180] sm:$0xff] }
  0x31   :  { %254 = vmatmul.bf16.gmra.mxu0 %v2043_v0  ;;  %1493 = vmatpush.bf16.msrb.mxu3 %v2860_v5  ;;  %v2075_v0 = vor.u32 %v2747_v57, %v2074_v56  ;;  %v2856_v5 = vld [vmem:[%s4393_s1 + $0x1c0] sm:$0xff]  ;;  %v2396_v56 = vld [vmem:[%s4394_s0 + $0x118] sm:$0xf0]  ;;  %v2570_v57 = vld [vmem:[%s4394_s0 + $0x190] sm:$0xf] }
  0x32   :  { %303 = vmatmul.bf16.gmra.mxu1 %v2047_v1  ;;  %1044 = vmatpush.bf16.msrb.mxu0 %v2819_v22  ;;  %v2079_v1 = vor.u32 %v2746_v58, %v2076_v59  ;;  %v2750_v22 = vld [vmem:[%s4394_s0 + $0x74] sm:$0xf]  ;;  %v2835_v58 = vld [vmem:[%s4394_s0 + $0x194] sm:$0xf0] }
  0x33   :  { %652 = vmatmul.bf16.gmra.mxu2 %v2219_v2  ;;  %1093 = vmatpush.bf16.msrb.mxu1 %v2827_v23  ;;  %v2251_v2 = vor.u32 %v2779_v61, %v2250_v60  ;;  %v2092_v23 = vld [vmem:[%s4394_s0 + $0x78] sm:$0xf0]  ;;  %v2834_v59 = vld [vmem:[%s4394_s0 + $0x194] sm:$0xf] }
  0x34   :  { %701 = vmatmul.bf16.gmra.mxu3 %v2223_v3  ;;  %1445 = vmatpush.bf16.msrb.mxu2 %v2851_v20  ;;  %v2255_v3 = vor.u32 %v2778_v62, %v2252_v63  ;;  %v2090_v20 = vld [vmem:[%s4394_s0 + $0x70] sm:$0xf]  ;;  %v2095_v29 = vor.u32 %v2750_v22, %v2092_v23  ;;  %v2572_v60 = vld [vmem:[%s4394_s0 + $0x198] sm:$0xf0] }
  0x35   :  { %1494 = vmatpush.bf16.msrb.mxu3 %v2859_v21  ;;  %v2751_v21 = vld [vmem:[%s4394_s0 + $0x74] sm:$0xf0] }
  0x36   :  { %1045 = vmatpush.bf16.msrb.mxu0 %v2818_v38  ;;  %v2091_v28 = vor.u32 %v2751_v21, %v2090_v20  ;;  %v2832_v38 = vld [vmem:[%s4394_s0 + $0x184] sm:$0xf]  ;;  %v2580_v20 = vld [vmem:[%s4394_s0 + $0x1a8] sm:$0xf0] }
  0x37   :  { %1094 = vmatpush.bf16.msrb.mxu1 %v2826_v39  ;;  %v2564_v39 = vld [vmem:[%s4394_s0 + $0x188] sm:$0xf0] }
  0x38   :  { %1446 = vmatpush.bf16.msrb.mxu2 %v2850_v36  ;;  %v2562_v36 = vld [vmem:[%s4394_s0 + $0x180] sm:$0xf]  ;;  %v2567_v45 = vor.u32 %v2832_v38, %v2564_v39  ;;  %v2807_v38 = vld [vmem:[%s4394_s0 + $0x134] sm:$0xf0]  ;;  %v2806_v39 = vld [vmem:[%s4394_s0 + $0x134] sm:$0xf] }
  0x39   :  { %1495 = vmatpush.bf16.msrb.mxu3 %v2858_v37  ;;  %v2833_v37 = vld [vmem:[%s4394_s0 + $0x184] sm:$0xf0] }
  0x3a   :  { %1046 = vmatpush.bf16.msrb.mxu0 %v2817_v54  ;;  %v2563_v44 = vor.u32 %v2833_v37, %v2562_v36  ;;  %v2803_v54 = vld [vmem:[%s4394_s0 + $0x114] sm:$0xf0]  ;;  %v2410_v37 = vld [vmem:[%s4394_s0 + $0x130] sm:$0xf] }
  0x3b   :  { %1095 = vmatpush.bf16.msrb.mxu1 %v2825_v55  ;;  %v2802_v55 = vld [vmem:[%s4394_s0 + $0x114] sm:$0xf] }
  0x3c   :  { %1447 = vmatpush.bf16.msrb.mxu2 %v2849_v52 }
  0x3d   :  { %1496 = vmatpush.bf16.msrb.mxu3 %v2857_v53  ;;  %v2394_v53 = vld [vmem:[%s4394_s0 + $0x110] sm:$0xf] }
  0x3e   :  { %1047 = vmatpush.bf16.msrb.mxu0 %v2816_v6  ;;  %v2395_v63 = vor.u32 %v2803_v54, %v2394_v53 }
  0x3f   :  { %1096 = vmatpush.bf16.msrb.mxu1 %v2824_v7 }
  0x40   :  { %1448 = vmatpush.bf16.msrb.mxu2 %v2848_v4  ;;  %v2571_v4 = vor.u32 %v2835_v58, %v2570_v57 }
  0x41   :  { %259 = vmatmul.bf16.gmra.mxu0 %v2051_v16  ;;  %1497 = vmatpush.bf16.msrb.mxu3 %v2856_v5  ;;  %v2083_v16 = vor.u32 %v2749_v9, %v2082_v8  ;;  %v2575_v5 = vor.u32 %v2834_v59, %v2572_v60 }
  0x42   :  { %308 = vmatmul.bf16.gmra.mxu1 %v2055_v17  ;;  %v2087_v17 = vor.u32 %v2748_v10, %v2084_v11 }
  0x43   :  { %657 = vmatmul.bf16.gmra.mxu2 %v2227_v18  ;;  %v2259_v18 = vor.u32 %v2781_v13, %v2258_v12  ;;  %v2402_v13 = vld [vmem:[%s4394_s0 + $0x120] sm:$0xf] }
  0x44   :  { %706 = vmatmul.bf16.gmra.mxu3 %v2231_v19  ;;  %v2263_v19 = vor.u32 %v2780_v14, %v2260_v15  ;;  %v2805_v14 = vld [vmem:[%s4394_s0 + $0x124] sm:$0xf0]  ;;  %v2804_v15 = vld [vmem:[%s4394_s0 + $0x124] sm:$0xf] }
  0x45   :  { %v2403_v23 = vor.u32 %v2805_v14, %v2402_v13 }
  0x51   :  { %264 = vmatmul.bf16.gmra.mxu0 %v2059_v32  ;;  %v2386_v32 = vld [vmem:[%s4394_s0 + $0x100] sm:$0xf] }
  0x52   :  { %313 = vmatmul.bf16.gmra.mxu1 %v2063_v33  ;;  %v2801_v33 = vld [vmem:[%s4394_s0 + $0x104] sm:$0xf0] }
  0x53   :  { %662 = vmatmul.bf16.gmra.mxu2 %v2235_v34  ;;  %v2800_v34 = vld [vmem:[%s4394_s0 + $0x104] sm:$0xf]  ;;  %v2387_v40 = vor.u32 %v2801_v33, %v2386_v32 }
  0x54   :  { %711 = vmatmul.bf16.gmra.mxu3 %v2239_v35  ;;  %v2388_v35 = vld [vmem:[%s4394_s0 + $0x108] sm:$0xf0] }
  0x55   :  { %v2391_v41 = vor.u32 %v2800_v34, %v2388_v35 }
  0x61   :  { %269 = vmatmul.bf16.gmra.mxu0 %v2067_v48 }
  0x62   :  { %318 = vmatmul.bf16.gmra.mxu1 %v2071_v49 }
  0x63   :  { %667 = vmatmul.bf16.gmra.mxu2 %v2243_v50 }
  0x64   :  { %716 = vmatmul.bf16.gmra.mxu3 %v2247_v51 }
  0x71   :  { %274 = vmatmul.bf16.gmra.mxu0 %v2075_v0  ;;  %v2399_v0 = vor.u32 %v2802_v55, %v2396_v56 }
  0x72   :  { %323 = vmatmul.bf16.gmra.mxu1 %v2079_v1 }
  0x73   :  { %672 = vmatmul.bf16.gmra.mxu2 %v2251_v2 }
  0x74   :  { %721 = vmatmul.bf16.gmra.mxu3 %v2255_v3 }
  0x81   :  { %279 = vmatmul.bf16.gmra.mxu0 %v2083_v16  ;;  %v2404_v16 = vld [vmem:[%s4394_s0 + $0x128] sm:$0xf0] }
  0x82   :  { %328 = vmatmul.bf16.gmra.mxu1 %v2087_v17  ;;  %v2578_v17 = vld [vmem:[%s4394_s0 + $0x1a0] sm:$0xf]  ;;  %v2407_v24 = vor.u32 %v2804_v15, %v2404_v16 }
  0x83   :  { %677 = vmatmul.bf16.gmra.mxu2 %v2259_v18  ;;  %v2837_v18 = vld [vmem:[%s4394_s0 + $0x1a4] sm:$0xf0] }
  0x84   :  { %726 = vmatmul.bf16.gmra.mxu3 %v2263_v19  ;;  %v2836_v19 = vld [vmem:[%s4394_s0 + $0x1a4] sm:$0xf] }
  0x91   :  { %284 = vmatmul.bf16.gmra.mxu0 %v2091_v28  ;;  %v2579_v28 = vor.u32 %v2837_v18, %v2578_v17 }
  0x92   :  { %333 = vmatmul.bf16.gmra.mxu1 %v2095_v29  ;;  %v2583_v29 = vor.u32 %v2836_v19, %v2580_v20 }
  0x93   :  { %682 = vmatmul.bf16.gmra.mxu2 %v2267_v30 }
  0x94   :  { %731 = vmatmul.bf16.gmra.mxu3 %v2271_v31 }
  0x9e   :  { %v250_v42 = vpop.f32.mrf.mxu0 }
  0x9f   :  { %v299_v43 = vpop.f32.mrf.mxu1 }
  0xa0   :  { %v3490_v46 = vadd.f32 %v299_v43, %v250_v42  ;;  %v2839_v42 = vld [vmem:[%s4394_s0 + $0x1b4] sm:$0xf0]  ;;  %v2838_v43 = vld [vmem:[%s4394_s0 + $0x1b4] sm:$0xf] }
  0xa1   :  { %1048 = vmatmul.bf16.vlgmr.msrb.gmra.mxu0 %v2387_v40  ;;  %v2412_v40 = vld [vmem:[%s4394_s0 + $0x138] sm:$0xf0] }
  0xa2   :  { %1097 = vmatmul.bf16.vlgmr.msrb.gmra.mxu1 %v2391_v41  ;;  %v2586_v41 = vld [vmem:[%s4394_s0 + $0x1b0] sm:$0xf] }
  0xa3   :  { %1449 = vmatmul.bf16.vlgmr.msrb.gmra.mxu2 %v2563_v44  ;;  %v2588_v44 = vld [vmem:[%s4394_s0 + $0x1b8] sm:$0xf0]  ;;  %v2587_v55 = vor.u32 %v2839_v42, %v2586_v41 }
  0xa4   :  { %1498 = vmatmul.bf16.vlgmr.msrb.gmra.mxu3 %v2567_v45  ;;  %v2591_v56 = vor.u32 %v2838_v43, %v2588_v44 }
  0xa6   :  { %v648_v47 = vpop.f32.mrf.mxu2  ;;  %v252_v50 = vpop.f32.mrf.mxu0 }
  0xa7   :  { %v697_v48 = vpop.f32.mrf.mxu3  ;;  %v301_v51 = vpop.f32.mrf.mxu1 }
  0xa8   :  { %v3492_v49 = vadd.f32 %v697_v48, %v648_v47  ;;  %v3494_v52 = vadd.f32 %v301_v51, %v252_v50  ;;  %v2411_v48 = vor.u32 %v2807_v38, %v2410_v37  ;;  %v2415_v50 = vor.u32 %v2806_v39, %v2412_v40  ;;  %v2843_v37 = vld [vmem:[%s4394_s0 + $0x1d4] sm:$0xf0]  ;;  %v2842_v38 = vld [vmem:[%s4394_s0 + $0x1d4] sm:$0xf]  ;;  %v2604_v39 = vld [vmem:[%s4394_s0 + $0x1d8] sm:$0xf0] }
  0xaa   :  { %4436 = vst [vmem:[#allocation3_spill] sm:$0xff] %v3492_v49 }
  0xae   :  { %v650_v61 = vpop.f32.mrf.mxu2  ;;  %v255_v2 = vpop.f32.mrf.mxu0 }
  0xaf   :  { %v699_v62 = vpop.f32.mrf.mxu3  ;;  %v304_v3 = vpop.f32.mrf.mxu1 }
  0xb0   :  { %v3520_v1 = vadd.f32 %v699_v62, %v650_v61  ;;  %v3522_v6 = vadd.f32 %v304_v3, %v255_v2  ;;  %v2809_v2 = vld [vmem:[%s4394_s0 + $0x144] sm:$0xf0]  ;;  %v2808_v3 = vld [vmem:[%s4394_s0 + $0x144] sm:$0xf] }
  0xb1   :  { %1053 = vmatmul.bf16.gmra.mxu0 %v2395_v63 }
  0xb2   :  { %4437 = vst [vmem:[#allocation4_spill] sm:$0xff] %v3520_v1  ;;  %1102 = vmatmul.bf16.gmra.mxu1 %v2399_v0  ;;  %v2418_v0 = vld [vmem:[%s4394_s0 + $0x140] sm:$0xf] }
  0xb3   :  { %1454 = vmatmul.bf16.gmra.mxu2 %v2571_v4  ;;  %v2420_v4 = vld [vmem:[%s4394_s0 + $0x148] sm:$0xf0]  ;;  %v2419_v14 = vor.u32 %v2809_v2, %v2418_v0  ;;  %v355_v2 = vadd.f32 %v3494_v52, %v3490_v46 }
  0xb4   :  { %1503 = vmatmul.bf16.gmra.mxu3 %v2575_v5  ;;  %v2594_v5 = vld [vmem:[%s4394_s0 + $0x1c0] sm:$0xf]  ;;  %v2423_v15 = vor.u32 %v2808_v3, %v2420_v4 }
  0xb6   :  { %v653_v7 = vpop.f32.mrf.mxu2  ;;  %v257_v10 = vpop.f32.mrf.mxu0 }
  0xb7   :  { %v702_v8 = vpop.f32.mrf.mxu3  ;;  %v306_v11 = vpop.f32.mrf.mxu1 }
  0xb8   :  { %v3524_v9 = vadd.f32 %v702_v8, %v653_v7  ;;  %v3526_v12 = vadd.f32 %v306_v11, %v257_v10  ;;  %v2841_v7 = vld [vmem:[%s4394_s0 + $0x1c4] sm:$0xf0]  ;;  %v2840_v8 = vld [vmem:[%s4394_s0 + $0x1c4] sm:$0xf]  ;;  %v2596_v10 = vld [vmem:[%s4394_s0 + $0x1c8] sm:$0xf0] }
  0xb9   :  { %v2595_v19 = vor.u32 %v2841_v7, %v2594_v5  ;;  %v2599_v20 = vor.u32 %v2840_v8, %v2596_v10  ;;  %v356_v7 = vadd.f32 %v355_v2, %v3522_v6  ;;  %v2434_v8 = vld [vmem:[%s4394_s0 + $0x160] sm:$0xf]  ;;  %v2813_v10 = vld [vmem:[%s4394_s0 + $0x164] sm:$0xf0] }
  0xba   :  { %4438 = vst [vmem:[#allocation5_spill] sm:$0xff] %v3524_v9  ;;  %v379_v5 = vmul.f32 %v3526_v12, %v3526_v12 }
  0xbe   :  { %v655_v21 = vpop.f32.mrf.mxu2  ;;  %v260_v26 = vpop.f32.mrf.mxu0 }
  0xbf   :  { %v704_v22 = vpop.f32.mrf.mxu3  ;;  %v309_v27 = vpop.f32.mrf.mxu1 }
  0xc0   :  { %v3552_v25 = vadd.f32 %v704_v22, %v655_v21  ;;  %v3554_v30 = vadd.f32 %v309_v27, %v260_v26 }
  0xc1   :  { %1058 = vmatmul.bf16.gmra.mxu0 %v2403_v23 }
  0xc2   :  { %4439 = vst [vmem:[#allocation6_spill] sm:$0xff] %v3552_v25  ;;  %1107 = vmatmul.bf16.gmra.mxu1 %v2407_v24 }
  0xc3   :  { %1459 = vmatmul.bf16.gmra.mxu2 %v2579_v28 }
  0xc4   :  { %1508 = vmatmul.bf16.gmra.mxu3 %v2583_v29  ;;  %v2426_v29 = vld [vmem:[%s4394_s0 + $0x150] sm:$0xf] }
  0xc6   :  { %v658_v31 = vpop.f32.mrf.mxu2  ;;  %v262_v34 = vpop.f32.mrf.mxu0 }
  0xc7   :  { %v707_v32 = vpop.f32.mrf.mxu3  ;;  %v311_v35 = vpop.f32.mrf.mxu1 }
  0xc8   :  { %v3556_v33 = vadd.f32 %v707_v32, %v658_v31  ;;  %v3558_v36 = vadd.f32 %v311_v35, %v262_v34  ;;  %v2811_v31 = vld [vmem:[%s4394_s0 + $0x154] sm:$0xf0]  ;;  %v2810_v32 = vld [vmem:[%s4394_s0 + $0x154] sm:$0xf]  ;;  %v2428_v34 = vld [vmem:[%s4394_s0 + $0x158] sm:$0xf0] }
  0xc9   :  { %v2602_v35 = vld [vmem:[%s4394_s0 + $0x1d0] sm:$0xf]  ;;  %v2427_v42 = vor.u32 %v2811_v31, %v2426_v29  ;;  %v2431_v43 = vor.u32 %v2810_v32, %v2428_v34  ;;  %v2435_v32 = vor.u32 %v2813_v10, %v2434_v8 }
  0xca   :  { %4440 = vst [vmem:[#allocation7_spill] sm:$0xff] %v3556_v33 }
  0xce   :  { %v660_v45 = vpop.f32.mrf.mxu2  ;;  %v265_v53 = vpop.f32.mrf.mxu0 }
  0xcf   :  { %v709_v47 = vpop.f32.mrf.mxu3  ;;  %v314_v54 = vpop.f32.mrf.mxu1 }
  0xd0   :  { %v3584_v51 = vadd.f32 %v709_v47, %v660_v45  ;;  %v3586_v57 = vadd.f32 %v314_v54, %v265_v53  ;;  %v377_v54 = vmul.f32 %v3494_v52, %v3494_v52 }
  0xd1   :  { %1063 = vmatmul.bf16.gmra.mxu0 %v2411_v48  ;;  %v2603_v48 = vor.u32 %v2843_v37, %v2602_v35 }
  0xd2   :  { %4441 = vst [vmem:[#allocation8_spill] sm:$0xff] %v3584_v51  ;;  %1112 = vmatmul.bf16.gmra.mxu1 %v2415_v50  ;;  %v2607_v50 = vor.u32 %v2842_v38, %v2604_v39 }
  0xd3   :  { %4442 = vst [vmem:[#allocation9_spill] sm:$0xff] %v3586_v57  ;;  %1464 = vmatmul.bf16.gmra.mxu2 %v2587_v55 }
  0xd4   :  { %1513 = vmatmul.bf16.gmra.mxu3 %v2591_v56 }
  0xd6   :  { %v663_v58 = vpop.f32.mrf.mxu2  ;;  %v267_v61 = vpop.f32.mrf.mxu0 }
  0xd7   :  { %v712_v59 = vpop.f32.mrf.mxu3  ;;  %v316_v62 = vpop.f32.mrf.mxu1 }
  0xd8   :  { %v3588_v60 = vadd.f32 %v712_v59, %v663_v58  ;;  %v3590_v63 = vadd.f32 %v316_v62, %v267_v61  ;;  %v376_v58 = vmul.f32 %v3490_v46, %v3490_v46  ;;  %v378_v59 = vmul.f32 %v3522_v6, %v3522_v6 }
  0xda   :  { %4443 = vst [vmem:[#allocation10_spill] sm:$0xff] %v3588_v60  ;;  %v392_v4 = vadd.f32 %v377_v54, %v376_v58 }
  0xdb   :  { %4444 = vst [vmem:[#allocation11_spill] sm:$0xff] %v3590_v63 }
  0xde   :  { %v665_v11 = vpop.f32.mrf.mxu2  ;;  %v270_v17 = vpop.f32.mrf.mxu0 }
  0xdf   :  { %v714_v13 = vpop.f32.mrf.mxu3  ;;  %v319_v18 = vpop.f32.mrf.mxu1 }
  0xe0   :  { %v3616_v16 = vadd.f32 %v714_v13, %v665_v11  ;;  %v3618_v21 = vadd.f32 %v319_v18, %v270_v17  ;;  %v393_v11 = vadd.f32 %v392_v4, %v378_v59  ;;  %v2812_v13 = vld [vmem:[%s4394_s0 + $0x164] sm:$0xf]  ;;  %v357_v17 = vadd.f32 %v356_v7, %v3526_v12 }
  0xe1   :  { %1068 = vmatmul.bf16.gmra.mxu0 %v2419_v14  ;;  %v2436_v14 = vld [vmem:[%s4394_s0 + $0x168] sm:$0xf0]  ;;  %v380_v18 = vmul.f32 %v3554_v30, %v3554_v30 }
  0xe2   :  { %4445 = vst [vmem:[#allocation12_spill] sm:$0xff] %v3616_v16  ;;  %1117 = vmatmul.bf16.gmra.mxu1 %v2423_v15  ;;  %v2610_v15 = vld [vmem:[%s4394_s0 + $0x1e0] sm:$0xf]  ;;  %v2439_v34 = vor.u32 %v2812_v13, %v2436_v14 }
  0xe3   :  { %4446 = vst [vmem:[#allocation13_spill] sm:$0xff] %v3618_v21  ;;  %1469 = vmatmul.bf16.gmra.mxu2 %v2595_v19  ;;  %v2845_v19 = vld [vmem:[%s4394_s0 + $0x1e4] sm:$0xf0] }
  0xe4   :  { %1518 = vmatmul.bf16.gmra.mxu3 %v2599_v20  ;;  %v2844_v20 = vld [vmem:[%s4394_s0 + $0x1e4] sm:$0xf]  ;;  %v2611_v39 = vor.u32 %v2845_v19, %v2610_v15  ;;  %v2815_v19 = vld [vmem:[%s4394_s0 + $0x174] sm:$0xf0] }
  0xe6   :  { %v668_v22 = vpop.f32.mrf.mxu2  ;;  %v272_v26 = vpop.f32.mrf.mxu0 }
  0xe7   :  { %v717_v23 = vpop.f32.mrf.mxu3  ;;  %v321_v27 = vpop.f32.mrf.mxu1 }
  0xe8   :  { %v3620_v24 = vadd.f32 %v717_v23, %v668_v22  ;;  %v3622_v28 = vadd.f32 %v321_v27, %v272_v26  ;;  %v2612_v22 = vld [vmem:[%s4394_s0 + $0x1e8] sm:$0xf0]  ;;  %v394_v23 = vadd.f32 %v393_v11, %v379_v5  ;;  %v358_v26 = vadd.f32 %v357_v17, %v3554_v30 }
  0xe9   :  { %v381_v27 = vmul.f32 %v3558_v36, %v3558_v36 }
  0xea   :  { %4447 = vst [vmem:[#allocation14_spill] sm:$0xff] %v3620_v24 }
  0xeb   :  { %4448 = vst [vmem:[#allocation15_spill] sm:$0xff] %v3622_v28 }
  0xee   :  { %v670_v40 = vpop.f32.mrf.mxu2  ;;  %v275_v45 = vpop.f32.mrf.mxu0 }
  0xef   :  { %v719_v41 = vpop.f32.mrf.mxu3  ;;  %v324_v47 = vpop.f32.mrf.mxu1 }
  0xf0   :  { %v3648_v44 = vadd.f32 %v719_v41, %v670_v40  ;;  %v3650_v53 = vadd.f32 %v324_v47, %v275_v45  ;;  %v2615_v40 = vor.u32 %v2844_v20, %v2612_v22  ;;  %v395_v41 = vadd.f32 %v394_v23, %v380_v18  ;;  %v2442_v18 = vld [vmem:[%s4394_s0 + $0x170] sm:$0xf]  ;;  %v2814_v20 = vld [vmem:[%s4394_s0 + $0x174] sm:$0xf]  ;;  %v2444_v22 = vld [vmem:[%s4394_s0 + $0x178] sm:$0xf0] }
  0xf1   :  { %1073 = vmatmul.bf16.gmra.mxu0 %v2427_v42  ;;  %v359_v42 = vadd.f32 %v358_v26, %v3558_v36  ;;  %v2618_v23 = vld [vmem:[%s4394_s0 + $0x1f0] sm:$0xf] }
  0xf2   :  { %4449 = vst [vmem:[#allocation16_spill] sm:$0xff] %v3648_v44  ;;  %1122 = vmatmul.bf16.gmra.mxu1 %v2431_v43  ;;  %v382_v43 = vmul.f32 %v3586_v57, %v3586_v57  ;;  %v396_v47 = vadd.f32 %v395_v41, %v381_v27  ;;  %v386_v11 = vmul.f32 %v3650_v53, %v3650_v53 }
  0xf3   :  { %4450 = vst [vmem:[#allocation17_spill] sm:$0xff] %v3650_v53  ;;  %1474 = vmatmul.bf16.gmra.mxu2 %v2603_v48  ;;  %v360_v48 = vadd.f32 %v359_v42, %v3586_v57 }
  0xf4   :  { %1523 = vmatmul.bf16.gmra.mxu3 %v2607_v50  ;;  %v383_v50 = vmul.f32 %v3590_v63, %v3590_v63  ;;  %v397_v54 = vadd.f32 %v396_v47, %v382_v43  ;;  %v2447_v43 = vor.u32 %v2814_v20, %v2444_v22 }
  0xf6   :  { %v673_v55 = vpop.f32.mrf.mxu2  ;;  %v277_v62 = vpop.f32.mrf.mxu0  ;;  %v398_v58 = vadd.f32 %v397_v54, %v383_v50 }
  0xf7   :  { %v722_v56 = vpop.f32.mrf.mxu3  ;;  %v326_v0 = vpop.f32.mrf.mxu1 }
  0xf8   :  { %v3658_v61 = vadd.f32 %v722_v56, %v673_v55  ;;  %v3662_v3 = vadd.f32 %v326_v0, %v277_v62  ;;  %v361_v55 = vadd.f32 %v360_v48, %v3590_v63  ;;  %v384_v56 = vmul.f32 %v3618_v21, %v3618_v21 }
  0xf9   :  { %v385_v62 = vmul.f32 %v3622_v28, %v3622_v28 }
  0xfa   :  { %4451 = vst [vmem:[#allocation18_spill] sm:$0xff] %v3658_v61  ;;  %v362_v59 = vadd.f32 %v361_v55, %v3618_v21  ;;  %v399_v8 = vadd.f32 %v398_v58, %v384_v56  ;;  %v387_v17 = vmul.f32 %v3662_v3, %v3662_v3 }
  0xfb   :  { %4452 = vst [vmem:[#allocation19_spill] sm:$0xff] %v3662_v3 }
  0xfc   :  { %v363_v10 = vadd.f32 %v362_v59, %v3622_v28  ;;  %v400_v14 = vadd.f32 %v399_v8, %v385_v62 }
  0xfe   :  { %v675_v29 = vpop.f32.mrf.mxu2  ;;  %v280_v37 = vpop.f32.mrf.mxu0  ;;  %v364_v15 = vadd.f32 %v363_v10, %v3650_v53  ;;  %v401_v26 = vadd.f32 %v400_v14, %v386_v11 }
  0xff   :  { %v724_v31 = vpop.f32.mrf.mxu3  ;;  %v329_v38 = vpop.f32.mrf.mxu1 }
 0x100   :  { %v3697_v35 = vadd.f32 %v724_v31, %v675_v29  ;;  %v3702_v45 = vadd.f32 %v329_v38, %v280_v37  ;;  %v365_v27 = vadd.f32 %v364_v15, %v3662_v3  ;;  %v2847_v31 = vld [vmem:[%s4394_s0 + $0x1f4] sm:$0xf0]  ;;  %v2443_v37 = vor.u32 %v2815_v19, %v2442_v18 }
 0x101   :  { %1078 = vmatmul.bf16.gmra.mxu0 %v2435_v32  ;;  %v2846_v32 = vld [vmem:[%s4394_s0 + $0x1f4] sm:$0xf]  ;;  %v402_v38 = vadd.f32 %v401_v26, %v387_v17  ;;  %v2619_v54 = vor.u32 %v2847_v31, %v2618_v23 }
 0x102   :  { %4453 = vst [vmem:[#allocation20_spill] sm:$0xff] %v3697_v35  ;;  %1127 = vmatmul.bf16.gmra.mxu1 %v2439_v34  ;;  %v388_v29 = vmul.f32 %v3702_v45, %v3702_v45  ;;  %v2620_v34 = vld [vmem:[%s4394_s0 + $0x1f8] sm:$0xf0] }
 0x103   :  { %4454 = vst [vmem:[#allocation21_spill] sm:$0xff] %v3702_v45  ;;  %1479 = vmatmul.bf16.gmra.mxu2 %v2611_v39  ;;  %v366_v39 = vadd.f32 %v365_v27, %v3702_v45  ;;  %v2623_v55 = vor.u32 %v2846_v32, %v2620_v34  ;;  %v778_v45 = vmul.f32 %v3552_v25, %v3552_v25 }
 0x104   :  { %1528 = vmatmul.bf16.gmra.mxu3 %v2615_v40  ;;  %v403_v56 = vadd.f32 %v402_v38, %v388_v29 }
 0x106   :  { %v678_v0 = vpop.f32.mrf.mxu2  ;;  %v282_v5 = vpop.f32.mrf.mxu0 }
 0x107   :  { %v727_v2 = vpop.f32.mrf.mxu3  ;;  %v331_v7 = vpop.f32.mrf.mxu1 }
 0x108   :  { %v3713_v4 = vadd.f32 %v727_v2, %v678_v0  ;;  %v3718_v13 = vadd.f32 %v331_v7, %v282_v5 }
 0x10a   :  { %4455 = vst [vmem:[#allocation22_spill] sm:$0xff] %v3713_v4  ;;  %v389_v40 = vmul.f32 %v3718_v13, %v3718_v13  ;;  %v367_v58 = vadd.f32 %v366_v39, %v3718_v13 }
 0x10b   :  { %4456 = vst [vmem:[#allocation23_spill] sm:$0xff] %v3718_v13 }
 0x10c   :  { %v404_v62 = vadd.f32 %v403_v56, %v389_v40 }
 0x10e   :  { %v680_v41 = vpop.f32.mrf.mxu2  ;;  %v285_v48 = vpop.f32.mrf.mxu0 }
 0x10f   :  { %v729_v42 = vpop.f32.mrf.mxu3  ;;  %v334_v50 = vpop.f32.mrf.mxu1 }
 0x110   :  { %v3753_v47 = vadd.f32 %v729_v42, %v680_v41  ;;  %v3756_v59 = vadd.f32 %v334_v50, %v285_v48 }
 0x111   :  { %1083 = vmatmul.bf16.gmra.mxu0 %v2443_v37 }
 0x112   :  { %4457 = vst [vmem:[#allocation24_spill] sm:$0xff] %v3753_v47  ;;  %v368_v0 = vadd.f32 %v367_v58, %v3756_v59  ;;  %v390_v2 = vmul.f32 %v3756_v59, %v3756_v59  ;;  %1132 = vmatmul.bf16.gmra.mxu1 %v2447_v43 }
 0x113   :  { %4458 = vst [vmem:[#allocation25_spill] sm:$0xff] %v3756_v59  ;;  %1484 = vmatmul.bf16.gmra.mxu2 %v2619_v54 }
 0x114   :  { %1533 = vmatmul.bf16.gmra.mxu3 %v2623_v55  ;;  %v405_v5 = vadd.f32 %v404_v62, %v390_v2 }
 0x116   :  { %v683_v7 = vpop.f32.mrf.mxu2  ;;  %v287_v11 = vpop.f32.mrf.mxu0 }
 0x117   :  { %v732_v8 = vpop.f32.mrf.mxu3  ;;  %v336_v14 = vpop.f32.mrf.mxu1 }
 0x118   :  { %v3761_v10 = vadd.f32 %v732_v8, %v683_v7  ;;  %v3763_v15 = vadd.f32 %v336_v14, %v287_v11 }
 0x11a   :  { %4459 = vst [vmem:[#allocation26_spill] sm:$0xff] %v3761_v10  ;;  %v3766_v17 = vadd.f32 %v368_v0, %v3763_v15  ;;  %v391_v18 = vmul.f32 %v3763_v15, %v3763_v15 }
 0x11b   :  { %4460 = vst [vmem:[#allocation27_spill] sm:$0xff] %v3763_v15 }
 0x11c   :  { %v3770_v19 = vadd.f32 %v405_v5, %v391_v18 }
 0x11e   :  { %v685_v20 = vpop.f32.mrf.mxu2  ;;  %v1049_v26 = vpop.f32.mrf.mxu0 }
 0x11f   :  { %v734_v22 = vpop.f32.mrf.mxu3  ;;  %v1098_v27 = vpop.f32.mrf.mxu1 }
 0x120   :  { %v3772_v23 = vadd.f32 %v734_v22, %v685_v20  ;;  %v3774_v29 = vadd.f32 %v1098_v27, %v1049_v26 }
 0x122   :  { %4461 = vst [vmem:[#allocation28_spill] sm:$0xff] %v3774_v29 }
 0x126   :  { %v1450_v31 = vpop.f32.mrf.mxu2  ;;  %v1051_v37 = vpop.f32.mrf.mxu0 }
 0x127   :  { %v1499_v32 = vpop.f32.mrf.mxu3  ;;  %v1100_v38 = vpop.f32.mrf.mxu1 }
 0x128   :  { %v3776_v34 = vadd.f32 %v1499_v32, %v1450_v31  ;;  %v3778_v39 = vadd.f32 %v1100_v38, %v1051_v37 }
 0x12a   :  { %4462 = vst [vmem:[#allocation29_spill] sm:$0xff] %v3778_v39 }
 0x12e   :  { %v1452_v40 = vpop.f32.mrf.mxu2  ;;  %v1054_v43 = vpop.f32.mrf.mxu0 }
 0x12f   :  { %v1501_v41 = vpop.f32.mrf.mxu3  ;;  %v1103_v48 = vpop.f32.mrf.mxu1 }
 0x130   :  { %v3780_v42 = vadd.f32 %v1501_v41, %v1452_v40  ;;  %v3782_v50 = vadd.f32 %v1103_v48, %v1054_v43 }
 0x136   :  { %v1455_v54 = vpop.f32.mrf.mxu2  ;;  %v1056_v58 = vpop.f32.mrf.mxu0 }
 0x137   :  { %v1504_v55 = vpop.f32.mrf.mxu3  ;;  %v1105_v62 = vpop.f32.mrf.mxu1 }
 0x138   :  { %v3784_v56 = vadd.f32 %v1504_v55, %v1455_v54  ;;  %v3786_v0 = vadd.f32 %v1105_v62, %v1056_v58 }
 0x13a   :  { %4463 = vst [vmem:[#allocation30_spill] sm:$0xff] %v3784_v56 }
 0x13e   :  { %v1457_v2 = vpop.f32.mrf.mxu2  ;;  %v1059_v8 = vpop.f32.mrf.mxu0 }
 0x13f   :  { %v1506_v5 = vpop.f32.mrf.mxu3  ;;  %v1108_v11 = vpop.f32.mrf.mxu1 }
 0x140   :  { %v3788_v7 = vadd.f32 %v1506_v5, %v1457_v2  ;;  %v3790_v14 = vadd.f32 %v1108_v11, %v1059_v8  ;;  %v754_v2 = vadd.f32 %v3520_v1, %v3492_v49  ;;  %v776_v5 = vmul.f32 %v3520_v1, %v3520_v1 }
 0x141   :  { %v775_v8 = vmul.f32 %v3492_v49, %v3492_v49 }
 0x142   :  { %v755_v11 = vadd.f32 %v754_v2, %v3524_v9  ;;  %v1180_v57 = vmul.f32 %v3790_v14, %v3790_v14 }
 0x143   :  { %v791_v59 = vadd.f32 %v776_v5, %v775_v8  ;;  %v780_v5 = vmul.f32 %v3584_v51, %v3584_v51 }
 0x144   :  { %v756_v13 = vadd.f32 %v755_v11, %v3552_v25  ;;  %v781_v25 = vmul.f32 %v3588_v60, %v3588_v60 }
 0x146   :  { %v1460_v18 = vpop.f32.mrf.mxu2  ;;  %v3794_v26 = vpop.f32.mrf.mxu0  ;;  %v757_v2 = vadd.f32 %v756_v13, %v3556_v33 }
 0x147   :  { %v1509_v20 = vpop.f32.mrf.mxu3  ;;  %v3796_v27 = vpop.f32.mrf.mxu1 }
 0x148   :  { %v3792_v22 = vadd.f32 %v1509_v20, %v1460_v18  ;;  %v777_v18 = vmul.f32 %v3524_v9, %v3524_v9  ;;  %v779_v9 = vmul.f32 %v3556_v33, %v3556_v33  ;;  %v758_v28 = vadd.f32 %v757_v2, %v3584_v51 }
 0x14a   :  { %v792_v49 = vadd.f32 %v791_v59, %v777_v18  ;;  %v759_v11 = vadd.f32 %v758_v28, %v3588_v60 }
 0x14c   :  { %v793_v53 = vadd.f32 %v792_v49, %v778_v45  ;;  %v760_v18 = vadd.f32 %v759_v11, %v3616_v16  ;;  %v782_v49 = vmul.f32 %v3616_v16, %v3616_v16  ;;  %v785_v16 = vmul.f32 %v3658_v61, %v3658_v61 }
 0x14e   :  { %v3798_v31 = vpop.f32.mrf.mxu2  ;;  %v3802_v37 = vpop.f32.mrf.mxu0  ;;  %v794_v8 = vadd.f32 %v793_v53, %v779_v9  ;;  %v761_v28 = vadd.f32 %v760_v18, %v3620_v24  ;;  %v783_v53 = vmul.f32 %v3620_v24, %v3620_v24 }
 0x14f   :  { %v3800_v32 = vpop.f32.mrf.mxu3  ;;  %v3804_v38 = vpop.f32.mrf.mxu1 }
 0x150   :  { %v795_v13 = vadd.f32 %v794_v8, %v780_v5  ;;  %v762_v51 = vadd.f32 %v761_v28, %v3648_v44  ;;  %v784_v5 = vmul.f32 %v3648_v44, %v3648_v44 }
 0x152   :  { %v796_v9 = vadd.f32 %v795_v13, %v781_v25  ;;  %v763_v11 = vadd.f32 %v762_v51, %v3658_v61 }
 0x154   :  { %v797_v60 = vadd.f32 %v796_v9, %v782_v49  ;;  %v764_v18 = vadd.f32 %v763_v11, %v3697_v35  ;;  %v786_v49 = vmul.f32 %v3697_v35, %v3697_v35 }
 0x156   :  { %v3806_v40 = vpop.f32.mrf.mxu2  ;;  %v3810_v43 = vpop.f32.mrf.mxu0  ;;  %v798_v8 = vadd.f32 %v797_v60, %v783_v53  ;;  %v765_v51 = vadd.f32 %v764_v18, %v3713_v4  ;;  %v787_v53 = vmul.f32 %v3713_v4, %v3713_v4  ;;  %v1155_v18 = vadd.f32 %v3778_v39, %v3774_v29 }
 0x157   :  { %v3808_v41 = vpop.f32.mrf.mxu3  ;;  %v3812_v48 = vpop.f32.mrf.mxu1 }
 0x158   :  { %v799_v13 = vadd.f32 %v798_v8, %v784_v5  ;;  %v766_v44 = vadd.f32 %v765_v51, %v3753_v47  ;;  %v788_v5 = vmul.f32 %v3753_v47, %v3753_v47  ;;  %v1177_v8 = vmul.f32 %v3778_v39, %v3778_v39 }
 0x159   :  { %v1156_v24 = vadd.f32 %v1155_v18, %v3782_v50  ;;  %v1179_v39 = vmul.f32 %v3786_v0, %v3786_v0  ;;  %v1556_v18 = vadd.f32 %v3780_v42, %v3776_v34 }
 0x15a   :  { %v800_v60 = vadd.f32 %v799_v13, %v785_v16  ;;  %v767_v35 = vadd.f32 %v766_v44, %v3761_v10  ;;  %v789_v16 = vmul.f32 %v3761_v10, %v3761_v10  ;;  %v1176_v13 = vmul.f32 %v3774_v29, %v3774_v29 }
 0x15b   :  { %v3914_v29 = vadd.f32 %v3796_v27, %v3794_v26  ;;  %v1578_v27 = vmul.f32 %v3780_v42, %v3780_v42  ;;  %v1580_v26 = vmul.f32 %v3788_v7, %v3788_v7 }
 0x15c   :  { %v801_v61 = vadd.f32 %v800_v60, %v786_v49  ;;  %v1178_v49 = vmul.f32 %v3782_v50, %v3782_v50  ;;  %v3905_v44 = vadd.f32 %v767_v35, %v3772_v23  ;;  %v1192_v4 = vadd.f32 %v1177_v8, %v1176_v13 }
 0x15d   :  { %v1157_v35 = vadd.f32 %v1156_v24, %v3786_v0  ;;  %v3923_v8 = vadd.f32 %v3804_v38, %v3802_v37  ;;  %v3937_v37 = vadd.f32 %v3812_v48, %v3810_v43 }
 0x15e   :  { %v3814_v54 = vpop.f32.mrf.mxu2  ;;  %v3818_v58 = vpop.f32.mrf.mxu0  ;;  %v802_v11 = vadd.f32 %v801_v61, %v787_v53  ;;  %v370_v61 = vrot.slane %v3766_v17, 4 }
 0x15f   :  { %v3816_v55 = vpop.f32.mrf.mxu3  ;;  %v3820_v62 = vpop.f32.mrf.mxu1  ;;  %v1158_v24 = vadd.f32 %v1157_v35, %v3790_v14  ;;  %v1557_v35 = vadd.f32 %v1556_v18, %v3784_v56 }
 0x160   :  { %v803_v47 = vadd.f32 %v802_v11, %v788_v5  ;;  %v790_v5 = vmul.f32 %v3772_v23, %v3772_v23  ;;  %v1193_v11 = vadd.f32 %v1192_v4, %v1178_v49  ;;  %v3926_v13 = vadd.f32 %v370_v61, %v3766_v17 }
 0x161   :  { %v1577_v17 = vmul.f32 %v3776_v34, %v3776_v34  ;;  %v1159_v61 = vadd.f32 %v1158_v24, %v3914_v29  ;;  %v3952_v43 = vadd.f32 %v3820_v62, %v3818_v58  ;;  %v1183_v62 = vmul.f32 %v3937_v37, %v3937_v37 }
 0x162   :  { %v804_v63 = vadd.f32 %v803_v47, %v789_v16  ;;  %v1194_v4 = vadd.f32 %v1193_v11, %v1179_v39  ;;  %v1181_v16 = vmul.f32 %v3914_v29, %v3914_v29  ;;  %v1579_v39 = vmul.f32 %v3784_v56, %v3784_v56 }
 0x163   :  { %v1182_v11 = vmul.f32 %v3923_v8, %v3923_v8  ;;  %v1160_v58 = vadd.f32 %v1159_v61, %v3923_v8  ;;  %v1558_v18 = vadd.f32 %v1557_v35, %v3788_v7  ;;  %v1581_v56 = vmul.f32 %v3792_v22, %v3792_v22 }
 0x164   :  { %v3939_v38 = vadd.f32 %v804_v63, %v790_v5  ;;  %v1195_v49 = vadd.f32 %v1194_v4, %v1180_v57  ;;  %v1593_v5 = vadd.f32 %v1578_v27, %v1577_v17  ;;  %v3963_v57 = vadd.f32 %v3800_v32, %v3798_v31 }
 0x165   :  { %v3977_v31 = vadd.f32 %v3808_v41, %v3806_v40  ;;  %v3991_v40 = vadd.f32 %v3816_v55, %v3814_v54 }
 0x166   :  { %v3831_v20 = vpop.f32.mrf.mxu2  ;;  %v3838_v3 = vpop.f32.mrf.mxu0  ;;  %v1196_v47 = vadd.f32 %v1195_v49, %v1181_v16  ;;  %v1594_v17 = vadd.f32 %v1593_v5, %v1579_v39  ;;  %v1161_v16 = vadd.f32 %v1160_v58, %v3937_v37  ;;  %v1184_v49 = vmul.f32 %v3952_v43, %v3952_v43 }
 0x167   :  { %v3833_v15 = vpop.f32.mrf.mxu3  ;;  %v3840_v1 = vpop.f32.mrf.mxu1  ;;  %4464 = vst [vmem:[#allocation31_spill] sm:$0xff] %v3977_v31  ;;  %v1559_v39 = vadd.f32 %v1558_v18, %v3792_v22  ;;  %v1582_v61 = vmul.f32 %v3963_v57, %v3963_v57  ;;  %v1583_v5 = vmul.f32 %v3977_v31, %v3977_v31  ;;  %v1584_v18 = vmul.f32 %v3991_v40, %v3991_v40 }
 0x168   :  { %v3970_v27 = vadd.f32 %v3840_v1, %v3838_v3  ;;  %v1197_v32 = vadd.f32 %v1196_v47, %v1182_v11  ;;  %v1595_v3 = vadd.f32 %v1594_v17, %v1580_v26  ;;  %4465 = vst [vmem:[#allocation32_spill] sm:$0xff] %v3991_v40  ;;  %v1162_v47 = vadd.f32 %v1161_v16, %v3952_v43 }
 0x169   :  { %v1560_v26 = vadd.f32 %v1559_v39, %v3963_v57  ;;  %v4005_v54 = vadd.f32 %v3833_v15, %v3831_v20 }
 0x16a   :  { %v1198_v41 = vadd.f32 %v1197_v32, %v1183_v62  ;;  %v1185_v11 = vmul.f32 %v3970_v27, %v3970_v27  ;;  %v1163_v35 = vadd.f32 %v1162_v47, %v3970_v27 }
 0x16b   :  { %4466 = vst [vmem:[#allocation33_spill] sm:$0xff] %v4005_v54  ;;  %v1561_v17 = vadd.f32 %v1560_v26, %v3977_v31 }
 0x16c   :  { %v1199_v55 = vadd.f32 %v1198_v41, %v1184_v49 }
 0x16d   :  { %v1562_v39 = vadd.f32 %v1561_v17, %v3991_v40 }
 0x16e   :  { %v3851_v21 = vpop.f32.mrf.mxu2  ;;  %v3858_v45 = vpop.f32.mrf.mxu0  ;;  %v1200_v16 = vadd.f32 %v1199_v55, %v1185_v11 }
 0x16f   :  { %v3853_v59 = vpop.f32.mrf.mxu3  ;;  %v3860_v2 = vpop.f32.mrf.mxu1 }
 0x170   :  { %v3984_v1 = vadd.f32 %v3860_v2, %v3858_v45  ;;  %v1596_v2 = vadd.f32 %v1595_v3, %v1581_v56  ;;  %v4018_v15 = vadd.f32 %v3853_v59, %v3851_v21 }
 0x172   :  { %v1186_v58 = vmul.f32 %v3984_v1, %v3984_v1  ;;  %4467 = vst [vmem:[#allocation34_spill] sm:$0xff] %v4018_v15  ;;  %v1164_v49 = vadd.f32 %v1163_v35, %v3984_v1 }
 0x174   :  { %v1201_v59 = vadd.f32 %v1200_v16, %v1186_v58 }
 0x176   :  { %v3871_v33 = vpop.f32.mrf.mxu2  ;;  %v3878_v9 = vpop.f32.mrf.mxu0 }
 0x177   :  { %v3873_v25 = vpop.f32.mrf.mxu3  ;;  %v3880_v28 = vpop.f32.mrf.mxu1 }
 0x178   :  { %v3998_v45 = vadd.f32 %v3880_v28, %v3878_v9  ;;  %v1597_v28 = vadd.f32 %v1596_v2, %v1582_v61  ;;  %v1585_v61 = vmul.f32 %v4005_v54, %v4005_v54  ;;  %v4030_v21 = vadd.f32 %v3873_v25, %v3871_v33 }
 0x179   :  { %v1586_v2 = vmul.f32 %v4018_v15, %v4018_v15  ;;  %v806_v33 = vrot.slane %v3939_v38, 4 }
 0x17a   :  { %v1598_v3 = vadd.f32 %v1597_v28, %v1583_v5  ;;  %4468 = vst [vmem:[#allocation35_spill] sm:$0xff] %v4030_v21  ;;  %v1165_v41 = vadd.f32 %v1164_v49, %v3998_v45  ;;  %v1587_v28 = vmul.f32 %v4030_v21, %v4030_v21 }
 0x17e   :  { %v3899_v60 = vpop.f32.mrf.mxu2  ;;  %v3907_v53 = vpop.f32.mrf.mxu0 }
 0x17f   :  { %v3901_v51 = vpop.f32.mrf.mxu3  ;;  %v1128_v10 = vpop.f32.mrf.mxu1 }
 0x180   :  { %v4011_v62 = vadd.f32 %v1128_v10, %v3907_v53  ;;  %v1187_v10 = vmul.f32 %v3998_v45, %v3998_v45  ;;  %v4042_v26 = vadd.f32 %v3901_v51, %v3899_v60  ;;  %v4471_v60 = vrot.slane %v3905_v44, 4 }
 0x182   :  { %v1188_v47 = vmul.f32 %v4011_v62, %v4011_v62  ;;  %4469 = vst [vmem:[#allocation36_spill] sm:$0xff] %v4042_v26  ;;  %v1202_v25 = vadd.f32 %v1201_v59, %v1187_v10  ;;  %v1166_v5 = vadd.f32 %v1165_v41, %v4011_v62  ;;  %v770_v51 = vadd.f32 %v4471_v60, %v3905_v44 }
 0x183   :  { %v807_v44 = vadd.f32 %v806_v33, %v3939_v38  ;;  %v372_v60 = vrot.slane %v3926_v13, 2 }
 0x186   :  { %v3954_v63 = vpop.f32.mrf.mxu2  ;;  %v1081_v4 = vpop.f32.mrf.mxu0 }
 0x187   :  { %v3956_v48 = vpop.f32.mrf.mxu3  ;;  %v1130_v24 = vpop.f32.mrf.mxu1 }
 0x188   :  { %v4023_v53 = vadd.f32 %v1130_v24, %v1081_v4  ;;  %v1599_v4 = vadd.f32 %v1598_v3, %v1584_v18  ;;  %v1563_v24 = vadd.f32 %v1562_v39, %v4005_v54  ;;  %v4053_v17 = vadd.f32 %v3956_v48, %v3954_v63 }
 0x189   :  { %v1203_v18 = vadd.f32 %v1202_v25, %v1188_v47  ;;  %v1588_v39 = vmul.f32 %v4042_v26, %v4042_v26 }
 0x18a   :  { %v1189_v55 = vmul.f32 %v4023_v53, %v4023_v53  ;;  %v1600_v35 = vadd.f32 %v1599_v4, %v1585_v61  ;;  %v1564_v58 = vadd.f32 %v1563_v24, %v4018_v15  ;;  %4470 = vst [vmem:[#allocation37_spill] sm:$0xff] %v4053_v17 }
 0x18c   :  { %v1601_v10 = vadd.f32 %v1600_v35, %v1586_v2  ;;  %v1565_v3 = vadd.f32 %v1564_v58, %v4030_v21  ;;  %v1204_v59 = vadd.f32 %v1203_v18, %v1189_v55  ;;  %v1589_v2 = vmul.f32 %v4053_v17, %v4053_v17 }
 0x18d   :  { %v771_v55 = vrot.slane %v770_v51, 2 }
 0x18e   :  { %v1482_v9 = vpop.f32.mrf.mxu2  ;;  %v1084_v20 = vpop.f32.mrf.mxu0  ;;  %v1602_v4 = vadd.f32 %v1601_v10, %v1587_v28  ;;  %v1566_v24 = vadd.f32 %v1565_v3, %v4042_v26 }
 0x18f   :  { %v1531_v56 = vpop.f32.mrf.mxu3  ;;  %v1133_v32 = vpop.f32.mrf.mxu1 }
 0x190   :  { %v4035_v11 = vadd.f32 %v1133_v32, %v1084_v20  ;;  %v1167_v20 = vadd.f32 %v1166_v5, %v4023_v53  ;;  %v4064_v63 = vadd.f32 %v1531_v56, %v1482_v9  ;;  %v4474_v9 = vrot.slane %v3770_v19, 4 }
 0x191   :  { %v1603_v35 = vadd.f32 %v1602_v4, %v1588_v39  ;;  %v1567_v58 = vadd.f32 %v1566_v24, %v4053_v17 }
 0x192   :  { %v1190_v32 = vmul.f32 %v4035_v11, %v4035_v11  ;;  %4472 = vst [vmem:[#allocation38_spill] sm:$0xff] %v4064_v63  ;;  %v1168_v41 = vadd.f32 %v1167_v20, %v4035_v11  ;;  %v408_v56 = vadd.f32 %v4474_v9, %v3770_v19  ;;  %v1590_v28 = vmul.f32 %v4064_v63, %v4064_v63 }
 0x193   :  { %v1568_v19 = vadd.f32 %v1567_v58, %v4064_v63  ;;  %v373_v9 = vadd.f32 %v372_v60, %v3926_v13 }
 0x194   :  { %v1205_v5 = vadd.f32 %v1204_v59, %v1190_v32  ;;  %v409_v10 = vrot.slane %v408_v56, 2  ;;  %v772_v59 = vadd.f32 %v771_v55, %v770_v51 }
 0x196   :  { %v1485_v16 = vpop.f32.mrf.mxu2  ;;  %v1086_v48 = vpop.f32.mrf.mxu0  ;;  %v773_v51 = vrot.slane %v772_v59, 1 }
 0x197   :  { %v1534_v49 = vpop.f32.mrf.mxu3  ;;  %v1135_v61 = vpop.f32.mrf.mxu1 }
 0x198   :  { %v4068_v47 = vadd.f32 %v1135_v61, %v1086_v48  ;;  %v4073_v25 = vadd.f32 %v1534_v49, %v1485_v16  ;;  %v808_v16 = vrot.slane %v807_v44, 2  ;;  %v1604_v49 = vadd.f32 %v1603_v35, %v1589_v2 }
 0x19a   :  { %4473 = vst [vmem:[#allocation39_spill] sm:$0xff] %v4073_v25  ;;  %v1169_v38 = vadd.f32 %v1168_v41, %v4068_v47  ;;  %v1191_v33 = vmul.f32 %v4068_v47, %v4068_v47  ;;  %v1591_v32 = vmul.f32 %v4073_v25, %v4073_v25  ;;  %v1605_v41 = vadd.f32 %v1604_v49, %v1590_v28 }
 0x19b   :  { %v1569_v4 = vadd.f32 %v1568_v19, %v4073_v25  ;;  %v374_v49 = vrot.slane %v373_v9, 1 }
 0x19c   :  { %v1170_v18 = vrot.slane %v1169_v38, 4  ;;  %v1206_v20 = vadd.f32 %v1205_v5, %v1191_v33  ;;  %v809_v33 = vadd.f32 %v808_v16, %v807_v44  ;;  %v1606_v35 = vadd.f32 %v1605_v41, %v1591_v32 }
 0x19d   :  { %v774_v44 = vadd.f32 %v773_v51, %v772_v59  ;;  %v375_v41 = vadd.f32 %v374_v49, %v373_v9 }
 0x19e   :  { %v1171_v3 = vadd.f32 %v1170_v18, %v1169_v38  ;;  %v1207_v48 = vrot.slane %v1206_v20, 4  ;;  %v1487_v39 = vpop.f32.mrf.mxu2  ;;  %v410_v18 = vadd.f32 %v409_v10, %v408_v56 }
 0x19f   :  { %v1536_v61 = vpop.f32.mrf.mxu3 }
 0x1a0   :  { %v4089_v24 = vadd.f32 %v1536_v61, %v1487_v39  ;;  %v1172_v5 = vrot.slane %v1171_v3, 2  ;;  %v1208_v2 = vadd.f32 %v1207_v48, %v1206_v20  ;;  %v810_v39 = vrot.slane %v809_v33, 1 }
 0x1a1   :  { %v411_v20 = vrot.slane %v410_v18, 1 }
 0x1a2   :  { %4475 = vst [vmem:[#allocation40_spill] sm:$0xff] %v4089_v24  ;;  %v1570_v58 = vadd.f32 %v1569_v4, %v4089_v24  ;;  %v1592_v38 = vmul.f32 %v4089_v24, %v4089_v24  ;;  %v1173_v63 = vadd.f32 %v1172_v5, %v1171_v3  ;;  %v1209_v17 = vrot.slane %v1208_v2, 2 }
 0x1a3   :  { %v811_v4 = vadd.f32 %v810_v39, %v809_v33  ;;  %v412_v3 = vadd.f32 %v411_v20, %v410_v18  ;;  %v812_v5 = vadd.f32 %v774_v44, %v375_v41 }
 0x1a4   :  { %v1571_v55 = vrot.slane %v1570_v58, 4  ;;  %v1607_v28 = vadd.f32 %v1606_v35, %v1592_v38  ;;  %v1210_v19 = vadd.f32 %v1209_v17, %v1208_v2  ;;  %v1174_v61 = vrot.slane %v1173_v63, 1 }
 0x1a5   :  { %v813_v17 = vadd.f32 %v811_v4, %v412_v3 }
 0x1a6   :  { %v1572_v13 = vadd.f32 %v1571_v55, %v1570_v58  ;;  %v1608_v60 = vrot.slane %v1607_v28, 4  ;;  %v1211_v16 = vrot.slane %v1210_v19, 1  ;;  %v1175_v24 = vadd.f32 %v1174_v61, %v1173_v63 }
 0x1a8   :  { %v1573_v32 = vrot.slane %v1572_v13, 2  ;;  %v1609_v48 = vadd.f32 %v1608_v60, %v1607_v28  ;;  %v1212_v25 = vadd.f32 %v1211_v16, %v1210_v19  ;;  %v1213_v2 = vadd.f32 %v1175_v24, %v812_v5  ;;  %v1634_v60 = vld [vmem:[%s4396_s3] sm:$0x1] }
 0x1a9   :  { %v4477_v5 = vld [vmem:[#allocation11_spill] sm:$0xff] }
 0x1aa   :  { %v1574_v56 = vadd.f32 %v1573_v32, %v1572_v13  ;;  %v1610_v10 = vrot.slane %v1609_v48, 2  ;;  %v1214_v55 = vadd.f32 %v1212_v25, %v813_v17  ;;  %v4480_v17 = vld [vmem:[#allocation17_spill] sm:$0xff] }
 0x1ac   :  { %v1575_v35 = vrot.slane %v1574_v56, 1  ;;  %v1611_v38 = vadd.f32 %v1610_v10, %v1609_v48  ;;  %v4476_v10 = vld [vmem:[#allocation9_spill] sm:$0xff] }
 0x1ae   :  { %v1576_v26 = vadd.f32 %v1575_v35, %v1574_v56  ;;  %v1612_v58 = vrot.slane %v1611_v38, 1  ;;  %v4478_v35 = vld [vmem:[#allocation13_spill] sm:$0xff] }
 0x1b0   :  { %v1613_v21 = vadd.f32 %v1612_v58, %v1611_v38  ;;  %v1614_v59 = vadd.f32 %v1576_v26, %v1213_v2  ;;  %v1632_v26 = vld [vmem:[%s4395_s2] sm:$0x1]  ;;  %v4482_v58 = vld [vmem:[#allocation21_spill] sm:$0xff] }
 0x1b1   :  { %v4479_v38 = vld [vmem:[#allocation15_spill] sm:$0xff] }
 0x1b2   :  { %v1615_v51 = vadd.f32 %v1613_v21, %v1214_v55  ;;  %v1616_v15 = vmul.f32 0.001953125, %v1614_v59  ;;  %v4481_v2 = vld [vmem:[#allocation19_spill] sm:$0xff] }
 0x1b3   :  { %v4483_v55 = vld [vmem:[#allocation23_spill] sm:$0xff] }
 0x1b4   :  { %v1617_v28 = vmul.f32 0.001953125, %v1615_v51  ;;  %v1618_v9 = vmul.f32 %v1616_v15, %v1616_v15  ;;  %v4484_v51 = vld [vmem:[#allocation25_spill] sm:$0xff] }
 0x1b6   :  { %v1619_v33 = vsub.f32 %v1617_v28, %v1618_v9  ;;  %v4485_v9 = vld [vmem:[#allocation27_spill] sm:$0xff] }
 0x1b8   :  { %v1620_v63 = vmax.f32 %v1619_v33, 0.0 }
 0x1ba   :  { %v1621_v49 = vadd.f32 1e-05, %v1620_v63 }
 0x1bc   :  { %3055 = vrsqrt.f32 %v1621_v49  ;;  %vm1628_vm1 = vweird.f32 %v1621_v49 }
 0x1c2   :  { %v3056_v18 = vpop.eup %3055 }
 0x1c3   :  { %v1623_v39 = vmul.f32 %v3056_v18, %v1621_v49  ;;  %vm1629_vm0 = vweird.f32 %v3056_v18  ;;  %v4486_v49 = vld [vmem:[#allocation3_spill] sm:$0xff] }
 0x1c4   :  { %vm1630_vm2 = vmor %vm1628_vm1, %vm1629_vm0 }
 0x1c5   :  { %v1624_v19 = vmul.f32 %v3056_v18, %v1623_v39  ;;  %v4487_v39 = vld [vmem:[#allocation4_spill] sm:$0xff] }
 0x1c7   :  { %v1625_v61 = vmul.f32 0.5, %v1624_v19 }
 0x1c9   :  { %v1626_v13 = vsub.f32 1.5, %v1625_v61  ;;  %v4488_v61 = vld [vmem:[#allocation5_spill] sm:$0xff] }
 0x1cb   :  { %v1627_v24 = vmul.f32 %v3056_v18, %v1626_v13 }
 0x1cd   :  { %v1631_v21 = vsel %vm1630_vm2, %v3056_v18, %v1627_v24  ;;  %v4489_v24 = vld [vmem:[#allocation6_spill] sm:$0xff] }
 0x1ce   :  { %v1633_v25 = vmul.f32 %v1632_v26, %v1631_v21  ;;  %v4490_v21 = vld [vmem:[#allocation7_spill] sm:$0xff] }
 0x1d0   :  { %v1635_v20 = vmul.f32 %v1633_v25, %v1616_v15  ;;  %v4101_v44 = vperm.slane %v1633_v25, 0 }
 0x1d2   :  { %v1636_v16 = vsub.f32 %v1634_v60, %v1635_v20  ;;  %v1654_v32 = vmul.f32 %v4101_v44, %v3490_v46  ;;  %v1655_v48 = vmul.f32 %v4101_v44, %v3494_v52  ;;  %v1656_v41 = vmul.f32 %v4101_v44, %v3522_v6  ;;  %v4491_v60 = vld [vmem:[#allocation8_spill] sm:$0xff] }
 0x1d3   :  { %v1657_v4 = vmul.f32 %v4101_v44, %v3526_v12  ;;  %v1658_v56 = vmul.f32 %v4101_v44, %v3554_v30  ;;  %v1659_v15 = vmul.f32 %v4101_v44, %v3558_v36  ;;  %v1660_v3 = vmul.f32 %v4101_v44, %v4476_v10 }
 0x1d4   :  { %v1661_v46 = vmul.f32 %v4101_v44, %v4477_v5  ;;  %v1662_v52 = vmul.f32 %v4101_v44, %v4478_v35  ;;  %v1663_v6 = vmul.f32 %v4101_v44, %v4479_v38  ;;  %v1664_v12 = vmul.f32 %v4101_v44, %v4480_v17 }
 0x1d5   :  { %v1665_v30 = vmul.f32 %v4101_v44, %v4481_v2  ;;  %v1666_v36 = vmul.f32 %v4101_v44, %v4482_v58  ;;  %v1667_v59 = vmul.f32 %v4101_v44, %v4483_v55  ;;  %v1668_v28 = vmul.f32 %v4101_v44, %v4484_v51 }
 0x1d6   :  { %v1669_v33 = vmul.f32 %v4101_v44, %v4485_v9  ;;  %v4135_v63 = vperm.slane %v1636_v16, 0  ;;  %v1753_v18 = vmul.f32 %v4101_v44, %v4486_v49  ;;  %v1754_v19 = vmul.f32 %v4101_v44, %v4487_v39 }
 0x1d7   :  { %v1755_v13 = vmul.f32 %v4101_v44, %v4488_v61  ;;  %v1756_v26 = vmul.f32 %v4101_v44, %v4489_v24  ;;  %v1757_v25 = vmul.f32 %v4101_v44, %v4490_v21  ;;  %v1758_v20 = vmul.f32 %v4101_v44, %v4491_v60 }
 0x1d8   :  { %v1673_v16 = vadd.f32 %v4135_v63, %v1654_v32  ;;  %v1674_v10 = vadd.f32 %v4135_v63, %v1655_v48  ;;  %v1675_v5 = vadd.f32 %v4135_v63, %v1656_v41  ;;  %v1676_v35 = vadd.f32 %v4135_v63, %v1657_v4 }
 0x1d9   :  { %v1677_v38 = vadd.f32 %v4135_v63, %v1658_v56  ;;  %v1678_v17 = vadd.f32 %v4135_v63, %v1659_v15  ;;  %v1679_v2 = vadd.f32 %v4135_v63, %v1660_v3  ;;  %v1680_v58 = vadd.f32 %v4135_v63, %v1661_v46 }
 0x1da   :  { %v1681_v55 = vadd.f32 %v4135_v63, %v1662_v52  ;;  %v1682_v51 = vadd.f32 %v4135_v63, %v1663_v6  ;;  %v1683_v32 = vadd.f32 %v4135_v63, %v1664_v12  ;;  %v1684_v48 = vadd.f32 %v4135_v63, %v1665_v30 }
 0x1db   :  { %v1685_v41 = vadd.f32 %v4135_v63, %v1666_v36  ;;  %v1686_v4 = vadd.f32 %v4135_v63, %v1667_v59  ;;  %v1687_v56 = vadd.f32 %v4135_v63, %v1668_v28  ;;  %v1688_v15 = vadd.f32 %v4135_v63, %v1669_v33 }
 0x1dc   :  { %v1689_v9 = vmax.f32 %v1673_v16, 0.0  ;;  %v1690_v3 = vmax.f32 %v1674_v10, 0.0  ;;  %v1691_v49 = vmax.f32 %v1675_v5, 0.0  ;;  %v1692_v46 = vmax.f32 %v1676_v35, 0.0 }
 0x1dd   :  { %v1693_v39 = vmax.f32 %v1677_v38, 0.0  ;;  %v1694_v52 = vmax.f32 %v1678_v17, 0.0  ;;  %v1695_v61 = vmax.f32 %v1679_v2, 0.0  ;;  %v1696_v6 = vmax.f32 %v1680_v58, 0.0  ;;  %v4492_v38 = vld [vmem:[#allocation10_spill] sm:$0xff]  ;;  %v4493_v2 = vld [vmem:[#allocation12_spill] sm:$0xff] }
 0x1de   :  { %v1697_v24 = vmax.f32 %v1681_v55, 0.0  ;;  %v1698_v12 = vmax.f32 %v1682_v51, 0.0  ;;  %v1699_v21 = vmax.f32 %v1683_v32, 0.0  ;;  %v1700_v30 = vmax.f32 %v1684_v48, 0.0  ;;  %v4494_v55 = vld [vmem:[#allocation14_spill] sm:$0xff]  ;;  %v4495_v32 = vld [vmem:[#allocation16_spill] sm:$0xff] }
 0x1df   :  { %v1701_v60 = vmax.f32 %v1685_v41, 0.0  ;;  %v1702_v36 = vmax.f32 %v1686_v4, 0.0  ;;  %v1703_v54 = vmax.f32 %v1687_v56, 0.0  ;;  %v1704_v59 = vmax.f32 %v1688_v15, 0.0  ;;  %v4498_v56 = vld [vmem:[#allocation22_spill] sm:$0xff] }
 0x1e0   :  { %v2867_v40 = vpack.c.bf16 %v1690_v3, %v1689_v9  ;;  %v2872_v28 = vpack.c.bf16 %v1692_v46, %v1691_v49  ;;  %v2877_v31 = vpack.c.bf16 %v1694_v52, %v1693_v39  ;;  %v2882_v33 = vpack.c.bf16 %v1696_v6, %v1695_v61  ;;  %v4499_v9 = vld [vmem:[#allocation24_spill] sm:$0xff]  ;;  %v4500_v49 = vld [vmem:[#allocation26_spill] sm:$0xff] }
 0x1e1   :  { %v2887_v16 = vpack.c.bf16 %v1698_v12, %v1697_v24  ;;  %v2892_v10 = vpack.c.bf16 %v1700_v30, %v1699_v21  ;;  %v2897_v5 = vpack.c.bf16 %v1702_v36, %v1701_v60  ;;  %v2902_v35 = vpack.c.bf16 %v1704_v59, %v1703_v54  ;;  %v4496_v54 = vld [vmem:[#allocation18_spill] sm:$0xff] }
 0x1e2   :  { %2868 = vst [vmem:[%s4397_s4] sm:$0xff] %v2867_v40   ;;  %v1759_v17 = vmul.f32 %v4101_v44, %v4492_v38  ;;  %v1760_v58 = vmul.f32 %v4101_v44, %v4493_v2  ;;  %v1761_v51 = vmul.f32 %v4101_v44, %v4494_v55  ;;  %v1762_v48 = vmul.f32 %v4101_v44, %v4495_v32  ;;  %v4497_v40 = vld [vmem:[#allocation20_spill] sm:$0xff] }
 0x1e3   :  { %3024 = vst [vmem:[%s4397_s4 + $0x8] sm:$0xff] %v2872_v28   ;;  %v1763_v41 = vmul.f32 %v4101_v44, %v4496_v54  ;;  %v1764_v4 = vmul.f32 %v4101_v44, %v4497_v40  ;;  %v1765_v15 = vmul.f32 %v4101_v44, %v4498_v56  ;;  %v1766_v3 = vmul.f32 %v4101_v44, %v4499_v9 }
 0x1e4   :  { %3025 = vst [vmem:[%s4397_s4 + $0x10] sm:$0xff] %v2877_v31   ;;  %v1767_v46 = vmul.f32 %v4101_v44, %v4500_v49  ;;  %v1768_v39 = vmul.f32 %v4101_v44, %v3772_v23  ;;  %v1769_v52 = vadd.f32 %v1753_v18, %v4135_v63  ;;  %v1770_v61 = vadd.f32 %v1754_v19, %v4135_v63  ;;  %v4501_v49 = vld [vmem:[#allocation28_spill] sm:$0xff] }
 0x1e5   :  { %3026 = vst [vmem:[%s4397_s4 + $0x18] sm:$0xff] %v2882_v33   ;;  %v1771_v6 = vadd.f32 %v1755_v13, %v4135_v63  ;;  %v1772_v24 = vadd.f32 %v1756_v26, %v4135_v63  ;;  %v1773_v31 = vadd.f32 %v1757_v25, %v4135_v63  ;;  %v1774_v12 = vadd.f32 %v1758_v20, %v4135_v63 }
 0x1e6   :  { %3027 = vst [vmem:[%s4397_s4 + $0x20] sm:$0xff] %v2887_v16   ;;  %v1775_v23 = vadd.f32 %v1759_v17, %v4135_v63  ;;  %v1776_v18 = vadd.f32 %v1760_v58, %v4135_v63  ;;  %v1777_v19 = vadd.f32 %v1761_v51, %v4135_v63  ;;  %v1778_v21 = vadd.f32 %v1762_v48, %v4135_v63 }
 0x1e7   :  { %3028 = vst [vmem:[%s4397_s4 + $0x28] sm:$0xff] %v2892_v10   ;;  %v1779_v13 = vadd.f32 %v1763_v41, %v4135_v63  ;;  %v1780_v26 = vadd.f32 %v1764_v4, %v4135_v63  ;;  %v1781_v25 = vadd.f32 %v1765_v15, %v4135_v63  ;;  %v1782_v20 = vadd.f32 %v1766_v3, %v4135_v63 }
 0x1e8   :  { %3029 = vst [vmem:[%s4397_s4 + $0x30] sm:$0xff] %v2897_v5   ;;  %v1783_v30 = vadd.f32 %v1767_v46, %v4135_v63  ;;  %v1784_v60 = vadd.f32 %v1768_v39, %v4135_v63  ;;  %v1785_v36 = vmax.f32 %v1769_v52, 0.0  ;;  %v1786_v59 = vmax.f32 %v1770_v61, 0.0  ;;  %v4502_v39 = vld [vmem:[#allocation29_spill] sm:$0xff] }
 0x1e9   :  { %3030 = vst [vmem:[%s4397_s4 + $0x38] sm:$0xff] %v2902_v35   ;;  %v1787_v28 = vmax.f32 %v1771_v6, 0.0  ;;  %v1788_v33 = vmax.f32 %v1772_v24, 0.0  ;;  %v1789_v16 = vmax.f32 %v1773_v31, 0.0  ;;  %v1790_v10 = vmax.f32 %v1774_v12, 0.0 }
 0x1ea   :  { %v1791_v38 = vmax.f32 %v1775_v23, 0.0  ;;  %v1792_v17 = vmax.f32 %v1776_v18, 0.0  ;;  %v1793_v2 = vmax.f32 %v1777_v19, 0.0  ;;  %v1794_v58 = vmax.f32 %v1778_v21, 0.0 }
 0x1eb   :  { %v1795_v55 = vmax.f32 %v1779_v13, 0.0  ;;  %v1796_v5 = vmax.f32 %v1780_v26, 0.0  ;;  %v1797_v51 = vmax.f32 %v1781_v25, 0.0  ;;  %v1798_v32 = vmax.f32 %v1782_v20, 0.0 }
 0x1ec   :  { %v1799_v48 = vmax.f32 %v1783_v30, 0.0  ;;  %v1800_v54 = vmax.f32 %v1784_v60, 0.0  ;;  %v2907_v41 = vpack.c.bf16 %v1786_v59, %v1785_v36  ;;  %v2912_v40 = vpack.c.bf16 %v1788_v33, %v1787_v28 }
 0x1ed   :  { %v2917_v4 = vpack.c.bf16 %v1790_v10, %v1789_v16  ;;  %v2922_v56 = vpack.c.bf16 %v1792_v17, %v1791_v38  ;;  %v2927_v15 = vpack.c.bf16 %v1794_v58, %v1793_v2  ;;  %v2932_v35 = vpack.c.bf16 %v1796_v5, %v1795_v55 }
 0x1ee   :  { %3031 = vst [vmem:[%s4397_s4 + $0x40] sm:$0xff] %v2907_v41   ;;  %v2937_v9 = vpack.c.bf16 %v1798_v32, %v1797_v51  ;;  %v2942_v3 = vpack.c.bf16 %v1800_v54, %v1799_v48  ;;  %v1850_v46 = vmul.f32 %v4101_v44, %v4501_v49  ;;  %v1851_v52 = vmul.f32 %v4101_v44, %v4502_v39 }
 0x1ef   :  { %3032 = vst [vmem:[%s4397_s4 + $0x48] sm:$0xff] %v2912_v40   ;;  %v1852_v61 = vmul.f32 %v4101_v44, %v3782_v50  ;;  %v1853_v6 = vmul.f32 %v4101_v44, %v3786_v0  ;;  %v1854_v24 = vmul.f32 %v4101_v44, %v3790_v14  ;;  %v1855_v31 = vmul.f32 %v4101_v44, %v3914_v29 }
 0x1f0   :  { %3033 = vst [vmem:[%s4397_s4 + $0x50] sm:$0xff] %v2917_v4   ;;  %v1856_v12 = vmul.f32 %v4101_v44, %v3923_v8  ;;  %v1857_v23 = vmul.f32 %v4101_v44, %v3937_v37  ;;  %v1858_v50 = vmul.f32 %v4101_v44, %v3952_v43  ;;  %v1859_v0 = vmul.f32 %v4101_v44, %v3970_v27 }
 0x1f1   :  { %3034 = vst [vmem:[%s4397_s4 + $0x58] sm:$0xff] %v2922_v56   ;;  %v1860_v29 = vmul.f32 %v4101_v44, %v3984_v1  ;;  %v1861_v14 = vmul.f32 %v4101_v44, %v3998_v45  ;;  %v1862_v8 = vmul.f32 %v4101_v44, %v4011_v62  ;;  %v1863_v37 = vmul.f32 %v4101_v44, %v4023_v53 }
 0x1f2   :  { %3035 = vst [vmem:[%s4397_s4 + $0x60] sm:$0xff] %v2927_v15   ;;  %v1864_v43 = vmul.f32 %v4101_v44, %v4035_v11  ;;  %v1865_v27 = vmul.f32 %v4101_v44, %v4068_v47  ;;  %v1866_v1 = vadd.f32 %v1850_v46, %v4135_v63  ;;  %v1867_v45 = vadd.f32 %v1851_v52, %v4135_v63  ;;  %v4503_v52 = vld [vmem:[#allocation30_spill] sm:$0xff] }
 0x1f3   :  { %3036 = vst [vmem:[%s4397_s4 + $0x68] sm:$0xff] %v2932_v35   ;;  %v1868_v62 = vadd.f32 %v1852_v61, %v4135_v63  ;;  %v1869_v53 = vadd.f32 %v1853_v6, %v4135_v63  ;;  %v1870_v18 = vadd.f32 %v1854_v24, %v4135_v63  ;;  %v1871_v19 = vadd.f32 %v1855_v31, %v4135_v63 }
 0x1f4   :  { %3037 = vst [vmem:[%s4397_s4 + $0x70] sm:$0xff] %v2937_v9   ;;  %v1872_v11 = vadd.f32 %v1856_v12, %v4135_v63  ;;  %v1873_v47 = vadd.f32 %v1857_v23, %v4135_v63  ;;  %v1874_v21 = vadd.f32 %v1858_v50, %v4135_v63  ;;  %v1875_v13 = vadd.f32 %v1859_v0, %v4135_v63  ;;  %v4505_v12 = vld [vmem:[#allocation32_spill] sm:$0xff]  ;;  %v4506_v50 = vld [vmem:[#allocation33_spill] sm:$0xff] }
 0x1f5   :  { %3038 = vst [vmem:[%s4397_s4 + $0x78] sm:$0xff] %v2942_v3   ;;  %v1876_v26 = vadd.f32 %v1860_v29, %v4135_v63  ;;  %v1877_v25 = vadd.f32 %v1861_v14, %v4135_v63  ;;  %v1878_v20 = vadd.f32 %v1862_v8, %v4135_v63  ;;  %v1879_v30 = vadd.f32 %v1863_v37, %v4135_v63  ;;  %v4509_v14 = vld [vmem:[#allocation36_spill] sm:$0xff]  ;;  %v4510_v37 = vld [vmem:[#allocation37_spill] sm:$0xff] }
 0x1f6   :  { %v1880_v60 = vadd.f32 %v1864_v43, %v4135_v63  ;;  %v1881_v36 = vadd.f32 %v1865_v27, %v4135_v63  ;;  %v1882_v59 = vmax.f32 %v1866_v1, 0.0  ;;  %v1883_v28 = vmax.f32 %v1867_v45, 0.0  ;;  %v4511_v27 = vld [vmem:[#allocation38_spill] sm:$0xff]  ;;  %v4512_v45 = vld [vmem:[#allocation39_spill] sm:$0xff] }
 0x1f7   :  { %v1884_v33 = vmax.f32 %v1868_v62, 0.0  ;;  %v1885_v16 = vmax.f32 %v1869_v53, 0.0  ;;  %v1886_v10 = vmax.f32 %v1870_v18, 0.0  ;;  %v1887_v38 = vmax.f32 %v1871_v19, 0.0  ;;  %v4513_v53 = vld [vmem:[#allocation40_spill] sm:$0xff] }
 0x1f8   :  { %v1888_v17 = vmax.f32 %v1872_v11, 0.0  ;;  %v1889_v2 = vmax.f32 %v1873_v47, 0.0  ;;  %v1890_v58 = vmax.f32 %v1874_v21, 0.0  ;;  %v1891_v55 = vmax.f32 %v1875_v13, 0.0 }
 0x1f9   :  { %v1892_v5 = vmax.f32 %v1876_v26, 0.0  ;;  %v1893_v51 = vmax.f32 %v1877_v25, 0.0  ;;  %v1894_v32 = vmax.f32 %v1878_v20, 0.0  ;;  %v1895_v48 = vmax.f32 %v1879_v30, 0.0 }
 0x1fa   :  { %v1896_v54 = vmax.f32 %v1880_v60, 0.0  ;;  %v1897_v41 = vmax.f32 %v1881_v36, 0.0  ;;  %v2947_v40 = vpack.c.bf16 %v1883_v28, %v1882_v59  ;;  %v2952_v4 = vpack.c.bf16 %v1885_v16, %v1884_v33 }
 0x1fb   :  { %v2957_v56 = vpack.c.bf16 %v1887_v38, %v1886_v10  ;;  %v2962_v15 = vpack.c.bf16 %v1889_v2, %v1888_v17  ;;  %v2967_v35 = vpack.c.bf16 %v1891_v55, %v1890_v58  ;;  %v2972_v9 = vpack.c.bf16 %v1893_v51, %v1892_v5 }
 0x1fc   :  { %3039 = vst [vmem:[%s4397_s4 + $0x80] sm:$0xff] %v2947_v40   ;;  %v2977_v3 = vpack.c.bf16 %v1895_v48, %v1894_v32  ;;  %v2982_v49 = vpack.c.bf16 %v1897_v41, %v1896_v54  ;;  %v1947_v46 = vmul.f32 %v4101_v44, %v3776_v34  ;;  %v1948_v39 = vmul.f32 %v4101_v44, %v3780_v42  ;;  %v4504_v34 = vld [vmem:[#allocation31_spill] sm:$0xff] }
 0x1fd   :  { %3040 = vst [vmem:[%s4397_s4 + $0x88] sm:$0xff] %v2952_v4   ;;  %v1949_v61 = vmul.f32 %v4101_v44, %v4503_v52  ;;  %v1950_v6 = vmul.f32 %v4101_v44, %v3788_v7  ;;  %v1951_v24 = vmul.f32 %v4101_v44, %v3792_v22  ;;  %v1952_v31 = vmul.f32 %v4101_v44, %v3963_v57  ;;  %v4507_v7 = vld [vmem:[#allocation34_spill] sm:$0xff]  ;;  %v4508_v22 = vld [vmem:[#allocation35_spill] sm:$0xff] }
 0x1fe   :  { %3041 = vst [vmem:[%s4397_s4 + $0x90] sm:$0xff] %v2957_v56   ;;  %v1953_v42 = vmul.f32 %v4101_v44, %v4504_v34  ;;  %v1954_v23 = vmul.f32 %v4101_v44, %v4505_v12  ;;  %v1955_v0 = vmul.f32 %v4101_v44, %v4506_v50  ;;  %v1956_v29 = vmul.f32 %v4101_v44, %v4507_v7 }
 0x1ff   :  { %3042 = vst [vmem:[%s4397_s4 + $0x98] sm:$0xff] %v2962_v15   ;;  %v1957_v57 = vmul.f32 %v4101_v44, %v4508_v22  ;;  %v1958_v8 = vmul.f32 %v4101_v44, %v4509_v14  ;;  %v1959_v43 = vmul.f32 %v4101_v44, %v4510_v37  ;;  %v1960_v1 = vmul.f32 %v4101_v44, %v4511_v27 }
 0x200   :  { %3043 = vst [vmem:[%s4397_s4 + $0xa0] sm:$0xff] %v2967_v35   ;;  %v1961_v62 = vmul.f32 %v4101_v44, %v4512_v45  ;;  %v1962_v18 = vmul.f32 %v4101_v44, %v4513_v53  ;;  %v1963_v19 = vadd.f32 %v1947_v46, %v4135_v63  ;;  %v1964_v11 = vadd.f32 %v1948_v39, %v4135_v63 }
 0x201   :  { %3044 = vst [vmem:[%s4397_s4 + $0xa8] sm:$0xff] %v2972_v9   ;;  %v1965_v47 = vadd.f32 %v1949_v61, %v4135_v63  ;;  %v1966_v21 = vadd.f32 %v1950_v6, %v4135_v63  ;;  %v1967_v13 = vadd.f32 %v1951_v24, %v4135_v63  ;;  %v1968_v26 = vadd.f32 %v1952_v31, %v4135_v63 }
 0x202   :  { %3045 = vst [vmem:[%s4397_s4 + $0xb0] sm:$0xff] %v2977_v3   ;;  %v1969_v44 = vadd.f32 %v1953_v42, %v4135_v63  ;;  %v1970_v25 = vadd.f32 %v1954_v23, %v4135_v63  ;;  %v1971_v20 = vadd.f32 %v1955_v0, %v4135_v63  ;;  %v1972_v30 = vadd.f32 %v1956_v29, %v4135_v63 }
 0x203   :  { %3046 = vst [vmem:[%s4397_s4 + $0xb8] sm:$0xff] %v2982_v49   ;;  %v1973_v60 = vadd.f32 %v1957_v57, %v4135_v63  ;;  %v1974_v36 = vadd.f32 %v1958_v8, %v4135_v63  ;;  %v1975_v59 = vadd.f32 %v1959_v43, %v4135_v63  ;;  %v1976_v28 = vadd.f32 %v1960_v1, %v4135_v63 }
 0x204   :  { %v1977_v33 = vadd.f32 %v1961_v62, %v4135_v63  ;;  %v1978_v16 = vadd.f32 %v1962_v18, %v4135_v63  ;;  %v1979_v10 = vmax.f32 %v1963_v19, 0.0  ;;  %v1980_v38 = vmax.f32 %v1964_v11, 0.0 }
 0x205   :  { %v1981_v17 = vmax.f32 %v1965_v47, 0.0  ;;  %v1982_v2 = vmax.f32 %v1966_v21, 0.0  ;;  %v1983_v58 = vmax.f32 %v1967_v13, 0.0  ;;  %v1984_v55 = vmax.f32 %v1968_v26, 0.0 }
 0x206   :  { %v1985_v5 = vmax.f32 %v1969_v44, 0.0  ;;  %v1986_v51 = vmax.f32 %v1970_v25, 0.0  ;;  %v1987_v32 = vmax.f32 %v1971_v20, 0.0  ;;  %v1988_v48 = vmax.f32 %v1972_v30, 0.0 }
 0x207   :  { %v1989_v54 = vmax.f32 %v1973_v60, 0.0  ;;  %v1990_v41 = vmax.f32 %v1974_v36, 0.0  ;;  %v1991_v40 = vmax.f32 %v1975_v59, 0.0  ;;  %v1992_v4 = vmax.f32 %v1976_v28, 0.0 }
 0x208   :  { %v1993_v56 = vmax.f32 %v1977_v33, 0.0  ;;  %v1994_v15 = vmax.f32 %v1978_v16, 0.0  ;;  %v2987_v35 = vpack.c.bf16 %v1980_v38, %v1979_v10  ;;  %v2992_v9 = vpack.c.bf16 %v1982_v2, %v1981_v17 }
 0x209   :  { %v2997_v3 = vpack.c.bf16 %v1984_v55, %v1983_v58  ;;  %v3002_v63 = vpack.c.bf16 %v1986_v51, %v1985_v5  ;;  %v3007_v49 = vpack.c.bf16 %v1988_v48, %v1987_v32  ;;  %v3012_v46 = vpack.c.bf16 %v1990_v41, %v1989_v54 }
 0x20a   :  { %3047 = vst [vmem:[%s4397_s4 + $0xc0] sm:$0xff] %v2987_v35   ;;  %v3017_v39 = vpack.c.bf16 %v1992_v4, %v1991_v40  ;;  %v3022_v52 = vpack.c.bf16 %v1994_v15, %v1993_v56 }
 0x20b   :  { %3048 = vst [vmem:[%s4397_s4 + $0xc8] sm:$0xff] %v2992_v9  }
 0x20c   :  { %3049 = vst [vmem:[%s4397_s4 + $0xd0] sm:$0xff] %v2997_v3  }
 0x20d   :  { %3050 = vst [vmem:[%s4397_s4 + $0xd8] sm:$0xff] %v3002_v63  }
 0x20e   :  { %3051 = vst [vmem:[%s4397_s4 + $0xe0] sm:$0xff] %v3007_v49  }
 0x20f   :  { %3052 = vst [vmem:[%s4397_s4 + $0xe8] sm:$0xff] %v3012_v46  }
 0x210   :  { %3053 = vst [vmem:[%s4397_s4 + $0xf0] sm:$0xff] %v3017_v39  }
 0x211   :  { %3054 = vst [vmem:[%s4397_s4 + $0xf8] sm:$0xff] %v3022_v52  }

// kernel: _lambda_.7
= control target key start
LH: loop header
LB: loop body
LE: loop exit
PB: predicated region body
PF: predicated region fallthrough
CT: control target
= control target key end

     0   :  { %s1055_s9 = smov 0   ;;  %s1190_s0 = inlined_call_operand.vmem [shape: bf16[4,512,128], index: 0, kind: input, shape index: {}]   ;;  %s1191_s1 = inlined_call_operand.vmem [shape: bf16[4,128,128], index: 1, kind: input, shape index: {}]   ;;  %s1192_s2 = inlined_call_operand.vmem [shape: f32[4,512,128], index: 2, kind: output, shape index: {}]  }
   0x1 LB: > { %s784_s10 = sadd.s32 4294967295, %s1038_s9   ;;  %p788_p0 = scmp.ge.s32.totalorder %s1038_s9, 1  ;;  %s1038_s9 = sphi %s1055_s9, %s12_s9  }
   0x2   : > { %p122_p1 = scmp.lt.s32.totalorder %s1038_s9, 5 }
   0x4   : > { %p123_p2 = pnand %p788_p0, %p122_p1 }
   0x5   : > { %p149_p3 = scmp.lt.s32.totalorder (!%p123_p2), %s784_s10, 3 }
   0x6   : > { %126 = sbr.rel (%p123_p2) target bundleno = 301 (0x12d), region = 28 }
   0xb   : > { %s1194_s10 = smov (!%p149_p3, %s784_s10), 3 }
   0xc   : > { %s958_s11 = sshll.u32 %s1194_s10, 6  ;;  %s957_s15 = sshll.u32 %s1194_s10, 8 }
   0xd   : > { %s1069_s14 = scalar_lea.vmem %s1191_s1, %s958_s11  ;;  %s1082_s18 = scalar_lea.vmem %s1190_s0, %s957_s15 }
   0xe   : > { %v999_v0 = vld [vmem:[%s1069_s14 + $0x38] sm:$0xff]  ;;  %v998_v1 = vld [vmem:[%s1069_s14 + $0x30] sm:$0xff]  ;;  %v997_v2 = vld [vmem:[%s1069_s14 + $0x28] sm:$0xff]  ;;  %s959_s19 = sshll.u32 %s1194_s10, 9 }
   0xf   : > { %484 = vmatpush.bf16.msra.mxu0 %v999_v0  ;;  %1000 = vmatpush.bf16.msra.mxu1 %v999_v0  ;;  %v996_v3 = vld [vmem:[%s1069_s14 + $0x20] sm:$0xff]  ;;  %v995_v4 = vld [vmem:[%s1069_s14 + $0x18] sm:$0xff]  ;;  %v994_v5 = vld [vmem:[%s1069_s14 + $0x10] sm:$0xff]  ;;  %s1121_s22 = scalar_lea.vmem %s1192_s2, %s959_s19 }
  0x10   : > { %1001 = vmatpush.bf16.msra.mxu2 %v999_v0  ;;  %1002 = vmatpush.bf16.msra.mxu3 %v999_v0  ;;  %v993_v6 = vld [vmem:[%s1069_s14 + $0x8] sm:$0xff]  ;;  %v992_v7 = vld [vmem:[%s1069_s14] sm:$0xff]  ;;  %v962_v16 = vld [vmem:[%s1082_s18 + $0x10] sm:$0xff] }
  0x11   : > { %v960_v8 = vld [vmem:[%s1082_s18] sm:$0xff]  ;;  %v961_v12 = vld [vmem:[%s1082_s18 + $0x8] sm:$0xff]  ;;  %v970_v17 = vld [vmem:[%s1082_s18 + $0x50] sm:$0xff] }
  0x12   : > { %v968_v9 = vld [vmem:[%s1082_s18 + $0x40] sm:$0xff]  ;;  %v969_v13 = vld [vmem:[%s1082_s18 + $0x48] sm:$0xff]  ;;  %v978_v18 = vld [vmem:[%s1082_s18 + $0x90] sm:$0xff] }
  0x13   : > { %485 = vmatpush.bf16.msra.mxu0 %v998_v1  ;;  %1003 = vmatpush.bf16.msra.mxu1 %v998_v1  ;;  %v976_v10 = vld [vmem:[%s1082_s18 + $0x80] sm:$0xff]  ;;  %v977_v14 = vld [vmem:[%s1082_s18 + $0x88] sm:$0xff]  ;;  %v986_v19 = vld [vmem:[%s1082_s18 + $0xd0] sm:$0xff] }
  0x14   : > { %1004 = vmatpush.bf16.msra.mxu2 %v998_v1  ;;  %1005 = vmatpush.bf16.msra.mxu3 %v998_v1  ;;  %v984_v11 = vld [vmem:[%s1082_s18 + $0xc0] sm:$0xff]  ;;  %v985_v15 = vld [vmem:[%s1082_s18 + $0xc8] sm:$0xff]  ;;  %v963_v20 = vld [vmem:[%s1082_s18 + $0x18] sm:$0xff] }
  0x15   : > { %v971_v21 = vld [vmem:[%s1082_s18 + $0x58] sm:$0xff]  ;;  %v964_v24 = vld [vmem:[%s1082_s18 + $0x20] sm:$0xff]  ;;  %v965_v28 = vld [vmem:[%s1082_s18 + $0x28] sm:$0xff] }
  0x16   : > { %v979_v22 = vld [vmem:[%s1082_s18 + $0x98] sm:$0xff]  ;;  %v972_v25 = vld [vmem:[%s1082_s18 + $0x60] sm:$0xff]  ;;  %v973_v29 = vld [vmem:[%s1082_s18 + $0x68] sm:$0xff] }
  0x17   : > { %486 = vmatpush.bf16.msra.mxu0 %v997_v2  ;;  %1006 = vmatpush.bf16.msra.mxu1 %v997_v2  ;;  %v987_v23 = vld [vmem:[%s1082_s18 + $0xd8] sm:$0xff]  ;;  %v980_v26 = vld [vmem:[%s1082_s18 + $0xa0] sm:$0xff]  ;;  %v981_v30 = vld [vmem:[%s1082_s18 + $0xa8] sm:$0xff] }
  0x18   : > { %1007 = vmatpush.bf16.msra.mxu2 %v997_v2  ;;  %1008 = vmatpush.bf16.msra.mxu3 %v997_v2  ;;  %v988_v27 = vld [vmem:[%s1082_s18 + $0xe0] sm:$0xff]  ;;  %v989_v31 = vld [vmem:[%s1082_s18 + $0xe8] sm:$0xff]  ;;  %v966_v32 = vld [vmem:[%s1082_s18 + $0x30] sm:$0xff] }
  0x19   : > { %v974_v33 = vld [vmem:[%s1082_s18 + $0x70] sm:$0xff]  ;;  %v967_v36 = vld [vmem:[%s1082_s18 + $0x38] sm:$0xff] }
  0x1a   : > { %v982_v34 = vld [vmem:[%s1082_s18 + $0xb0] sm:$0xff]  ;;  %v975_v37 = vld [vmem:[%s1082_s18 + $0x78] sm:$0xff] }
  0x1b   : > { %487 = vmatpush.bf16.msra.mxu0 %v996_v3  ;;  %1009 = vmatpush.bf16.msra.mxu1 %v996_v3  ;;  %v990_v35 = vld [vmem:[%s1082_s18 + $0xf0] sm:$0xff]  ;;  %v983_v38 = vld [vmem:[%s1082_s18 + $0xb8] sm:$0xff] }
  0x1c   : > { %1010 = vmatpush.bf16.msra.mxu2 %v996_v3  ;;  %1011 = vmatpush.bf16.msra.mxu3 %v996_v3  ;;  %v991_v39 = vld [vmem:[%s1082_s18 + $0xf8] sm:$0xff] }
  0x1f   : > { %488 = vmatpush.bf16.msra.mxu0 %v995_v4  ;;  %1012 = vmatpush.bf16.msra.mxu1 %v995_v4 }
  0x20   : > { %1013 = vmatpush.bf16.msra.mxu2 %v995_v4  ;;  %1014 = vmatpush.bf16.msra.mxu3 %v995_v4 }
  0x23   : > { %489 = vmatpush.bf16.msra.mxu0 %v994_v5  ;;  %1015 = vmatpush.bf16.msra.mxu1 %v994_v5 }
  0x24   : > { %1016 = vmatpush.bf16.msra.mxu2 %v994_v5  ;;  %1017 = vmatpush.bf16.msra.mxu3 %v994_v5 }
  0x27   : > { %490 = vmatpush.bf16.msra.mxu0 %v993_v6  ;;  %1018 = vmatpush.bf16.msra.mxu1 %v993_v6 }
  0x28   : > { %1019 = vmatpush.bf16.msra.mxu2 %v993_v6  ;;  %1020 = vmatpush.bf16.msra.mxu3 %v993_v6 }
  0x2b   : > { %491 = vmatpush.bf16.msra.mxu0 %v992_v7  ;;  %1021 = vmatpush.bf16.msra.mxu1 %v992_v7 }
  0x2c   : > { %1022 = vmatpush.bf16.msra.mxu2 %v992_v7  ;;  %1023 = vmatpush.bf16.msra.mxu3 %v992_v7 }
  0x2e   : > { %492 = vmatmul.bf16.vlgmr.msra.gmra.mxu0 %v960_v8  ;;  %532 = vmatmul.bf16.vlgmr.msra.gmra.mxu1 %v968_v9 }
  0x2f   : > { %572 = vmatmul.bf16.vlgmr.msra.gmra.mxu2 %v976_v10  ;;  %612 = vmatmul.bf16.vlgmr.msra.gmra.mxu3 %v984_v11 }
  0x3e   : > { %497 = vmatmul.bf16.gmra.mxu0 %v961_v12  ;;  %537 = vmatmul.bf16.gmra.mxu1 %v969_v13 }
  0x3f   : > { %577 = vmatmul.bf16.gmra.mxu2 %v977_v14  ;;  %617 = vmatmul.bf16.gmra.mxu3 %v985_v15 }
  0x4e   : > { %502 = vmatmul.bf16.gmra.mxu0 %v962_v16  ;;  %542 = vmatmul.bf16.gmra.mxu1 %v970_v17 }
  0x4f   : > { %582 = vmatmul.bf16.gmra.mxu2 %v978_v18  ;;  %622 = vmatmul.bf16.gmra.mxu3 %v986_v19 }
  0x5e   : > { %507 = vmatmul.bf16.gmra.mxu0 %v963_v20  ;;  %547 = vmatmul.bf16.gmra.mxu1 %v971_v21 }
  0x5f   : > { %587 = vmatmul.bf16.gmra.mxu2 %v979_v22  ;;  %627 = vmatmul.bf16.gmra.mxu3 %v987_v23 }
  0x6e   : > { %512 = vmatmul.bf16.gmra.mxu0 %v964_v24  ;;  %552 = vmatmul.bf16.gmra.mxu1 %v972_v25 }
  0x6f   : > { %592 = vmatmul.bf16.gmra.mxu2 %v980_v26  ;;  %632 = vmatmul.bf16.gmra.mxu3 %v988_v27 }
  0x7e   : > { %517 = vmatmul.bf16.gmra.mxu0 %v965_v28  ;;  %557 = vmatmul.bf16.gmra.mxu1 %v973_v29 }
  0x7f   : > { %597 = vmatmul.bf16.gmra.mxu2 %v981_v30  ;;  %637 = vmatmul.bf16.gmra.mxu3 %v989_v31 }
  0x8e   : > { %522 = vmatmul.bf16.gmra.mxu0 %v966_v32  ;;  %562 = vmatmul.bf16.gmra.mxu1 %v974_v33 }
  0x8f   : > { %602 = vmatmul.bf16.gmra.mxu2 %v982_v34  ;;  %642 = vmatmul.bf16.gmra.mxu3 %v990_v35 }
  0x9e   : > { %527 = vmatmul.bf16.gmra.mxu0 %v967_v36  ;;  %567 = vmatmul.bf16.gmra.mxu1 %v975_v37 }
  0x9f   : > { %607 = vmatmul.bf16.gmra.mxu2 %v983_v38  ;;  %647 = vmatmul.bf16.gmra.mxu3 %v991_v39 }
  0xab   : > { %v493_v40 = vpop.f32.mrf.mxu0  ;;  %v533_v41 = vpop.f32.mrf.mxu1 }
  0xac   : > { %653 = vst [vmem:[%s1121_s22] sm:$0xff] %v493_v40 }
  0xad   : > { %669 = vst [vmem:[%s1121_s22 + $0x80] sm:$0xff] %v533_v41 }
  0xb2   : > { %v573_v42 = vpop.f32.mrf.mxu2  ;;  %v613_v43 = vpop.f32.mrf.mxu3 }
  0xb3   : > { %685 = vst [vmem:[%s1121_s22 + $0x100] sm:$0xff] %v573_v42  ;;  %v495_v44 = vpop.f32.mrf.mxu0  ;;  %v535_v45 = vpop.f32.mrf.mxu1 }
  0xb4   : > { %701 = vst [vmem:[%s1121_s22 + $0x180] sm:$0xff] %v613_v43 }
  0xb5   : > { %654 = vst [vmem:[%s1121_s22 + $0x8] sm:$0xff] %v495_v44 }
  0xb6   : > { %670 = vst [vmem:[%s1121_s22 + $0x88] sm:$0xff] %v535_v45 }
  0xba   : > { %v575_v46 = vpop.f32.mrf.mxu2  ;;  %v615_v47 = vpop.f32.mrf.mxu3 }
  0xbb   : > { %686 = vst [vmem:[%s1121_s22 + $0x108] sm:$0xff] %v575_v46  ;;  %v498_v48 = vpop.f32.mrf.mxu0  ;;  %v538_v49 = vpop.f32.mrf.mxu1 }
  0xbc   : > { %702 = vst [vmem:[%s1121_s22 + $0x188] sm:$0xff] %v615_v47 }
  0xbd   : > { %655 = vst [vmem:[%s1121_s22 + $0x10] sm:$0xff] %v498_v48 }
  0xbe   : > { %671 = vst [vmem:[%s1121_s22 + $0x90] sm:$0xff] %v538_v49 }
  0xc2   : > { %v578_v50 = vpop.f32.mrf.mxu2  ;;  %v618_v51 = vpop.f32.mrf.mxu3 }
  0xc3   : > { %687 = vst [vmem:[%s1121_s22 + $0x110] sm:$0xff] %v578_v50  ;;  %v500_v52 = vpop.f32.mrf.mxu0  ;;  %v540_v53 = vpop.f32.mrf.mxu1 }
  0xc4   : > { %703 = vst [vmem:[%s1121_s22 + $0x190] sm:$0xff] %v618_v51 }
  0xc5   : > { %656 = vst [vmem:[%s1121_s22 + $0x18] sm:$0xff] %v500_v52 }
  0xc6   : > { %672 = vst [vmem:[%s1121_s22 + $0x98] sm:$0xff] %v540_v53 }
  0xca   : > { %v580_v54 = vpop.f32.mrf.mxu2  ;;  %v620_v55 = vpop.f32.mrf.mxu3 }
  0xcb   : > { %688 = vst [vmem:[%s1121_s22 + $0x118] sm:$0xff] %v580_v54  ;;  %v503_v56 = vpop.f32.mrf.mxu0  ;;  %v543_v57 = vpop.f32.mrf.mxu1 }
  0xcc   : > { %704 = vst [vmem:[%s1121_s22 + $0x198] sm:$0xff] %v620_v55 }
  0xcd   : > { %657 = vst [vmem:[%s1121_s22 + $0x20] sm:$0xff] %v503_v56 }
  0xce   : > { %673 = vst [vmem:[%s1121_s22 + $0xa0] sm:$0xff] %v543_v57 }
  0xd2   : > { %v583_v58 = vpop.f32.mrf.mxu2  ;;  %v623_v59 = vpop.f32.mrf.mxu3 }
  0xd3   : > { %689 = vst [vmem:[%s1121_s22 + $0x120] sm:$0xff] %v583_v58  ;;  %v505_v60 = vpop.f32.mrf.mxu0  ;;  %v545_v61 = vpop.f32.mrf.mxu1 }
  0xd4   : > { %705 = vst [vmem:[%s1121_s22 + $0x1a0] sm:$0xff] %v623_v59 }
  0xd5   : > { %658 = vst [vmem:[%s1121_s22 + $0x28] sm:$0xff] %v505_v60 }
  0xd6   : > { %674 = vst [vmem:[%s1121_s22 + $0xa8] sm:$0xff] %v545_v61 }
  0xda   : > { %v585_v62 = vpop.f32.mrf.mxu2  ;;  %v625_v63 = vpop.f32.mrf.mxu3 }
  0xdb   : > { %690 = vst [vmem:[%s1121_s22 + $0x128] sm:$0xff] %v585_v62  ;;  %v508_v0 = vpop.f32.mrf.mxu0  ;;  %v548_v1 = vpop.f32.mrf.mxu1 }
  0xdc   : > { %706 = vst [vmem:[%s1121_s22 + $0x1a8] sm:$0xff] %v625_v63 }
  0xdd   : > { %659 = vst [vmem:[%s1121_s22 + $0x30] sm:$0xff] %v508_v0 }
  0xde   : > { %675 = vst [vmem:[%s1121_s22 + $0xb0] sm:$0xff] %v548_v1 }
  0xe2   : > { %v588_v2 = vpop.f32.mrf.mxu2  ;;  %v628_v3 = vpop.f32.mrf.mxu3 }
  0xe3   : > { %691 = vst [vmem:[%s1121_s22 + $0x130] sm:$0xff] %v588_v2  ;;  %v510_v4 = vpop.f32.mrf.mxu0  ;;  %v550_v5 = vpop.f32.mrf.mxu1 }
  0xe4   : > { %707 = vst [vmem:[%s1121_s22 + $0x1b0] sm:$0xff] %v628_v3 }
  0xe5   : > { %660 = vst [vmem:[%s1121_s22 + $0x38] sm:$0xff] %v510_v4 }
  0xe6   : > { %676 = vst [vmem:[%s1121_s22 + $0xb8] sm:$0xff] %v550_v5 }
  0xea   : > { %v590_v6 = vpop.f32.mrf.mxu2  ;;  %v630_v7 = vpop.f32.mrf.mxu3 }
  0xeb   : > { %692 = vst [vmem:[%s1121_s22 + $0x138] sm:$0xff] %v590_v6  ;;  %v513_v8 = vpop.f32.mrf.mxu0  ;;  %v553_v9 = vpop.f32.mrf.mxu1 }
  0xec   : > { %708 = vst [vmem:[%s1121_s22 + $0x1b8] sm:$0xff] %v630_v7 }
  0xed   : > { %661 = vst [vmem:[%s1121_s22 + $0x40] sm:$0xff] %v513_v8 }
  0xee   : > { %677 = vst [vmem:[%s1121_s22 + $0xc0] sm:$0xff] %v553_v9 }
  0xf2   : > { %v593_v10 = vpop.f32.mrf.mxu2  ;;  %v633_v11 = vpop.f32.mrf.mxu3 }
  0xf3   : > { %693 = vst [vmem:[%s1121_s22 + $0x140] sm:$0xff] %v593_v10  ;;  %v515_v12 = vpop.f32.mrf.mxu0  ;;  %v555_v13 = vpop.f32.mrf.mxu1 }
  0xf4   : > { %709 = vst [vmem:[%s1121_s22 + $0x1c0] sm:$0xff] %v633_v11 }
  0xf5   : > { %662 = vst [vmem:[%s1121_s22 + $0x48] sm:$0xff] %v515_v12 }
  0xf6   : > { %678 = vst [vmem:[%s1121_s22 + $0xc8] sm:$0xff] %v555_v13 }
  0xfa   : > { %v595_v14 = vpop.f32.mrf.mxu2  ;;  %v635_v15 = vpop.f32.mrf.mxu3 }
  0xfb   : > { %694 = vst [vmem:[%s1121_s22 + $0x148] sm:$0xff] %v595_v14  ;;  %v518_v16 = vpop.f32.mrf.mxu0  ;;  %v558_v17 = vpop.f32.mrf.mxu1 }
  0xfc   : > { %710 = vst [vmem:[%s1121_s22 + $0x1c8] sm:$0xff] %v635_v15 }
  0xfd   : > { %663 = vst [vmem:[%s1121_s22 + $0x50] sm:$0xff] %v518_v16 }
  0xfe   : > { %679 = vst [vmem:[%s1121_s22 + $0xd0] sm:$0xff] %v558_v17 }
 0x102   : > { %v598_v18 = vpop.f32.mrf.mxu2  ;;  %v638_v19 = vpop.f32.mrf.mxu3 }
 0x103   : > { %695 = vst [vmem:[%s1121_s22 + $0x150] sm:$0xff] %v598_v18  ;;  %v520_v20 = vpop.f32.mrf.mxu0  ;;  %v560_v21 = vpop.f32.mrf.mxu1 }
 0x104   : > { %711 = vst [vmem:[%s1121_s22 + $0x1d0] sm:$0xff] %v638_v19 }
 0x105   : > { %664 = vst [vmem:[%s1121_s22 + $0x58] sm:$0xff] %v520_v20 }
 0x106   : > { %680 = vst [vmem:[%s1121_s22 + $0xd8] sm:$0xff] %v560_v21 }
 0x10a   : > { %v600_v22 = vpop.f32.mrf.mxu2  ;;  %v640_v23 = vpop.f32.mrf.mxu3 }
 0x10b   : > { %696 = vst [vmem:[%s1121_s22 + $0x158] sm:$0xff] %v600_v22  ;;  %v523_v24 = vpop.f32.mrf.mxu0  ;;  %v563_v25 = vpop.f32.mrf.mxu1 }
 0x10c   : > { %712 = vst [vmem:[%s1121_s22 + $0x1d8] sm:$0xff] %v640_v23 }
 0x10d   : > { %665 = vst [vmem:[%s1121_s22 + $0x60] sm:$0xff] %v523_v24 }
 0x10e   : > { %681 = vst [vmem:[%s1121_s22 + $0xe0] sm:$0xff] %v563_v25 }
 0x112   : > { %v603_v26 = vpop.f32.mrf.mxu2  ;;  %v643_v27 = vpop.f32.mrf.mxu3 }
 0x113   : > { %697 = vst [vmem:[%s1121_s22 + $0x160] sm:$0xff] %v603_v26  ;;  %v525_v28 = vpop.f32.mrf.mxu0  ;;  %v565_v29 = vpop.f32.mrf.mxu1 }
 0x114   : > { %713 = vst [vmem:[%s1121_s22 + $0x1e0] sm:$0xff] %v643_v27 }
 0x115   : > { %666 = vst [vmem:[%s1121_s22 + $0x68] sm:$0xff] %v525_v28 }
 0x116   : > { %682 = vst [vmem:[%s1121_s22 + $0xe8] sm:$0xff] %v565_v29 }
 0x11a   : > { %v605_v30 = vpop.f32.mrf.mxu2  ;;  %v645_v31 = vpop.f32.mrf.mxu3 }
 0x11b   : > { %698 = vst [vmem:[%s1121_s22 + $0x168] sm:$0xff] %v605_v30  ;;  %v528_v32 = vpop.f32.mrf.mxu0  ;;  %v568_v33 = vpop.f32.mrf.mxu1 }
 0x11c   : > { %714 = vst [vmem:[%s1121_s22 + $0x1e8] sm:$0xff] %v645_v31 }
 0x11d   : > { %667 = vst [vmem:[%s1121_s22 + $0x70] sm:$0xff] %v528_v32 }
 0x11e   : > { %683 = vst [vmem:[%s1121_s22 + $0xf0] sm:$0xff] %v568_v33 }
 0x122   : > { %v608_v34 = vpop.f32.mrf.mxu2  ;;  %v648_v35 = vpop.f32.mrf.mxu3 }
 0x123   : > { %699 = vst [vmem:[%s1121_s22 + $0x170] sm:$0xff] %v608_v34  ;;  %v530_v36 = vpop.f32.mrf.mxu0  ;;  %v570_v37 = vpop.f32.mrf.mxu1 }
 0x124   : > { %715 = vst [vmem:[%s1121_s22 + $0x1f0] sm:$0xff] %v648_v35 }
 0x125   : > { %668 = vst [vmem:[%s1121_s22 + $0x78] sm:$0xff] %v530_v36 }
 0x126   : > { %684 = vst [vmem:[%s1121_s22 + $0xf8] sm:$0xff] %v570_v37 }
 0x12a   : > { %v610_v38 = vpop.f32.mrf.mxu2  ;;  %v650_v39 = vpop.f32.mrf.mxu3 }
 0x12b   : > { %700 = vst [vmem:[%s1121_s22 + $0x178] sm:$0xff] %v610_v38 }
 0x12c   : > { %716 = vst [vmem:[%s1121_s22 + $0x1f8] sm:$0xff] %v650_v39 }
 0x12d PF: > { %s12_s9 = sadd.s32 1, %s1038_s9  }
 0x12e   : > { %p9_p4 = scmp.ge.s32.totalorder %s12_s9, 6  }
 0x130   :  { %11 = sbr.rel (!%p9_p4) target bundleno = 1 (0x1), region = 61 }

</bundles_post_ra>
